<compile_context>
chip_gen: v7x
topology: tpu7x:2x2x1
jax: 0.10.0
libtpu: 0.0.40
codegen_flags: <defaults>
</compile_context>

<pallas_src>
import functools

import jax
import jax.numpy as jnp
from jax.experimental import pallas as pl
from jax.experimental.pallas import tpu as pltpu


# ----------------------------------------------------------------------------
# Fused bidirectional GRU + attention pooling (shared kernel body).
#   x_ref: (T, N, E) tile -> returns pooled_f, pooled_b each (N, H) in f32.
# ----------------------------------------------------------------------------
def _bigru_attn_pool(x_ref, wih_ref, bgi_ref, whh_ref, bhn_ref,
                     attw_ref, attb_ref, ctx_ref,
                     gi_scr, hf_scr, hb_scr, H):
    T, N, E = x_ref.shape
    bf16 = jnp.bfloat16
    f32 = jnp.float32

    # --- 1) Hoisted input-gate projection: ONE MXU matmul for all timesteps and
    #        both directions; r/z hidden biases already folded into bgi.
    x2 = x_ref[...].reshape(T * N, E).astype(bf16)
    wih = wih_ref[...].astype(bf16)                                  # (E, 6H)
    gi = jnp.dot(x2, wih, preferred_element_type=f32) + bgi_ref[...]  # (T*N, 6H)
    gi = gi.reshape(T, N, 6 * H)
    # One-time split into lane-aligned per-gate planes; scratch laid out flat as
    # (6*T, N, H) so the recurrence only ever does a single dynamic leading index.
    for g in range(6):
        gi_scr[g * T:(g + 1) * T] = gi[:, :, g * H:(g + 1) * H]

    # --- 2) Per-gate hidden weights as (H, H) blocks (no in-loop gate slicing),
    #        loaded/cast once; hoisted bias broadcasts.
    w_f = [whh_ref[0, g].astype(bf16) for g in range(3)]
    w_b = [whh_ref[1, g].astype(bf16) for g in range(3)]
    bhn_f = jnp.broadcast_to(bhn_ref[0], (N, H))
    bhn_b = jnp.broadcast_to(bhn_ref[1], (N, H))

    def gru_cell(h, gi_r, gi_z, gi_n, w, b_n):
        hb = h.astype(bf16)
        r = jax.nn.sigmoid(gi_r + jnp.dot(hb, w[0], preferred_element_type=f32))
        z = jax.nn.sigmoid(gi_z + jnp.dot(hb, w[1], preferred_element_type=f32))
        n = jnp.tanh(gi_n + r * (jnp.dot(hb, w[2], preferred_element_type=f32) + b_n))
        return (1.0 - z) * n + z * h

    # --- 3) Merged forward/backward recurrence: independent work per iteration so
    #        MXU pushes of one direction overlap the other's sigmoid/tanh/VPU ops.
    def body(t, carry):
        h_f, h_b = carry
        tb = T - 1 - t
        h_f = gru_cell(h_f, gi_scr[0 * T + t], gi_scr[1 * T + t], gi_scr[2 * T + t],
                       w_f, bhn_f)
        h_b = gru_cell(h_b, gi_scr[3 * T + tb], gi_scr[4 * T + tb], gi_scr[5 * T + tb],
                       w_b, bhn_b)
        hf_scr[t] = h_f
        hb_scr[tb] = h_b
        return (h_f, h_b)

    h0 = jnp.zeros((N, H), f32)
    jax.lax.fori_loop(0, T, body, (h0, h0), unroll=True)

    # --- 4) Attention pooling over T, fully vectorized (one matmul, no per-t loop,
    #        no score scratch, no fwd/bwd concatenate: split-weight trick).
    hf = hf_scr[...]                                                 # (T, N, H)
    hb = hb_scr[...]
    attw = attw_ref[...].astype(bf16)                                # (2H, 2H)
    u = jnp.tanh(
        jnp.dot(hf.reshape(T * N, H).astype(bf16), attw[0:H, :],
                preferred_element_type=f32)
        + jnp.dot(hb.reshape(T * N, H).astype(bf16), attw[H:2 * H, :],
                  preferred_element_type=f32)
        + attb_ref[...])                                             # (T*N, 2H) f32
    u3 = u.reshape(T, N, 2 * H)
    s = jnp.tanh(jnp.sum(u3 * ctx_ref[...], axis=-1, keepdims=True))  # (T, N, 1)
    m = jnp.max(s, axis=0, keepdims=True)
    e = jnp.exp(s - m)
    a = e / jnp.sum(e, axis=0, keepdims=True)                        # softmax over T
    pooled_f = jnp.sum(hf * a, axis=0)                               # (N, H)
    pooled_b = jnp.sum(hb * a, axis=0)
    return pooled_f, pooled_b


def _han_encoder_kernel(x_ref, wih_ref, bgi_ref, whh_ref, bhn_ref,
                        attw_ref, attb_ref, ctx_ref,
                        out_ref, gi_scr, hf_scr, hb_scr, *, H):
    pf, pb = _bigru_attn_pool(x_ref, wih_ref, bgi_ref, whh_ref, bhn_ref,
                              attw_ref, attb_ref, ctx_ref,
                              gi_scr, hf_scr, hb_scr, H)
    # Write the two directions into disjoint halves (no concatenate epilogue).
    out_ref[:, 0:H] = pf
    out_ref[:, H:2 * H] = pb


def _han_encoder_fc_kernel(x_ref, wih_ref, bgi_ref, whh_ref, bhn_ref,
                           attw_ref, attb_ref, ctx_ref, fcw_ref, fcb_ref,
                           out_ref, gi_scr, hf_scr, hb_scr, *, H):
    pf, pb = _bigru_attn_pool(x_ref, wih_ref, bgi_ref, whh_ref, bhn_ref,
                              attw_ref, attb_ref, ctx_ref,
                              gi_scr, hf_scr, hb_scr, H)
    # Final Linear fused in: logits = [pf|pb] @ W^T + b, using split weight rows.
    fcw = fcw_ref[...].astype(jnp.bfloat16)                          # (2H, C)
    out_ref[...] = (jnp.dot(pf.astype(jnp.bfloat16), fcw[0:H, :],
                            preferred_element_type=jnp.float32)
                    + jnp.dot(pb.astype(jnp.bfloat16), fcw[H:2 * H, :],
                              preferred_element_type=jnp.float32)
                    + fcb_ref[...])


# ----------------------------------------------------------------------------
# Wrapper: one fused pallas_call per hierarchy level.
# ----------------------------------------------------------------------------
def _encode(x, p, fc_w=None, fc_b=None):
    T, N, E = x.shape
    H = p["whh"].shape[-1]
    with_fc = fc_w is not None
    out_dim = fc_w.shape[-1] if with_fc else 2 * H

    # Pad the folded batch axis up to a sublane tile (8) so every in-kernel
    # reshape / store is lane- and sublane-dense; padded rows are sliced off.
    Np = ((N + 7) // 8) * 8
    if Np != N:
        x = jnp.pad(x, ((0, 0), (0, Np - N), (0, 0)))
    NT = 8                       # one sublane tile of rows per grid step
    grid = (Np // NT,)           # "parallel" grid -> shards across v7x's 2 TCs

    in_specs = [
        pl.BlockSpec((T, NT, E), lambda i: (0, i, 0)),         # x tile (pipelined)
        pl.BlockSpec((E, 6 * H), lambda i: (0, 0)),            # weights: constant
        pl.BlockSpec((1, 6 * H), lambda i: (0, 0)),            # index_map => stay
        pl.BlockSpec((2, 3, H, H), lambda i: (0, 0, 0, 0)),    # VMEM-resident
        pl.BlockSpec((2, 1, H), lambda i: (0, 0, 0)),
        pl.BlockSpec((2 * H, 2 * H), lambda i: (0, 0)),
        pl.BlockSpec((1, 2 * H), lambda i: (0, 0)),
        pl.BlockSpec((1, 2 * H), lambda i: (0, 0)),
    ]
    args = [x, p["wih"], p["bgi"], p["whh"], p["bhn"],
            p["att_w"], p["att_b"], p["att_ctx"]]
    if with_fc:
        kernel = functools.partial(_han_encoder_fc_kernel, H=H)
        in_specs = in_specs + [
            pl.BlockSpec((2 * H, out_dim), lambda i: (0, 0)),
            pl.BlockSpec((1, out_dim), lambda i: (0, 0)),
        ]
        args = args + [fc_w, fc_b]
    else:
        kernel = functools.partial(_han_encoder_kernel, H=H)

    # NOTE: at these shapes the working set is tiny; for realistic HAN sizes keep
    # the NT-tiling (bounded VMEM on v7x) and raise vmem_limit_bytes on v5e/v6e.
    out = pl.pallas_call(
        kernel,
        out_shape=jax.ShapeDtypeStruct((Np, out_dim), jnp.float32),
        grid_spec=pltpu.PrefetchScalarGridSpec(
            num_scalar_prefetch=0,
            grid=grid,
            in_specs=in_specs,
            out_specs=pl.BlockSpec((NT, out_dim), lambda i: (i, 0)),
            scratch_shapes=[
                pltpu.VMEM((6 * T, NT, H), jnp.float32),   # hoisted gate projections
                pltpu.VMEM((T, NT, H), jnp.float32),       # forward hidden states
                pltpu.VMEM((T, NT, H), jnp.float32),       # backward hidden states
            ],
        ),
        compiler_params=pltpu.CompilerParams(
            dimension_semantics=("parallel",)),
    )(*args)
    return out[:N]


# ----------------------------------------------------------------------------
# HierNet forward: embedding gather in plain JAX (glue), two fused kernels.
# ----------------------------------------------------------------------------
def hiernet_forward(ids, params):
    B, S, Tw = ids.shape
    # input.permute(1,0,2) + loop over sentences, folded into one (S*B) batch.
    ids_fold = jnp.transpose(ids, (2, 1, 0)).reshape(Tw, S * B)         # (Tw, S*B)
    x = jnp.take(params["embed"], ids_fold, axis=0)                     # (Tw, S*B, E)
    sent_vec = _encode(x, params["word"])                               # (S*B, 2Hw)
    sent_seq = sent_vec.reshape(S, B, sent_vec.shape[-1])               # (S, B, 2Hw)
    return _encode(sent_seq, params["sent"],
                   fc_w=params["fc_w"], fc_b=params["fc_b"])            # (B, C)


# ----------------------------------------------------------------------------
# Parameter init (PyTorch-shaped raw params, packed into the kernel layout).
# ----------------------------------------------------------------------------
def pack_gru_att(wih_f, whh_f, bih_f, bhh_f, wih_b, whh_b, bih_b, bhh_b,
                 att_w, att_b, att_ctx, H):
    wih = jnp.concatenate([wih_f, wih_b], axis=1)                       # (E, 6H)

    def fold_bias(bih, bhh):   # fold b_hh into r/z gates; keep b_hn separate
        return jnp.concatenate([bih[:, 0:H] + bhh[:, 0:H],
                                bih[:, H:2 * H] + bhh[:, H:2 * H],
                                bih[:, 2 * H:3 * H]], axis=1)

    bgi = jnp.concatenate([fold_bias(bih_f, bhh_f), fold_bias(bih_b, bhh_b)],
                          axis=1)                                       # (1, 6H)

    def split_whh(whh):
        return jnp.stack([whh[:, 0:H], whh[:, H:2 * H], whh[:, 2 * H:3 * H]], axis=0)

    whh = jnp.stack([split_whh(whh_f), split_whh(whh_b)], axis=0)       # (2, 3, H, H)
    bhn = jnp.stack([bhh_f[:, 2 * H:3 * H], bhh_b[:, 2 * H:3 * H]], axis=0)  # (2, 1, H)
    return dict(wih=wih, bgi=bgi, whh=whh, bhn=bhn,
                att_w=att_w, att_b=att_b, att_ctx=att_ctx)


def init_params(key, vocab, embed_dim, word_hidden, sent_hidden, num_classes):
    def nrm(k, shape, std=0.05):
        return std * jax.random.normal(k, shape, jnp.float32)

    def level_params(k, in_dim, H):
        ks = jax.random.split(k, 11)
        return pack_gru_att(
            nrm(ks[0], (in_dim, 3 * H)), nrm(ks[1], (H, 3 * H)),
            nrm(ks[2], (1, 3 * H)), nrm(ks[3], (1, 3 * H)),
            nrm(ks[4], (in_dim, 3 * H)), nrm(ks[5], (H, 3 * H)),
            nrm(ks[6], (1, 3 * H)), nrm(ks[7], (1, 3 * H)),
            nrm(ks[8], (2 * H, 2 * H)), nrm(ks[9], (1, 2 * H)),
            nrm(ks[10], (1, 2 * H)), H)

    ks = jax.random.split(key, 5)
    return dict(
        embed=nrm(ks[0], (vocab, embed_dim), std=0.1),
        word=level_params(ks[1], embed_dim, word_hidden),
        sent=level_params(ks[2], 2 * word_hidden, sent_hidden),
        fc_w=nrm(ks[3], (2 * sent_hidden, num_classes)),
        fc_b=nrm(ks[4], (1, num_classes)),
    )


if __name__ == "__main__":
    # shapes consistent with HierNet(word_hidden, sent_hidden, batch, embed_table,
    # max_sent_length, max_word_length)
    batch_size = 2
    max_sent_length = 4
    max_word_length = 8
    vocab, embed_dim = 50, 32
    word_hidden = 16
    sent_hidden = 16
    num_classes = 5

    key = jax.random.PRNGKey(0)
    k_params, k_data = jax.random.split(key)
    params = init_params(k_params, vocab, embed_dim, word_hidden,
                         sent_hidden, num_classes)
    ids = jax.random.randint(k_data, (batch_size, max_sent_length,
                                      max_word_length), 0, vocab,
                             dtype=jnp.int32)

    out = jax.jit(hiernet_forward)(ids, params)
    out = jax.block_until_ready(out)
    assert out.shape == (batch_size, num_classes), out.shape
    assert bool(jnp.all(jnp.isfinite(out)))
    print("KERNEL_OK")
</pallas_src>

<mosaic_0001>
module attributes {stable_mosaic.version = 11 : i64} {
  func.func @_han_encoder_fc_kernel(%arg0: i32, %arg1: memref<4x8x32xf32, #tpu.memory_space<vmem>>, %arg2: memref<32x96xf32, #tpu.memory_space<vmem>>, %arg3: memref<1x96xf32, #tpu.memory_space<vmem>>, %arg4: memref<2x3x16x16xf32, #tpu.memory_space<vmem>>, %arg5: memref<2x1x16xf32, #tpu.memory_space<vmem>>, %arg6: memref<32x32xf32, #tpu.memory_space<vmem>>, %arg7: memref<1x32xf32, #tpu.memory_space<vmem>>, %arg8: memref<1x32xf32, #tpu.memory_space<vmem>>, %arg9: memref<32x5xf32, #tpu.memory_space<vmem>>, %arg10: memref<1x5xf32, #tpu.memory_space<vmem>>, %arg11: memref<8x5xf32, #tpu.memory_space<vmem>>, %arg12: memref<24x8x16xf32, #tpu.memory_space<vmem>>, %arg13: memref<4x8x16xf32, #tpu.memory_space<vmem>>, %arg14: memref<4x8x16xf32, #tpu.memory_space<vmem>>) attributes {dimension_semantics = [#tpu.dimension_semantics<parallel>], iteration_bounds = array<i64: 1>, scalar_prefetch = 0 : i64, scratch_operands = 3 : i64, tpu.core_type = #tpu.core_type<tc>, window_params = [{transform_indices = @transform_0, window_bounds = array<i64: 4, 8, 32>}, {pipeline_mode = #tpu.pipeline_mode<synchronous>, transform_indices = @transform_1, window_bounds = array<i64: 32, 96>}, {pipeline_mode = #tpu.pipeline_mode<synchronous>, transform_indices = @transform_2, window_bounds = array<i64: 1, 96>}, {pipeline_mode = #tpu.pipeline_mode<synchronous>, transform_indices = @transform_3, window_bounds = array<i64: 2, 3, 16, 16>}, {pipeline_mode = #tpu.pipeline_mode<synchronous>, transform_indices = @transform_4, window_bounds = array<i64: 2, 1, 16>}, {pipeline_mode = #tpu.pipeline_mode<synchronous>, transform_indices = @transform_5, window_bounds = array<i64: 32, 32>}, {pipeline_mode = #tpu.pipeline_mode<synchronous>, transform_indices = @transform_6, window_bounds = array<i64: 1, 32>}, {pipeline_mode = #tpu.pipeline_mode<synchronous>, transform_indices = @transform_7, window_bounds = array<i64: 1, 32>}, {pipeline_mode = #tpu.pipeline_mode<synchronous>, transform_indices = @transform_8, window_bounds = array<i64: 32, 5>}, {pipeline_mode = #tpu.pipeline_mode<synchronous>, transform_indices = @transform_9, window_bounds = array<i64: 1, 5>}, {transform_indices = @transform_10, window_bounds = array<i64: 8, 5>}]} {
    %c0 = arith.constant 0 : index
    %c0_0 = arith.constant 0 : index
    %c0_1 = arith.constant 0 : index
    %0 = vector.load %arg1[%c0, %c0_0, %c0_1] : memref<4x8x32xf32, #tpu.memory_space<vmem>>, vector<4x8x32xf32>
    %1 = vector.shape_cast %0 : vector<4x8x32xf32> to vector<32x32xf32>
    %2 = arith.truncf %1 : vector<32x32xf32> to vector<32x32xbf16>
    %c0_2 = arith.constant 0 : index
    %c0_3 = arith.constant 0 : index
    %3 = vector.load %arg2[%c0_2, %c0_3] : memref<32x96xf32, #tpu.memory_space<vmem>>, vector<32x96xf32>
    %4 = arith.truncf %3 : vector<32x96xf32> to vector<32x96xbf16>
    %cst = arith.constant dense<0.000000e+00> : vector<32x96xf32>
    %5 = tpu.matmul %2, %4, %cst {dimension_numbers = #tpu.dot_dimension_numbers<[1], [0], [0], [1], [0, 0, 1, 1], [], []>} : vector<32x32xbf16>, vector<32x96xbf16>, vector<32x96xf32> -> vector<32x96xf32>
    %c0_4 = arith.constant 0 : index
    %c0_5 = arith.constant 0 : index
    %6 = vector.load %arg3[%c0_4, %c0_5] : memref<1x96xf32, #tpu.memory_space<vmem>>, vector<1x96xf32>
    %7 = vector.broadcast %6 : vector<1x96xf32> to vector<32x96xf32>
    %8 = arith.addf %5, %7 : vector<32x96xf32>
    %9 = vector.shape_cast %8 : vector<32x96xf32> to vector<4x8x96xf32>
    %10 = vector.extract_strided_slice %9 {offsets = [0, 0, 0], sizes = [4, 8, 16], strides = [1, 1, 1]} : vector<4x8x96xf32> to vector<4x8x16xf32>
    %c0_6 = arith.constant 0 : index
    %c0_7 = arith.constant 0 : index
    %c0_8 = arith.constant 0 : index
    %11 = vector.load %arg12[%c0_6, %c0_7, %c0_8] : memref<24x8x16xf32, #tpu.memory_space<vmem>>, vector<4x8x16xf32>
    tpu.vector_store %arg12[%c0_6, %c0_7, %c0_8], %10 {strides = array<i32>} : memref<24x8x16xf32, #tpu.memory_space<vmem>>, vector<4x8x16xf32>,
    %12 = vector.extract_strided_slice %9 {offsets = [0, 0, 16], sizes = [4, 8, 16], strides = [1, 1, 1]} : vector<4x8x96xf32> to vector<4x8x16xf32>
    %c4 = arith.constant 4 : index
    %c0_9 = arith.constant 0 : index
    %c0_10 = arith.constant 0 : index
    %13 = vector.load %arg12[%c4, %c0_9, %c0_10] : memref<24x8x16xf32, #tpu.memory_space<vmem>>, vector<4x8x16xf32>
    tpu.vector_store %arg12[%c4, %c0_9, %c0_10], %12 {strides = array<i32>} : memref<24x8x16xf32, #tpu.memory_space<vmem>>, vector<4x8x16xf32>,
    %14 = vector.extract_strided_slice %9 {offsets = [0, 0, 32], sizes = [4, 8, 16], strides = [1, 1, 1]} : vector<4x8x96xf32> to vector<4x8x16xf32>
    %c8 = arith.constant 8 : index
    %c0_11 = arith.constant 0 : index
    %c0_12 = arith.constant 0 : index
    %15 = vector.load %arg12[%c8, %c0_11, %c0_12] : memref<24x8x16xf32, #tpu.memory_space<vmem>>, vector<4x8x16xf32>
    tpu.vector_store %arg12[%c8, %c0_11, %c0_12], %14 {strides = array<i32>} : memref<24x8x16xf32, #tpu.memory_space<vmem>>, vector<4x8x16xf32>,
    %16 = vector.extract_strided_slice %9 {offsets = [0, 0, 48], sizes = [4, 8, 16], strides = [1, 1, 1]} : vector<4x8x96xf32> to vector<4x8x16xf32>
    %c12 = arith.constant 12 : index
    %c0_13 = arith.constant 0 : index
    %c0_14 = arith.constant 0 : index
    %17 = vector.load %arg12[%c12, %c0_13, %c0_14] : memref<24x8x16xf32, #tpu.memory_space<vmem>>, vector<4x8x16xf32>
    tpu.vector_store %arg12[%c12, %c0_13, %c0_14], %16 {strides = array<i32>} : memref<24x8x16xf32, #tpu.memory_space<vmem>>, vector<4x8x16xf32>,
    %18 = vector.extract_strided_slice %9 {offsets = [0, 0, 64], sizes = [4, 8, 16], strides = [1, 1, 1]} : vector<4x8x96xf32> to vector<4x8x16xf32>
    %c16 = arith.constant 16 : index
    %c0_15 = arith.constant 0 : index
    %c0_16 = arith.constant 0 : index
    %19 = vector.load %arg12[%c16, %c0_15, %c0_16] : memref<24x8x16xf32, #tpu.memory_space<vmem>>, vector<4x8x16xf32>
    tpu.vector_store %arg12[%c16, %c0_15, %c0_16], %18 {strides = array<i32>} : memref<24x8x16xf32, #tpu.memory_space<vmem>>, vector<4x8x16xf32>,
    %20 = vector.extract_strided_slice %9 {offsets = [0, 0, 80], sizes = [4, 8, 16], strides = [1, 1, 1]} : vector<4x8x96xf32> to vector<4x8x16xf32>
    %c20 = arith.constant 20 : index
    %c0_17 = arith.constant 0 : index
    %c0_18 = arith.constant 0 : index
    %21 = vector.load %arg12[%c20, %c0_17, %c0_18] : memref<24x8x16xf32, #tpu.memory_space<vmem>>, vector<4x8x16xf32>
    tpu.vector_store %arg12[%c20, %c0_17, %c0_18], %20 {strides = array<i32>} : memref<24x8x16xf32, #tpu.memory_space<vmem>>, vector<4x8x16xf32>,
    %c0_19 = arith.constant 0 : index
    %c0_20 = arith.constant 0 : index
    %c0_21 = arith.constant 0 : index
    %c0_22 = arith.constant 0 : index
    %22 = vector.load %arg4[%c0_19, %c0_20, %c0_21, %c0_22] : memref<2x3x16x16xf32, #tpu.memory_space<vmem>>, vector<1x1x16x16xf32>
    %23 = vector.shape_cast %22 : vector<1x1x16x16xf32> to vector<16x16xf32>
    %24 = arith.truncf %23 : vector<16x16xf32> to vector<16x16xbf16>
    %c0_23 = arith.constant 0 : index
    %c1 = arith.constant 1 : index
    %c0_24 = arith.constant 0 : index
    %c0_25 = arith.constant 0 : index
    %25 = vector.load %arg4[%c0_23, %c1, %c0_24, %c0_25] : memref<2x3x16x16xf32, #tpu.memory_space<vmem>>, vector<1x1x16x16xf32>
    %26 = vector.shape_cast %25 : vector<1x1x16x16xf32> to vector<16x16xf32>
    %27 = arith.truncf %26 : vector<16x16xf32> to vector<16x16xbf16>
    %c0_26 = arith.constant 0 : index
    %c2 = arith.constant 2 : index
    %c0_27 = arith.constant 0 : index
    %c0_28 = arith.constant 0 : index
    %28 = vector.load %arg4[%c0_26, %c2, %c0_27, %c0_28] : memref<2x3x16x16xf32, #tpu.memory_space<vmem>>, vector<1x1x16x16xf32>
    %29 = vector.shape_cast %28 : vector<1x1x16x16xf32> to vector<16x16xf32>
    %30 = arith.truncf %29 : vector<16x16xf32> to vector<16x16xbf16>
    %c1_29 = arith.constant 1 : index
    %c0_30 = arith.constant 0 : index
    %c0_31 = arith.constant 0 : index
    %c0_32 = arith.constant 0 : index
    %31 = vector.load %arg4[%c1_29, %c0_30, %c0_31, %c0_32] : memref<2x3x16x16xf32, #tpu.memory_space<vmem>>, vector<1x1x16x16xf32>
    %32 = vector.shape_cast %31 : vector<1x1x16x16xf32> to vector<16x16xf32>
    %33 = arith.truncf %32 : vector<16x16xf32> to vector<16x16xbf16>
    %c1_33 = arith.constant 1 : index
    %c1_34 = arith.constant 1 : index
    %c0_35 = arith.constant 0 : index
    %c0_36 = arith.constant 0 : index
    %34 = vector.load %arg4[%c1_33, %c1_34, %c0_35, %c0_36] : memref<2x3x16x16xf32, #tpu.memory_space<vmem>>, vector<1x1x16x16xf32>
    %35 = vector.shape_cast %34 : vector<1x1x16x16xf32> to vector<16x16xf32>
    %36 = arith.truncf %35 : vector<16x16xf32> to vector<16x16xbf16>
    %c1_37 = arith.constant 1 : index
    %c2_38 = arith.constant 2 : index
    %c0_39 = arith.constant 0 : index
    %c0_40 = arith.constant 0 : index
    %37 = vector.load %arg4[%c1_37, %c2_38, %c0_39, %c0_40] : memref<2x3x16x16xf32, #tpu.memory_space<vmem>>, vector<1x1x16x16xf32>
    %38 = vector.shape_cast %37 : vector<1x1x16x16xf32> to vector<16x16xf32>
    %39 = arith.truncf %38 : vector<16x16xf32> to vector<16x16xbf16>
    %c0_41 = arith.constant 0 : index
    %c0_42 = arith.constant 0 : index
    %c0_43 = arith.constant 0 : index
    %40 = vector.load %arg5[%c0_41, %c0_42, %c0_43] : memref<2x1x16xf32, #tpu.memory_space<vmem>>, vector<1x1x16xf32>
    %41 = vector.shape_cast %40 : vector<1x1x16xf32> to vector<1x16xf32>
    %42 = vector.shape_cast %41 : vector<1x16xf32> to vector<1x16xf32>
    %43 = vector.broadcast %42 : vector<1x16xf32> to vector<8x16xf32>
    %c1_44 = arith.constant 1 : index
    %c0_45 = arith.constant 0 : index
    %c0_46 = arith.constant 0 : index
    %44 = vector.load %arg5[%c1_44, %c0_45, %c0_46] : memref<2x1x16xf32, #tpu.memory_space<vmem>>, vector<1x1x16xf32>
    %45 = vector.shape_cast %44 : vector<1x1x16xf32> to vector<1x16xf32>
    %46 = vector.shape_cast %45 : vector<1x16xf32> to vector<1x16xf32>
    %47 = vector.broadcast %46 : vector<1x16xf32> to vector<8x16xf32>
    %cst_47 = arith.constant 0.000000e+00 : f32
    %48 = vector.broadcast %cst_47 : f32 to vector<8x16xf32>
    %c0_i32 = arith.constant 0 : i32
    %c3_i32 = arith.constant 3 : i32
    %49 = arith.subi %c3_i32, %c0_i32 : i32
    %c0_i32_48 = arith.constant 0 : i32
    %50 = arith.addi %c0_i32_48, %c0_i32 : i32
    %51 = arith.index_cast %50 : i32 to index
    %c0_49 = arith.constant 0 : index
    %c0_50 = arith.constant 0 : index
    %52 = vector.load %arg12[%51, %c0_49, %c0_50] : memref<24x8x16xf32, #tpu.memory_space<vmem>>, vector<1x8x16xf32>
    %53 = vector.shape_cast %52 : vector<1x8x16xf32> to vector<8x16xf32>
    %c4_i32 = arith.constant 4 : i32
    %54 = arith.addi %c4_i32, %c0_i32 : i32
    %55 = arith.index_cast %54 : i32 to index
    %c0_51 = arith.constant 0 : index
    %c0_52 = arith.constant 0 : index
    %56 = vector.load %arg12[%55, %c0_51, %c0_52] : memref<24x8x16xf32, #tpu.memory_space<vmem>>, vector<1x8x16xf32>
    %57 = vector.shape_cast %56 : vector<1x8x16xf32> to vector<8x16xf32>
    %c8_i32 = arith.constant 8 : i32
    %58 = arith.addi %c8_i32, %c0_i32 : i32
    %59 = arith.index_cast %58 : i32 to index
    %c0_53 = arith.constant 0 : index
    %c0_54 = arith.constant 0 : index
    %60 = vector.load %arg12[%59, %c0_53, %c0_54] : memref<24x8x16xf32, #tpu.memory_space<vmem>>, vector<1x8x16xf32>
    %61 = vector.shape_cast %60 : vector<1x8x16xf32> to vector<8x16xf32>
    %62 = arith.truncf %48 : vector<8x16xf32> to vector<8x16xbf16>
    %cst_55 = arith.constant dense<0.000000e+00> : vector<8x16xf32>
    %63 = tpu.matmul %62, %24, %cst_55 {dimension_numbers = #tpu.dot_dimension_numbers<[1], [0], [0], [1], [0, 0, 1, 1], [], []>} : vector<8x16xbf16>, vector<16x16xbf16>, vector<8x16xf32> -> vector<8x16xf32>
    %64 = arith.addf %53, %63 : vector<8x16xf32>
    %65 = arith.negf %64 : vector<8x16xf32>
    %66 = math.exp %65 : vector<8x16xf32>
    %cst_56 = arith.constant 1.000000e+00 : f32
    %67 = vector.broadcast %cst_56 : f32 to vector<8x16xf32>
    %68 = arith.addf %67, %66 : vector<8x16xf32>
    %69 = arith.divf %67, %68 : vector<8x16xf32>
    %cst_57 = arith.constant dense<0.000000e+00> : vector<8x16xf32>
    %70 = tpu.matmul %62, %27, %cst_57 {dimension_numbers = #tpu.dot_dimension_numbers<[1], [0], [0], [1], [0, 0, 1, 1], [], []>} : vector<8x16xbf16>, vector<16x16xbf16>, vector<8x16xf32> -> vector<8x16xf32>
    %71 = arith.addf %57, %70 : vector<8x16xf32>
    %72 = arith.negf %71 : vector<8x16xf32>
    %73 = math.exp %72 : vector<8x16xf32>
    %cst_58 = arith.constant 1.000000e+00 : f32
    %74 = vector.broadcast %cst_58 : f32 to vector<8x16xf32>
    %75 = arith.addf %74, %73 : vector<8x16xf32>
    %76 = arith.divf %74, %75 : vector<8x16xf32>
    %cst_59 = arith.constant dense<0.000000e+00> : vector<8x16xf32>
    %77 = tpu.matmul %62, %30, %cst_59 {dimension_numbers = #tpu.dot_dimension_numbers<[1], [0], [0], [1], [0, 0, 1, 1], [], []>} : vector<8x16xbf16>, vector<16x16xbf16>, vector<8x16xf32> -> vector<8x16xf32>
    %78 = arith.addf %77, %43 : vector<8x16xf32>
    %79 = arith.mulf %69, %78 : vector<8x16xf32>
    %80 = arith.addf %61, %79 : vector<8x16xf32>
    %81 = math.tanh %80 : vector<8x16xf32>
    %cst_60 = arith.constant 1.000000e+00 : f32
    %82 = vector.broadcast %cst_60 : f32 to vector<8x16xf32>
    %83 = arith.subf %82, %76 : vector<8x16xf32>
    %84 = arith.mulf %83, %81 : vector<8x16xf32>
    %85 = arith.mulf %76, %48 : vector<8x16xf32>
    %86 = arith.addf %84, %85 : vector<8x16xf32>
    %c12_i32 = arith.constant 12 : i32
    %87 = arith.addi %c12_i32, %49 : i32
    %88 = arith.index_cast %87 : i32 to index
    %c0_61 = arith.constant 0 : index
    %c0_62 = arith.constant 0 : index
    %89 = vector.load %arg12[%88, %c0_61, %c0_62] : memref<24x8x16xf32, #tpu.memory_space<vmem>>, vector<1x8x16xf32>
    %90 = vector.shape_cast %89 : vector<1x8x16xf32> to vector<8x16xf32>
    %c16_i32 = arith.constant 16 : i32
    %91 = arith.addi %c16_i32, %49 : i32
    %92 = arith.index_cast %91 : i32 to index
    %c0_63 = arith.constant 0 : index
    %c0_64 = arith.constant 0 : index
    %93 = vector.load %arg12[%92, %c0_63, %c0_64] : memref<24x8x16xf32, #tpu.memory_space<vmem>>, vector<1x8x16xf32>
    %94 = vector.shape_cast %93 : vector<1x8x16xf32> to vector<8x16xf32>
    %c20_i32 = arith.constant 20 : i32
    %95 = arith.addi %c20_i32, %49 : i32
    %96 = arith.index_cast %95 : i32 to index
    %c0_65 = arith.constant 0 : index
    %c0_66 = arith.constant 0 : index
    %97 = vector.load %arg12[%96, %c0_65, %c0_66] : memref<24x8x16xf32, #tpu.memory_space<vmem>>, vector<1x8x16xf32>
    %98 = vector.shape_cast %97 : vector<1x8x16xf32> to vector<8x16xf32>
    %99 = arith.truncf %48 : vector<8x16xf32> to vector<8x16xbf16>
    %cst_67 = arith.constant dense<0.000000e+00> : vector<8x16xf32>
    %100 = tpu.matmul %99, %33, %cst_67 {dimension_numbers = #tpu.dot_dimension_numbers<[1], [0], [0], [1], [0, 0, 1, 1], [], []>} : vector<8x16xbf16>, vector<16x16xbf16>, vector<8x16xf32> -> vector<8x16xf32>
    %101 = arith.addf %90, %100 : vector<8x16xf32>
    %102 = arith.negf %101 : vector<8x16xf32>
    %103 = math.exp %102 : vector<8x16xf32>
    %cst_68 = arith.constant 1.000000e+00 : f32
    %104 = vector.broadcast %cst_68 : f32 to vector<8x16xf32>
    %105 = arith.addf %104, %103 : vector<8x16xf32>
    %106 = arith.divf %104, %105 : vector<8x16xf32>
    %cst_69 = arith.constant dense<0.000000e+00> : vector<8x16xf32>
    %107 = tpu.matmul %99, %36, %cst_69 {dimension_numbers = #tpu.dot_dimension_numbers<[1], [0], [0], [1], [0, 0, 1, 1], [], []>} : vector<8x16xbf16>, vector<16x16xbf16>, vector<8x16xf32> -> vector<8x16xf32>
    %108 = arith.addf %94, %107 : vector<8x16xf32>
    %109 = arith.negf %108 : vector<8x16xf32>
    %110 = math.exp %109 : vector<8x16xf32>
    %cst_70 = arith.constant 1.000000e+00 : f32
    %111 = vector.broadcast %cst_70 : f32 to vector<8x16xf32>
    %112 = arith.addf %111, %110 : vector<8x16xf32>
    %113 = arith.divf %111, %112 : vector<8x16xf32>
    %cst_71 = arith.constant dense<0.000000e+00> : vector<8x16xf32>
    %114 = tpu.matmul %99, %39, %cst_71 {dimension_numbers = #tpu.dot_dimension_numbers<[1], [0], [0], [1], [0, 0, 1, 1], [], []>} : vector<8x16xbf16>, vector<16x16xbf16>, vector<8x16xf32> -> vector<8x16xf32>
    %115 = arith.addf %114, %47 : vector<8x16xf32>
    %116 = arith.mulf %106, %115 : vector<8x16xf32>
    %117 = arith.addf %98, %116 : vector<8x16xf32>
    %118 = math.tanh %117 : vector<8x16xf32>
    %cst_72 = arith.constant 1.000000e+00 : f32
    %119 = vector.broadcast %cst_72 : f32 to vector<8x16xf32>
    %120 = arith.subf %119, %113 : vector<8x16xf32>
    %121 = arith.mulf %120, %118 : vector<8x16xf32>
    %122 = arith.mulf %113, %48 : vector<8x16xf32>
    %123 = arith.addf %121, %122 : vector<8x16xf32>
    %124 = arith.index_cast %c0_i32 : i32 to index
    %c0_73 = arith.constant 0 : index
    %c0_74 = arith.constant 0 : index
    %125 = vector.load %arg13[%124, %c0_73, %c0_74] : memref<4x8x16xf32, #tpu.memory_space<vmem>>, vector<1x8x16xf32>
    %126 = vector.shape_cast %125 : vector<1x8x16xf32> to vector<8x16xf32>
    %127 = vector.shape_cast %86 : vector<8x16xf32> to vector<1x8x16xf32>
    tpu.vector_store %arg13[%124, %c0_73, %c0_74], %127 {strides = array<i32>} : memref<4x8x16xf32, #tpu.memory_space<vmem>>, vector<1x8x16xf32>,
    %128 = arith.index_cast %49 : i32 to index
    %c0_75 = arith.constant 0 : index
    %c0_76 = arith.constant 0 : index
    %129 = vector.load %arg14[%128, %c0_75, %c0_76] : memref<4x8x16xf32, #tpu.memory_space<vmem>>, vector<1x8x16xf32>
    %130 = vector.shape_cast %129 : vector<1x8x16xf32> to vector<8x16xf32>
    %131 = vector.shape_cast %123 : vector<8x16xf32> to vector<1x8x16xf32>
    tpu.vector_store %arg14[%128, %c0_75, %c0_76], %131 {strides = array<i32>} : memref<4x8x16xf32, #tpu.memory_space<vmem>>, vector<1x8x16xf32>,
    %c1_i32 = arith.constant 1 : i32
    %c3_i32_77 = arith.constant 3 : i32
    %132 = arith.subi %c3_i32_77, %c1_i32 : i32
    %c0_i32_78 = arith.constant 0 : i32
    %133 = arith.addi %c0_i32_78, %c1_i32 : i32
    %134 = arith.index_cast %133 : i32 to index
    %c0_79 = arith.constant 0 : index
    %c0_80 = arith.constant 0 : index
    %135 = vector.load %arg12[%134, %c0_79, %c0_80] : memref<24x8x16xf32, #tpu.memory_space<vmem>>, vector<1x8x16xf32>
    %136 = vector.shape_cast %135 : vector<1x8x16xf32> to vector<8x16xf32>
    %c4_i32_81 = arith.constant 4 : i32
    %137 = arith.addi %c4_i32_81, %c1_i32 : i32
    %138 = arith.index_cast %137 : i32 to index
    %c0_82 = arith.constant 0 : index
    %c0_83 = arith.constant 0 : index
    %139 = vector.load %arg12[%138, %c0_82, %c0_83] : memref<24x8x16xf32, #tpu.memory_space<vmem>>, vector<1x8x16xf32>
    %140 = vector.shape_cast %139 : vector<1x8x16xf32> to vector<8x16xf32>
    %c8_i32_84 = arith.constant 8 : i32
    %141 = arith.addi %c8_i32_84, %c1_i32 : i32
    %142 = arith.index_cast %141 : i32 to index
    %c0_85 = arith.constant 0 : index
    %c0_86 = arith.constant 0 : index
    %143 = vector.load %arg12[%142, %c0_85, %c0_86] : memref<24x8x16xf32, #tpu.memory_space<vmem>>, vector<1x8x16xf32>
    %144 = vector.shape_cast %143 : vector<1x8x16xf32> to vector<8x16xf32>
    %145 = arith.truncf %86 : vector<8x16xf32> to vector<8x16xbf16>
    %cst_87 = arith.constant dense<0.000000e+00> : vector<8x16xf32>
    %146 = tpu.matmul %145, %24, %cst_87 {dimension_numbers = #tpu.dot_dimension_numbers<[1], [0], [0], [1], [0, 0, 1, 1], [], []>} : vector<8x16xbf16>, vector<16x16xbf16>, vector<8x16xf32> -> vector<8x16xf32>
    %147 = arith.addf %136, %146 : vector<8x16xf32>
    %148 = arith.negf %147 : vector<8x16xf32>
    %149 = math.exp %148 : vector<8x16xf32>
    %cst_88 = arith.constant 1.000000e+00 : f32
    %150 = vector.broadcast %cst_88 : f32 to vector<8x16xf32>
    %151 = arith.addf %150, %149 : vector<8x16xf32>
    %152 = arith.divf %150, %151 : vector<8x16xf32>
    %cst_89 = arith.constant dense<0.000000e+00> : vector<8x16xf32>
    %153 = tpu.matmul %145, %27, %cst_89 {dimension_numbers = #tpu.dot_dimension_numbers<[1], [0], [0], [1], [0, 0, 1, 1], [], []>} : vector<8x16xbf16>, vector<16x16xbf16>, vector<8x16xf32> -> vector<8x16xf32>
    %154 = arith.addf %140, %153 : vector<8x16xf32>
    %155 = arith.negf %154 : vector<8x16xf32>
    %156 = math.exp %155 : vector<8x16xf32>
    %cst_90 = arith.constant 1.000000e+00 : f32
    %157 = vector.broadcast %cst_90 : f32 to vector<8x16xf32>
    %158 = arith.addf %157, %156 : vector<8x16xf32>
    %159 = arith.divf %157, %158 : vector<8x16xf32>
    %cst_91 = arith.constant dense<0.000000e+00> : vector<8x16xf32>
    %160 = tpu.matmul %145, %30, %cst_91 {dimension_numbers = #tpu.dot_dimension_numbers<[1], [0], [0], [1], [0, 0, 1, 1], [], []>} : vector<8x16xbf16>, vector<16x16xbf16>, vector<8x16xf32> -> vector<8x16xf32>
    %161 = arith.addf %160, %43 : vector<8x16xf32>
    %162 = arith.mulf %152, %161 : vector<8x16xf32>
    %163 = arith.addf %144, %162 : vector<8x16xf32>
    %164 = math.tanh %163 : vector<8x16xf32>
    %cst_92 = arith.constant 1.000000e+00 : f32
    %165 = vector.broadcast %cst_92 : f32 to vector<8x16xf32>
    %166 = arith.subf %165, %159 : vector<8x16xf32>
    %167 = arith.mulf %166, %164 : vector<8x16xf32>
    %168 = arith.mulf %159, %86 : vector<8x16xf32>
    %169 = arith.addf %167, %168 : vector<8x16xf32>
    %c12_i32_93 = arith.constant 12 : i32
    %170 = arith.addi %c12_i32_93, %132 : i32
    %171 = arith.index_cast %170 : i32 to index
    %c0_94 = arith.constant 0 : index
    %c0_95 = arith.constant 0 : index
    %172 = vector.load %arg12[%171, %c0_94, %c0_95] : memref<24x8x16xf32, #tpu.memory_space<vmem>>, vector<1x8x16xf32>
    %173 = vector.shape_cast %172 : vector<1x8x16xf32> to vector<8x16xf32>
    %c16_i32_96 = arith.constant 16 : i32
    %174 = arith.addi %c16_i32_96, %132 : i32
    %175 = arith.index_cast %174 : i32 to index
    %c0_97 = arith.constant 0 : index
    %c0_98 = arith.constant 0 : index
    %176 = vector.load %arg12[%175, %c0_97, %c0_98] : memref<24x8x16xf32, #tpu.memory_space<vmem>>, vector<1x8x16xf32>
    %177 = vector.shape_cast %176 : vector<1x8x16xf32> to vector<8x16xf32>
    %c20_i32_99 = arith.constant 20 : i32
    %178 = arith.addi %c20_i32_99, %132 : i32
    %179 = arith.index_cast %178 : i32 to index
    %c0_100 = arith.constant 0 : index
    %c0_101 = arith.constant 0 : index
    %180 = vector.load %arg12[%179, %c0_100, %c0_101] : memref<24x8x16xf32, #tpu.memory_space<vmem>>, vector<1x8x16xf32>
    %181 = vector.shape_cast %180 : vector<1x8x16xf32> to vector<8x16xf32>
    %182 = arith.truncf %123 : vector<8x16xf32> to vector<8x16xbf16>
    %cst_102 = arith.constant dense<0.000000e+00> : vector<8x16xf32>
    %183 = tpu.matmul %182, %33, %cst_102 {dimension_numbers = #tpu.dot_dimension_numbers<[1], [0], [0], [1], [0, 0, 1, 1], [], []>} : vector<8x16xbf16>, vector<16x16xbf16>, vector<8x16xf32> -> vector<8x16xf32>
    %184 = arith.addf %173, %183 : vector<8x16xf32>
    %185 = arith.negf %184 : vector<8x16xf32>
    %186 = math.exp %185 : vector<8x16xf32>
    %cst_103 = arith.constant 1.000000e+00 : f32
    %187 = vector.broadcast %cst_103 : f32 to vector<8x16xf32>
    %188 = arith.addf %187, %186 : vector<8x16xf32>
    %189 = arith.divf %187, %188 : vector<8x16xf32>
    %cst_104 = arith.constant dense<0.000000e+00> : vector<8x16xf32>
    %190 = tpu.matmul %182, %36, %cst_104 {dimension_numbers = #tpu.dot_dimension_numbers<[1], [0], [0], [1], [0, 0, 1, 1], [], []>} : vector<8x16xbf16>, vector<16x16xbf16>, vector<8x16xf32> -> vector<8x16xf32>
    %191 = arith.addf %177, %190 : vector<8x16xf32>
    %192 = arith.negf %191 : vector<8x16xf32>
    %193 = math.exp %192 : vector<8x16xf32>
    %cst_105 = arith.constant 1.000000e+00 : f32
    %194 = vector.broadcast %cst_105 : f32 to vector<8x16xf32>
    %195 = arith.addf %194, %193 : vector<8x16xf32>
    %196 = arith.divf %194, %195 : vector<8x16xf32>
    %cst_106 = arith.constant dense<0.000000e+00> : vector<8x16xf32>
    %197 = tpu.matmul %182, %39, %cst_106 {dimension_numbers = #tpu.dot_dimension_numbers<[1], [0], [0], [1], [0, 0, 1, 1], [], []>} : vector<8x16xbf16>, vector<16x16xbf16>, vector<8x16xf32> -> vector<8x16xf32>
    %198 = arith.addf %197, %47 : vector<8x16xf32>
    %199 = arith.mulf %189, %198 : vector<8x16xf32>
    %200 = arith.addf %181, %199 : vector<8x16xf32>
    %201 = math.tanh %200 : vector<8x16xf32>
    %cst_107 = arith.constant 1.000000e+00 : f32
    %202 = vector.broadcast %cst_107 : f32 to vector<8x16xf32>
    %203 = arith.subf %202, %196 : vector<8x16xf32>
    %204 = arith.mulf %203, %201 : vector<8x16xf32>
    %205 = arith.mulf %196, %123 : vector<8x16xf32>
    %206 = arith.addf %204, %205 : vector<8x16xf32>
    %207 = arith.index_cast %c1_i32 : i32 to index
    %c0_108 = arith.constant 0 : index
    %c0_109 = arith.constant 0 : index
    %208 = vector.load %arg13[%207, %c0_108, %c0_109] : memref<4x8x16xf32, #tpu.memory_space<vmem>>, vector<1x8x16xf32>
    %209 = vector.shape_cast %208 : vector<1x8x16xf32> to vector<8x16xf32>
    %210 = vector.shape_cast %169 : vector<8x16xf32> to vector<1x8x16xf32>
    tpu.vector_store %arg13[%207, %c0_108, %c0_109], %210 {strides = array<i32>} : memref<4x8x16xf32, #tpu.memory_space<vmem>>, vector<1x8x16xf32>,
    %211 = arith.index_cast %132 : i32 to index
    %c0_110 = arith.constant 0 : index
    %c0_111 = arith.constant 0 : index
    %212 = vector.load %arg14[%211, %c0_110, %c0_111] : memref<4x8x16xf32, #tpu.memory_space<vmem>>, vector<1x8x16xf32>
    %213 = vector.shape_cast %212 : vector<1x8x16xf32> to vector<8x16xf32>
    %214 = vector.shape_cast %206 : vector<8x16xf32> to vector<1x8x16xf32>
    tpu.vector_store %arg14[%211, %c0_110, %c0_111], %214 {strides = array<i32>} : memref<4x8x16xf32, #tpu.memory_space<vmem>>, vector<1x8x16xf32>,
    %c2_i32 = arith.constant 2 : i32
    %c3_i32_112 = arith.constant 3 : i32
    %215 = arith.subi %c3_i32_112, %c2_i32 : i32
    %c0_i32_113 = arith.constant 0 : i32
    %216 = arith.addi %c0_i32_113, %c2_i32 : i32
    %217 = arith.index_cast %216 : i32 to index
    %c0_114 = arith.constant 0 : index
    %c0_115 = arith.constant 0 : index
    %218 = vector.load %arg12[%217, %c0_114, %c0_115] : memref<24x8x16xf32, #tpu.memory_space<vmem>>, vector<1x8x16xf32>
    %219 = vector.shape_cast %218 : vector<1x8x16xf32> to vector<8x16xf32>
    %c4_i32_116 = arith.constant 4 : i32
    %220 = arith.addi %c4_i32_116, %c2_i32 : i32
    %221 = arith.index_cast %220 : i32 to index
    %c0_117 = arith.constant 0 : index
    %c0_118 = arith.constant 0 : index
    %222 = vector.load %arg12[%221, %c0_117, %c0_118] : memref<24x8x16xf32, #tpu.memory_space<vmem>>, vector<1x8x16xf32>
    %223 = vector.shape_cast %222 : vector<1x8x16xf32> to vector<8x16xf32>
    %c8_i32_119 = arith.constant 8 : i32
    %224 = arith.addi %c8_i32_119, %c2_i32 : i32
    %225 = arith.index_cast %224 : i32 to index
    %c0_120 = arith.constant 0 : index
    %c0_121 = arith.constant 0 : index
    %226 = vector.load %arg12[%225, %c0_120, %c0_121] : memref<24x8x16xf32, #tpu.memory_space<vmem>>, vector<1x8x16xf32>
    %227 = vector.shape_cast %226 : vector<1x8x16xf32> to vector<8x16xf32>
    %228 = arith.truncf %169 : vector<8x16xf32> to vector<8x16xbf16>
    %cst_122 = arith.constant dense<0.000000e+00> : vector<8x16xf32>
    %229 = tpu.matmul %228, %24, %cst_122 {dimension_numbers = #tpu.dot_dimension_numbers<[1], [0], [0], [1], [0, 0, 1, 1], [], []>} : vector<8x16xbf16>, vector<16x16xbf16>, vector<8x16xf32> -> vector<8x16xf32>
    %230 = arith.addf %219, %229 : vector<8x16xf32>
    %231 = arith.negf %230 : vector<8x16xf32>
    %232 = math.exp %231 : vector<8x16xf32>
    %cst_123 = arith.constant 1.000000e+00 : f32
    %233 = vector.broadcast %cst_123 : f32 to vector<8x16xf32>
    %234 = arith.addf %233, %232 : vector<8x16xf32>
    %235 = arith.divf %233, %234 : vector<8x16xf32>
    %cst_124 = arith.constant dense<0.000000e+00> : vector<8x16xf32>
    %236 = tpu.matmul %228, %27, %cst_124 {dimension_numbers = #tpu.dot_dimension_numbers<[1], [0], [0], [1], [0, 0, 1, 1], [], []>} : vector<8x16xbf16>, vector<16x16xbf16>, vector<8x16xf32> -> vector<8x16xf32>
    %237 = arith.addf %223, %236 : vector<8x16xf32>
    %238 = arith.negf %237 : vector<8x16xf32>
    %239 = math.exp %238 : vector<8x16xf32>
    %cst_125 = arith.constant 1.000000e+00 : f32
    %240 = vector.broadcast %cst_125 : f32 to vector<8x16xf32>
    %241 = arith.addf %240, %239 : vector<8x16xf32>
    %242 = arith.divf %240, %241 : vector<8x16xf32>
    %cst_126 = arith.constant dense<0.000000e+00> : vector<8x16xf32>
    %243 = tpu.matmul %228, %30, %cst_126 {dimension_numbers = #tpu.dot_dimension_numbers<[1], [0], [0], [1], [0, 0, 1, 1], [], []>} : vector<8x16xbf16>, vector<16x16xbf16>, vector<8x16xf32> -> vector<8x16xf32>
    %244 = arith.addf %243, %43 : vector<8x16xf32>
    %245 = arith.mulf %235, %244 : vector<8x16xf32>
    %246 = arith.addf %227, %245 : vector<8x16xf32>
    %247 = math.tanh %246 : vector<8x16xf32>
    %cst_127 = arith.constant 1.000000e+00 : f32
    %248 = vector.broadcast %cst_127 : f32 to vector<8x16xf32>
    %249 = arith.subf %248, %242 : vector<8x16xf32>
    %250 = arith.mulf %249, %247 : vector<8x16xf32>
    %251 = arith.mulf %242, %169 : vector<8x16xf32>
    %252 = arith.addf %250, %251 : vector<8x16xf32>
    %c12_i32_128 = arith.constant 12 : i32
    %253 = arith.addi %c12_i32_128, %215 : i32
    %254 = arith.index_cast %253 : i32 to index
    %c0_129 = arith.constant 0 : index
    %c0_130 = arith.constant 0 : index
    %255 = vector.load %arg12[%254, %c0_129, %c0_130] : memref<24x8x16xf32, #tpu.memory_space<vmem>>, vector<1x8x16xf32>
    %256 = vector.shape_cast %255 : vector<1x8x16xf32> to vector<8x16xf32>
    %c16_i32_131 = arith.constant 16 : i32
    %257 = arith.addi %c16_i32_131, %215 : i32
    %258 = arith.index_cast %257 : i32 to index
    %c0_132 = arith.constant 0 : index
    %c0_133 = arith.constant 0 : index
    %259 = vector.load %arg12[%258, %c0_132, %c0_133] : memref<24x8x16xf32, #tpu.memory_space<vmem>>, vector<1x8x16xf32>
    %260 = vector.shape_cast %259 : vector<1x8x16xf32> to vector<8x16xf32>
    %c20_i32_134 = arith.constant 20 : i32
    %261 = arith.addi %c20_i32_134, %215 : i32
    %262 = arith.index_cast %261 : i32 to index
    %c0_135 = arith.constant 0 : index
    %c0_136 = arith.constant 0 : index
    %263 = vector.load %arg12[%262, %c0_135, %c0_136] : memref<24x8x16xf32, #tpu.memory_space<vmem>>, vector<1x8x16xf32>
    %264 = vector.shape_cast %263 : vector<1x8x16xf32> to vector<8x16xf32>
    %265 = arith.truncf %206 : vector<8x16xf32> to vector<8x16xbf16>
    %cst_137 = arith.constant dense<0.000000e+00> : vector<8x16xf32>
    %266 = tpu.matmul %265, %33, %cst_137 {dimension_numbers = #tpu.dot_dimension_numbers<[1], [0], [0], [1], [0, 0, 1, 1], [], []>} : vector<8x16xbf16>, vector<16x16xbf16>, vector<8x16xf32> -> vector<8x16xf32>
    %267 = arith.addf %256, %266 : vector<8x16xf32>
    %268 = arith.negf %267 : vector<8x16xf32>
    %269 = math.exp %268 : vector<8x16xf32>
    %cst_138 = arith.constant 1.000000e+00 : f32
    %270 = vector.broadcast %cst_138 : f32 to vector<8x16xf32>
    %271 = arith.addf %270, %269 : vector<8x16xf32>
    %272 = arith.divf %270, %271 : vector<8x16xf32>
    %cst_139 = arith.constant dense<0.000000e+00> : vector<8x16xf32>
    %273 = tpu.matmul %265, %36, %cst_139 {dimension_numbers = #tpu.dot_dimension_numbers<[1], [0], [0], [1], [0, 0, 1, 1], [], []>} : vector<8x16xbf16>, vector<16x16xbf16>, vector<8x16xf32> -> vector<8x16xf32>
    %274 = arith.addf %260, %273 : vector<8x16xf32>
    %275 = arith.negf %274 : vector<8x16xf32>
    %276 = math.exp %275 : vector<8x16xf32>
    %cst_140 = arith.constant 1.000000e+00 : f32
    %277 = vector.broadcast %cst_140 : f32 to vector<8x16xf32>
    %278 = arith.addf %277, %276 : vector<8x16xf32>
    %279 = arith.divf %277, %278 : vector<8x16xf32>
    %cst_141 = arith.constant dense<0.000000e+00> : vector<8x16xf32>
    %280 = tpu.matmul %265, %39, %cst_141 {dimension_numbers = #tpu.dot_dimension_numbers<[1], [0], [0], [1], [0, 0, 1, 1], [], []>} : vector<8x16xbf16>, vector<16x16xbf16>, vector<8x16xf32> -> vector<8x16xf32>
    %281 = arith.addf %280, %47 : vector<8x16xf32>
    %282 = arith.mulf %272, %281 : vector<8x16xf32>
    %283 = arith.addf %264, %282 : vector<8x16xf32>
    %284 = math.tanh %283 : vector<8x16xf32>
    %cst_142 = arith.constant 1.000000e+00 : f32
    %285 = vector.broadcast %cst_142 : f32 to vector<8x16xf32>
    %286 = arith.subf %285, %279 : vector<8x16xf32>
    %287 = arith.mulf %286, %284 : vector<8x16xf32>
    %288 = arith.mulf %279, %206 : vector<8x16xf32>
    %289 = arith.addf %287, %288 : vector<8x16xf32>
    %290 = arith.index_cast %c2_i32 : i32 to index
    %c0_143 = arith.constant 0 : index
    %c0_144 = arith.constant 0 : index
    %291 = vector.load %arg13[%290, %c0_143, %c0_144] : memref<4x8x16xf32, #tpu.memory_space<vmem>>, vector<1x8x16xf32>
    %292 = vector.shape_cast %291 : vector<1x8x16xf32> to vector<8x16xf32>
    %293 = vector.shape_cast %252 : vector<8x16xf32> to vector<1x8x16xf32>
    tpu.vector_store %arg13[%290, %c0_143, %c0_144], %293 {strides = array<i32>} : memref<4x8x16xf32, #tpu.memory_space<vmem>>, vector<1x8x16xf32>,
    %294 = arith.index_cast %215 : i32 to index
    %c0_145 = arith.constant 0 : index
    %c0_146 = arith.constant 0 : index
    %295 = vector.load %arg14[%294, %c0_145, %c0_146] : memref<4x8x16xf32, #tpu.memory_space<vmem>>, vector<1x8x16xf32>
    %296 = vector.shape_cast %295 : vector<1x8x16xf32> to vector<8x16xf32>
    %297 = vector.shape_cast %289 : vector<8x16xf32> to vector<1x8x16xf32>
    tpu.vector_store %arg14[%294, %c0_145, %c0_146], %297 {strides = array<i32>} : memref<4x8x16xf32, #tpu.memory_space<vmem>>, vector<1x8x16xf32>,
    %c3_i32_147 = arith.constant 3 : i32
    %c3_i32_148 = arith.constant 3 : i32
    %298 = arith.subi %c3_i32_148, %c3_i32_147 : i32
    %c0_i32_149 = arith.constant 0 : i32
    %299 = arith.addi %c0_i32_149, %c3_i32_147 : i32
    %300 = arith.index_cast %299 : i32 to index
    %c0_150 = arith.constant 0 : index
    %c0_151 = arith.constant 0 : index
    %301 = vector.load %arg12[%300, %c0_150, %c0_151] : memref<24x8x16xf32, #tpu.memory_space<vmem>>, vector<1x8x16xf32>
    %302 = vector.shape_cast %301 : vector<1x8x16xf32> to vector<8x16xf32>
    %c4_i32_152 = arith.constant 4 : i32
    %303 = arith.addi %c4_i32_152, %c3_i32_147 : i32
    %304 = arith.index_cast %303 : i32 to index
    %c0_153 = arith.constant 0 : index
    %c0_154 = arith.constant 0 : index
    %305 = vector.load %arg12[%304, %c0_153, %c0_154] : memref<24x8x16xf32, #tpu.memory_space<vmem>>, vector<1x8x16xf32>
    %306 = vector.shape_cast %305 : vector<1x8x16xf32> to vector<8x16xf32>
    %c8_i32_155 = arith.constant 8 : i32
    %307 = arith.addi %c8_i32_155, %c3_i32_147 : i32
    %308 = arith.index_cast %307 : i32 to index
    %c0_156 = arith.constant 0 : index
    %c0_157 = arith.constant 0 : index
    %309 = vector.load %arg12[%308, %c0_156, %c0_157] : memref<24x8x16xf32, #tpu.memory_space<vmem>>, vector<1x8x16xf32>
    %310 = vector.shape_cast %309 : vector<1x8x16xf32> to vector<8x16xf32>
    %311 = arith.truncf %252 : vector<8x16xf32> to vector<8x16xbf16>
    %cst_158 = arith.constant dense<0.000000e+00> : vector<8x16xf32>
    %312 = tpu.matmul %311, %24, %cst_158 {dimension_numbers = #tpu.dot_dimension_numbers<[1], [0], [0], [1], [0, 0, 1, 1], [], []>} : vector<8x16xbf16>, vector<16x16xbf16>, vector<8x16xf32> -> vector<8x16xf32>
    %313 = arith.addf %302, %312 : vector<8x16xf32>
    %314 = arith.negf %313 : vector<8x16xf32>
    %315 = math.exp %314 : vector<8x16xf32>
    %cst_159 = arith.constant 1.000000e+00 : f32
    %316 = vector.broadcast %cst_159 : f32 to vector<8x16xf32>
    %317 = arith.addf %316, %315 : vector<8x16xf32>
    %318 = arith.divf %316, %317 : vector<8x16xf32>
    %cst_160 = arith.constant dense<0.000000e+00> : vector<8x16xf32>
    %319 = tpu.matmul %311, %27, %cst_160 {dimension_numbers = #tpu.dot_dimension_numbers<[1], [0], [0], [1], [0, 0, 1, 1], [], []>} : vector<8x16xbf16>, vector<16x16xbf16>, vector<8x16xf32> -> vector<8x16xf32>
    %320 = arith.addf %306, %319 : vector<8x16xf32>
    %321 = arith.negf %320 : vector<8x16xf32>
    %322 = math.exp %321 : vector<8x16xf32>
    %cst_161 = arith.constant 1.000000e+00 : f32
    %323 = vector.broadcast %cst_161 : f32 to vector<8x16xf32>
    %324 = arith.addf %323, %322 : vector<8x16xf32>
    %325 = arith.divf %323, %324 : vector<8x16xf32>
    %cst_162 = arith.constant dense<0.000000e+00> : vector<8x16xf32>
    %326 = tpu.matmul %311, %30, %cst_162 {dimension_numbers = #tpu.dot_dimension_numbers<[1], [0], [0], [1], [0, 0, 1, 1], [], []>} : vector<8x16xbf16>, vector<16x16xbf16>, vector<8x16xf32> -> vector<8x16xf32>
    %327 = arith.addf %326, %43 : vector<8x16xf32>
    %328 = arith.mulf %318, %327 : vector<8x16xf32>
    %329 = arith.addf %310, %328 : vector<8x16xf32>
    %330 = math.tanh %329 : vector<8x16xf32>
    %cst_163 = arith.constant 1.000000e+00 : f32
    %331 = vector.broadcast %cst_163 : f32 to vector<8x16xf32>
    %332 = arith.subf %331, %325 : vector<8x16xf32>
    %333 = arith.mulf %332, %330 : vector<8x16xf32>
    %334 = arith.mulf %325, %252 : vector<8x16xf32>
    %335 = arith.addf %333, %334 : vector<8x16xf32>
    %c12_i32_164 = arith.constant 12 : i32
    %336 = arith.addi %c12_i32_164, %298 : i32
    %337 = arith.index_cast %336 : i32 to index
    %c0_165 = arith.constant 0 : index
    %c0_166 = arith.constant 0 : index
    %338 = vector.load %arg12[%337, %c0_165, %c0_166] : memref<24x8x16xf32, #tpu.memory_space<vmem>>, vector<1x8x16xf32>
    %339 = vector.shape_cast %338 : vector<1x8x16xf32> to vector<8x16xf32>
    %c16_i32_167 = arith.constant 16 : i32
    %340 = arith.addi %c16_i32_167, %298 : i32
    %341 = arith.index_cast %340 : i32 to index
    %c0_168 = arith.constant 0 : index
    %c0_169 = arith.constant 0 : index
    %342 = vector.load %arg12[%341, %c0_168, %c0_169] : memref<24x8x16xf32, #tpu.memory_space<vmem>>, vector<1x8x16xf32>
    %343 = vector.shape_cast %342 : vector<1x8x16xf32> to vector<8x16xf32>
    %c20_i32_170 = arith.constant 20 : i32
    %344 = arith.addi %c20_i32_170, %298 : i32
    %345 = arith.index_cast %344 : i32 to index
    %c0_171 = arith.constant 0 : index
    %c0_172 = arith.constant 0 : index
    %346 = vector.load %arg12[%345, %c0_171, %c0_172] : memref<24x8x16xf32, #tpu.memory_space<vmem>>, vector<1x8x16xf32>
    %347 = vector.shape_cast %346 : vector<1x8x16xf32> to vector<8x16xf32>
    %348 = arith.truncf %289 : vector<8x16xf32> to vector<8x16xbf16>
    %cst_173 = arith.constant dense<0.000000e+00> : vector<8x16xf32>
    %349 = tpu.matmul %348, %33, %cst_173 {dimension_numbers = #tpu.dot_dimension_numbers<[1], [0], [0], [1], [0, 0, 1, 1], [], []>} : vector<8x16xbf16>, vector<16x16xbf16>, vector<8x16xf32> -> vector<8x16xf32>
    %350 = arith.addf %339, %349 : vector<8x16xf32>
    %351 = arith.negf %350 : vector<8x16xf32>
    %352 = math.exp %351 : vector<8x16xf32>
    %cst_174 = arith.constant 1.000000e+00 : f32
    %353 = vector.broadcast %cst_174 : f32 to vector<8x16xf32>
    %354 = arith.addf %353, %352 : vector<8x16xf32>
    %355 = arith.divf %353, %354 : vector<8x16xf32>
    %cst_175 = arith.constant dense<0.000000e+00> : vector<8x16xf32>
    %356 = tpu.matmul %348, %36, %cst_175 {dimension_numbers = #tpu.dot_dimension_numbers<[1], [0], [0], [1], [0, 0, 1, 1], [], []>} : vector<8x16xbf16>, vector<16x16xbf16>, vector<8x16xf32> -> vector<8x16xf32>
    %357 = arith.addf %343, %356 : vector<8x16xf32>
    %358 = arith.negf %357 : vector<8x16xf32>
    %359 = math.exp %358 : vector<8x16xf32>
    %cst_176 = arith.constant 1.000000e+00 : f32
    %360 = vector.broadcast %cst_176 : f32 to vector<8x16xf32>
    %361 = arith.addf %360, %359 : vector<8x16xf32>
    %362 = arith.divf %360, %361 : vector<8x16xf32>
    %cst_177 = arith.constant dense<0.000000e+00> : vector<8x16xf32>
    %363 = tpu.matmul %348, %39, %cst_177 {dimension_numbers = #tpu.dot_dimension_numbers<[1], [0], [0], [1], [0, 0, 1, 1], [], []>} : vector<8x16xbf16>, vector<16x16xbf16>, vector<8x16xf32> -> vector<8x16xf32>
    %364 = arith.addf %363, %47 : vector<8x16xf32>
    %365 = arith.mulf %355, %364 : vector<8x16xf32>
    %366 = arith.addf %347, %365 : vector<8x16xf32>
    %367 = math.tanh %366 : vector<8x16xf32>
    %cst_178 = arith.constant 1.000000e+00 : f32
    %368 = vector.broadcast %cst_178 : f32 to vector<8x16xf32>
    %369 = arith.subf %368, %362 : vector<8x16xf32>
    %370 = arith.mulf %369, %367 : vector<8x16xf32>
    %371 = arith.mulf %362, %289 : vector<8x16xf32>
    %372 = arith.addf %370, %371 : vector<8x16xf32>
    %373 = arith.index_cast %c3_i32_147 : i32 to index
    %c0_179 = arith.constant 0 : index
    %c0_180 = arith.constant 0 : index
    %374 = vector.load %arg13[%373, %c0_179, %c0_180] : memref<4x8x16xf32, #tpu.memory_space<vmem>>, vector<1x8x16xf32>
    %375 = vector.shape_cast %374 : vector<1x8x16xf32> to vector<8x16xf32>
    %376 = vector.shape_cast %335 : vector<8x16xf32> to vector<1x8x16xf32>
    tpu.vector_store %arg13[%373, %c0_179, %c0_180], %376 {strides = array<i32>} : memref<4x8x16xf32, #tpu.memory_space<vmem>>, vector<1x8x16xf32>,
    %377 = arith.index_cast %298 : i32 to index
    %c0_181 = arith.constant 0 : index
    %c0_182 = arith.constant 0 : index
    %378 = vector.load %arg14[%377, %c0_181, %c0_182] : memref<4x8x16xf32, #tpu.memory_space<vmem>>, vector<1x8x16xf32>
    %379 = vector.shape_cast %378 : vector<1x8x16xf32> to vector<8x16xf32>
    %380 = vector.shape_cast %372 : vector<8x16xf32> to vector<1x8x16xf32>
    tpu.vector_store %arg14[%377, %c0_181, %c0_182], %380 {strides = array<i32>} : memref<4x8x16xf32, #tpu.memory_space<vmem>>, vector<1x8x16xf32>,
    %c4_i32_183 = arith.constant 4 : i32
    %c0_184 = arith.constant 0 : index
    %c0_185 = arith.constant 0 : index
    %c0_186 = arith.constant 0 : index
    %381 = vector.load %arg13[%c0_184, %c0_185, %c0_186] : memref<4x8x16xf32, #tpu.memory_space<vmem>>, vector<4x8x16xf32>
    %c0_187 = arith.constant 0 : index
    %c0_188 = arith.constant 0 : index
    %c0_189 = arith.constant 0 : index
    %382 = vector.load %arg14[%c0_187, %c0_188, %c0_189] : memref<4x8x16xf32, #tpu.memory_space<vmem>>, vector<4x8x16xf32>
    %c0_190 = arith.constant 0 : index
    %c0_191 = arith.constant 0 : index
    %383 = vector.load %arg6[%c0_190, %c0_191] : memref<32x32xf32, #tpu.memory_space<vmem>>, vector<32x32xf32>
    %384 = arith.truncf %383 : vector<32x32xf32> to vector<32x32xbf16>
    %385 = vector.shape_cast %381 : vector<4x8x16xf32> to vector<32x16xf32>
    %386 = arith.truncf %385 : vector<32x16xf32> to vector<32x16xbf16>
    %387 = vector.extract_strided_slice %384 {offsets = [0, 0], sizes = [16, 32], strides = [1, 1]} : vector<32x32xbf16> to vector<16x32xbf16>
    %cst_192 = arith.constant dense<0.000000e+00> : vector<32x32xf32>
    %388 = tpu.matmul %386, %387, %cst_192 {dimension_numbers = #tpu.dot_dimension_numbers<[1], [0], [0], [1], [0, 0, 1, 1], [], []>} : vector<32x16xbf16>, vector<16x32xbf16>, vector<32x32xf32> -> vector<32x32xf32>
    %389 = vector.shape_cast %382 : vector<4x8x16xf32> to vector<32x16xf32>
    %390 = arith.truncf %389 : vector<32x16xf32> to vector<32x16xbf16>
    %391 = vector.extract_strided_slice %384 {offsets = [16, 0], sizes = [16, 32], strides = [1, 1]} : vector<32x32xbf16> to vector<16x32xbf16>
    %cst_193 = arith.constant dense<0.000000e+00> : vector<32x32xf32>
    %392 = tpu.matmul %390, %391, %cst_193 {dimension_numbers = #tpu.dot_dimension_numbers<[1], [0], [0], [1], [0, 0, 1, 1], [], []>} : vector<32x16xbf16>, vector<16x32xbf16>, vector<32x32xf32> -> vector<32x32xf32>
    %393 = arith.addf %388, %392 : vector<32x32xf32>
    %c0_194 = arith.constant 0 : index
    %c0_195 = arith.constant 0 : index
    %394 = vector.load %arg7[%c0_194, %c0_195] : memref<1x32xf32, #tpu.memory_space<vmem>>, vector<1x32xf32>
    %395 = vector.broadcast %394 : vector<1x32xf32> to vector<32x32xf32>
    %396 = arith.addf %393, %395 : vector<32x32xf32>
    %397 = math.tanh %396 : vector<32x32xf32>
    %398 = vector.shape_cast %397 : vector<32x32xf32> to vector<4x8x32xf32>
    %c0_196 = arith.constant 0 : index
    %c0_197 = arith.constant 0 : index
    %399 = vector.load %arg8[%c0_196, %c0_197] : memref<1x32xf32, #tpu.memory_space<vmem>>, vector<1x32xf32>
    %400 = vector.shape_cast %399 : vector<1x32xf32> to vector<1x1x32xf32>
    %401 = vector.broadcast %400 : vector<1x1x32xf32> to vector<4x8x32xf32>
    %402 = arith.mulf %398, %401 : vector<4x8x32xf32>
    %cst_198 = arith.constant dense<0.000000e+00> : vector<4x8xf32>
    %403 = vector.multi_reduction <add>, %402, %cst_198 [2] : vector<4x8x32xf32> to vector<4x8xf32>
    %404 = vector.shape_cast %403 : vector<4x8xf32> to vector<4x8x1xf32>
    %405 = math.tanh %404 : vector<4x8x1xf32>
    %cst_199 = arith.constant dense<0xFF800000> : vector<8x1xf32>
    %406 = vector.multi_reduction <maximumf>, %405, %cst_199 [0] : vector<4x8x1xf32> to vector<8x1xf32>
    %407 = vector.shape_cast %406 : vector<8x1xf32> to vector<1x8x1xf32>
    %408 = vector.broadcast %407 : vector<1x8x1xf32> to vector<4x8x1xf32>
    %409 = arith.subf %405, %408 : vector<4x8x1xf32>
    %410 = math.exp %409 : vector<4x8x1xf32>
    %cst_200 = arith.constant dense<0.000000e+00> : vector<8x1xf32>
    %411 = vector.multi_reduction <add>, %410, %cst_200 [0] : vector<4x8x1xf32> to vector<8x1xf32>
    %412 = vector.shape_cast %411 : vector<8x1xf32> to vector<1x8x1xf32>
    %413 = vector.broadcast %412 : vector<1x8x1xf32> to vector<4x8x1xf32>
    %414 = arith.divf %410, %413 : vector<4x8x1xf32>
    %415 = vector.broadcast %414 : vector<4x8x1xf32> to vector<4x8x16xf32>
    %416 = arith.mulf %381, %415 : vector<4x8x16xf32>
    %cst_201 = arith.constant dense<0.000000e+00> : vector<8x16xf32>
    %417 = vector.multi_reduction <add>, %416, %cst_201 [0] : vector<4x8x16xf32> to vector<8x16xf32>
    %418 = vector.broadcast %414 : vector<4x8x1xf32> to vector<4x8x16xf32>
    %419 = arith.mulf %382, %418 : vector<4x8x16xf32>
    %cst_202 = arith.constant dense<0.000000e+00> : vector<8x16xf32>
    %420 = vector.multi_reduction <add>, %419, %cst_202 [0] : vector<4x8x16xf32> to vector<8x16xf32>
    %c0_203 = arith.constant 0 : index
    %c0_204 = arith.constant 0 : index
    %421 = vector.load %arg9[%c0_203, %c0_204] : memref<32x5xf32, #tpu.memory_space<vmem>>, vector<32x5xf32>
    %422 = arith.truncf %421 : vector<32x5xf32> to vector<32x5xbf16>
    %423 = arith.truncf %417 : vector<8x16xf32> to vector<8x16xbf16>
    %424 = vector.extract_strided_slice %422 {offsets = [0, 0], sizes = [16, 5], strides = [1, 1]} : vector<32x5xbf16> to vector<16x5xbf16>
    %cst_205 = arith.constant dense<0.000000e+00> : vector<8x5xf32>
    %425 = tpu.matmul %423, %424, %cst_205 {dimension_numbers = #tpu.dot_dimension_numbers<[1], [0], [0], [1], [0, 0, 1, 1], [], []>} : vector<8x16xbf16>, vector<16x5xbf16>, vector<8x5xf32> -> vector<8x5xf32>
    %426 = arith.truncf %420 : vector<8x16xf32> to vector<8x16xbf16>
    %427 = vector.extract_strided_slice %422 {offsets = [16, 0], sizes = [16, 5], strides = [1, 1]} : vector<32x5xbf16> to vector<16x5xbf16>
    %cst_206 = arith.constant dense<0.000000e+00> : vector<8x5xf32>
    %428 = tpu.matmul %426, %427, %cst_206 {dimension_numbers = #tpu.dot_dimension_numbers<[1], [0], [0], [1], [0, 0, 1, 1], [], []>} : vector<8x16xbf16>, vector<16x5xbf16>, vector<8x5xf32> -> vector<8x5xf32>
    %429 = arith.addf %425, %428 : vector<8x5xf32>
    %c0_207 = arith.constant 0 : index
    %c0_208 = arith.constant 0 : index
    %430 = vector.load %arg10[%c0_207, %c0_208] : memref<1x5xf32, #tpu.memory_space<vmem>>, vector<1x5xf32>
    %431 = vector.broadcast %430 : vector<1x5xf32> to vector<8x5xf32>
    %432 = arith.addf %429, %431 : vector<8x5xf32>
    %c0_209 = arith.constant 0 : index
    %c0_210 = arith.constant 0 : index
    %433 = vector.load %arg11[%c0_209, %c0_210] : memref<8x5xf32, #tpu.memory_space<vmem>>, vector<8x5xf32>
    tpu.vector_store %arg11[%c0_209, %c0_210], %432 {strides = array<i32>} : memref<8x5xf32, #tpu.memory_space<vmem>>, vector<8x5xf32>,
    return
  }
  func.func @transform_0(%arg0: i32) -> (i32, i32, i32) {
    %c0_i32 = arith.constant 0 : i32
    %c0_i32_0 = arith.constant 0 : i32
    %c0_i32_1 = arith.constant 0 : i32
    return %c0_i32, %arg0, %c0_i32_0 : i32, i32, i32
  }
  func.func @transform_1(%arg0: i32) -> (i32, i32) {
    %c0_i32 = arith.constant 0 : i32
    %c0_i32_0 = arith.constant 0 : i32
    %c0_i32_1 = arith.constant 0 : i32
    return %c0_i32, %c0_i32_0 : i32, i32
  }
  func.func @transform_2(%arg0: i32) -> (i32, i32) {
    %c0_i32 = arith.constant 0 : i32
    %c0_i32_0 = arith.constant 0 : i32
    %c0_i32_1 = arith.constant 0 : i32
    return %c0_i32, %c0_i32_0 : i32, i32
  }
  func.func @transform_3(%arg0: i32) -> (i32, i32, i32, i32) {
    %c0_i32 = arith.constant 0 : i32
    %c0_i32_0 = arith.constant 0 : i32
    %c0_i32_1 = arith.constant 0 : i32
    %c0_i32_2 = arith.constant 0 : i32
    %c0_i32_3 = arith.constant 0 : i32
    return %c0_i32, %c0_i32_0, %c0_i32_1, %c0_i32_2 : i32, i32, i32, i32
  }
  func.func @transform_4(%arg0: i32) -> (i32, i32, i32) {
    %c0_i32 = arith.constant 0 : i32
    %c0_i32_0 = arith.constant 0 : i32
    %c0_i32_1 = arith.constant 0 : i32
    %c0_i32_2 = arith.constant 0 : i32
    return %c0_i32, %c0_i32_0, %c0_i32_1 : i32, i32, i32
  }
  func.func @transform_5(%arg0: i32) -> (i32, i32) {
    %c0_i32 = arith.constant 0 : i32
    %c0_i32_0 = arith.constant 0 : i32
    %c0_i32_1 = arith.constant 0 : i32
    return %c0_i32, %c0_i32_0 : i32, i32
  }
  func.func @transform_6(%arg0: i32) -> (i32, i32) {
    %c0_i32 = arith.constant 0 : i32
    %c0_i32_0 = arith.constant 0 : i32
    %c0_i32_1 = arith.constant 0 : i32
    return %c0_i32, %c0_i32_0 : i32, i32
  }
  func.func @transform_7(%arg0: i32) -> (i32, i32) {
    %c0_i32 = arith.constant 0 : i32
    %c0_i32_0 = arith.constant 0 : i32
    %c0_i32_1 = arith.constant 0 : i32
    return %c0_i32, %c0_i32_0 : i32, i32
  }
  func.func @transform_8(%arg0: i32) -> (i32, i32) {
    %c0_i32 = arith.constant 0 : i32
    %c0_i32_0 = arith.constant 0 : i32
    %c0_i32_1 = arith.constant 0 : i32
    return %c0_i32, %c0_i32_0 : i32, i32
  }
  func.func @transform_9(%arg0: i32) -> (i32, i32) {
    %c0_i32 = arith.constant 0 : i32
    %c0_i32_0 = arith.constant 0 : i32
    %c0_i32_1 = arith.constant 0 : i32
    return %c0_i32, %c0_i32_0 : i32, i32
  }
  func.func @transform_10(%arg0: i32) -> (i32, i32) {
    %c0_i32 = arith.constant 0 : i32
    %c0_i32_0 = arith.constant 0 : i32
    return %arg0, %c0_i32 : i32, i32
  }
}

module attributes {stable_mosaic.version = 11 : i64} {
  func.func @_han_encoder_kernel(%arg0: i32, %arg1: memref<8x8x32xf32, #tpu.memory_space<vmem>>, %arg2: memref<32x96xf32, #tpu.memory_space<vmem>>, %arg3: memref<1x96xf32, #tpu.memory_space<vmem>>, %arg4: memref<2x3x16x16xf32, #tpu.memory_space<vmem>>, %arg5: memref<2x1x16xf32, #tpu.memory_space<vmem>>, %arg6: memref<32x32xf32, #tpu.memory_space<vmem>>, %arg7: memref<1x32xf32, #tpu.memory_space<vmem>>, %arg8: memref<1x32xf32, #tpu.memory_space<vmem>>, %arg9: memref<8x32xf32, #tpu.memory_space<vmem>>, %arg10: memref<48x8x16xf32, #tpu.memory_space<vmem>>, %arg11: memref<8x8x16xf32, #tpu.memory_space<vmem>>, %arg12: memref<8x8x16xf32, #tpu.memory_space<vmem>>) attributes {dimension_semantics = [#tpu.dimension_semantics<parallel>], iteration_bounds = array<i64: 1>, scalar_prefetch = 0 : i64, scratch_operands = 3 : i64, tpu.core_type = #tpu.core_type<tc>, window_params = [{transform_indices = @transform_0, window_bounds = array<i64: 8, 8, 32>}, {pipeline_mode = #tpu.pipeline_mode<synchronous>, transform_indices = @transform_1, window_bounds = array<i64: 32, 96>}, {pipeline_mode = #tpu.pipeline_mode<synchronous>, transform_indices = @transform_2, window_bounds = array<i64: 1, 96>}, {pipeline_mode = #tpu.pipeline_mode<synchronous>, transform_indices = @transform_3, window_bounds = array<i64: 2, 3, 16, 16>}, {pipeline_mode = #tpu.pipeline_mode<synchronous>, transform_indices = @transform_4, window_bounds = array<i64: 2, 1, 16>}, {pipeline_mode = #tpu.pipeline_mode<synchronous>, transform_indices = @transform_5, window_bounds = array<i64: 32, 32>}, {pipeline_mode = #tpu.pipeline_mode<synchronous>, transform_indices = @transform_6, window_bounds = array<i64: 1, 32>}, {pipeline_mode = #tpu.pipeline_mode<synchronous>, transform_indices = @transform_7, window_bounds = array<i64: 1, 32>}, {transform_indices = @transform_8, window_bounds = array<i64: 8, 32>}]} {
    %c0 = arith.constant 0 : index
    %c0_0 = arith.constant 0 : index
    %c0_1 = arith.constant 0 : index
    %0 = vector.load %arg1[%c0, %c0_0, %c0_1] : memref<8x8x32xf32, #tpu.memory_space<vmem>>, vector<8x8x32xf32>
    %1 = vector.shape_cast %0 : vector<8x8x32xf32> to vector<64x32xf32>
    %2 = arith.truncf %1 : vector<64x32xf32> to vector<64x32xbf16>
    %c0_2 = arith.constant 0 : index
    %c0_3 = arith.constant 0 : index
    %3 = vector.load %arg2[%c0_2, %c0_3] : memref<32x96xf32, #tpu.memory_space<vmem>>, vector<32x96xf32>
    %4 = arith.truncf %3 : vector<32x96xf32> to vector<32x96xbf16>
    %cst = arith.constant dense<0.000000e+00> : vector<64x96xf32>
    %5 = tpu.matmul %2, %4, %cst {dimension_numbers = #tpu.dot_dimension_numbers<[1], [0], [0], [1], [0, 0, 1, 1], [], []>} : vector<64x32xbf16>, vector<32x96xbf16>, vector<64x96xf32> -> vector<64x96xf32>
    %c0_4 = arith.constant 0 : index
    %c0_5 = arith.constant 0 : index
    %6 = vector.load %arg3[%c0_4, %c0_5] : memref<1x96xf32, #tpu.memory_space<vmem>>, vector<1x96xf32>
    %7 = vector.broadcast %6 : vector<1x96xf32> to vector<64x96xf32>
    %8 = arith.addf %5, %7 : vector<64x96xf32>
    %9 = vector.shape_cast %8 : vector<64x96xf32> to vector<8x8x96xf32>
    %10 = vector.extract_strided_slice %9 {offsets = [0, 0, 0], sizes = [8, 8, 16], strides = [1, 1, 1]} : vector<8x8x96xf32> to vector<8x8x16xf32>
    %c0_6 = arith.constant 0 : index
    %c0_7 = arith.constant 0 : index
    %c0_8 = arith.constant 0 : index
    %11 = vector.load %arg10[%c0_6, %c0_7, %c0_8] : memref<48x8x16xf32, #tpu.memory_space<vmem>>, vector<8x8x16xf32>
    tpu.vector_store %arg10[%c0_6, %c0_7, %c0_8], %10 {strides = array<i32>} : memref<48x8x16xf32, #tpu.memory_space<vmem>>, vector<8x8x16xf32>,
    %12 = vector.extract_strided_slice %9 {offsets = [0, 0, 16], sizes = [8, 8, 16], strides = [1, 1, 1]} : vector<8x8x96xf32> to vector<8x8x16xf32>
    %c8 = arith.constant 8 : index
    %c0_9 = arith.constant 0 : index
    %c0_10 = arith.constant 0 : index
    %13 = vector.load %arg10[%c8, %c0_9, %c0_10] : memref<48x8x16xf32, #tpu.memory_space<vmem>>, vector<8x8x16xf32>
    tpu.vector_store %arg10[%c8, %c0_9, %c0_10], %12 {strides = array<i32>} : memref<48x8x16xf32, #tpu.memory_space<vmem>>, vector<8x8x16xf32>,
    %14 = vector.extract_strided_slice %9 {offsets = [0, 0, 32], sizes = [8, 8, 16], strides = [1, 1, 1]} : vector<8x8x96xf32> to vector<8x8x16xf32>
    %c16 = arith.constant 16 : index
    %c0_11 = arith.constant 0 : index
    %c0_12 = arith.constant 0 : index
    %15 = vector.load %arg10[%c16, %c0_11, %c0_12] : memref<48x8x16xf32, #tpu.memory_space<vmem>>, vector<8x8x16xf32>
    tpu.vector_store %arg10[%c16, %c0_11, %c0_12], %14 {strides = array<i32>} : memref<48x8x16xf32, #tpu.memory_space<vmem>>, vector<8x8x16xf32>,
    %16 = vector.extract_strided_slice %9 {offsets = [0, 0, 48], sizes = [8, 8, 16], strides = [1, 1, 1]} : vector<8x8x96xf32> to vector<8x8x16xf32>
    %c24 = arith.constant 24 : index
    %c0_13 = arith.constant 0 : index
    %c0_14 = arith.constant 0 : index
    %17 = vector.load %arg10[%c24, %c0_13, %c0_14] : memref<48x8x16xf32, #tpu.memory_space<vmem>>, vector<8x8x16xf32>
    tpu.vector_store %arg10[%c24, %c0_13, %c0_14], %16 {strides = array<i32>} : memref<48x8x16xf32, #tpu.memory_space<vmem>>, vector<8x8x16xf32>,
    %18 = vector.extract_strided_slice %9 {offsets = [0, 0, 64], sizes = [8, 8, 16], strides = [1, 1, 1]} : vector<8x8x96xf32> to vector<8x8x16xf32>
    %c32 = arith.constant 32 : index
    %c0_15 = arith.constant 0 : index
    %c0_16 = arith.constant 0 : index
    %19 = vector.load %arg10[%c32, %c0_15, %c0_16] : memref<48x8x16xf32, #tpu.memory_space<vmem>>, vector<8x8x16xf32>
    tpu.vector_store %arg10[%c32, %c0_15, %c0_16], %18 {strides = array<i32>} : memref<48x8x16xf32, #tpu.memory_space<vmem>>, vector<8x8x16xf32>,
    %20 = vector.extract_strided_slice %9 {offsets = [0, 0, 80], sizes = [8, 8, 16], strides = [1, 1, 1]} : vector<8x8x96xf32> to vector<8x8x16xf32>
    %c40 = arith.constant 40 : index
    %c0_17 = arith.constant 0 : index
    %c0_18 = arith.constant 0 : index
    %21 = vector.load %arg10[%c40, %c0_17, %c0_18] : memref<48x8x16xf32, #tpu.memory_space<vmem>>, vector<8x8x16xf32>
    tpu.vector_store %arg10[%c40, %c0_17, %c0_18], %20 {strides = array<i32>} : memref<48x8x16xf32, #tpu.memory_space<vmem>>, vector<8x8x16xf32>,
    %c0_19 = arith.constant 0 : index
    %c0_20 = arith.constant 0 : index
    %c0_21 = arith.constant 0 : index
    %c0_22 = arith.constant 0 : index
    %22 = vector.load %arg4[%c0_19, %c0_20, %c0_21, %c0_22] : memref<2x3x16x16xf32, #tpu.memory_space<vmem>>, vector<1x1x16x16xf32>
    %23 = vector.shape_cast %22 : vector<1x1x16x16xf32> to vector<16x16xf32>
    %24 = arith.truncf %23 : vector<16x16xf32> to vector<16x16xbf16>
    %c0_23 = arith.constant 0 : index
    %c1 = arith.constant 1 : index
    %c0_24 = arith.constant 0 : index
    %c0_25 = arith.constant 0 : index
    %25 = vector.load %arg4[%c0_23, %c1, %c0_24, %c0_25] : memref<2x3x16x16xf32, #tpu.memory_space<vmem>>, vector<1x1x16x16xf32>
    %26 = vector.shape_cast %25 : vector<1x1x16x16xf32> to vector<16x16xf32>
    %27 = arith.truncf %26 : vector<16x16xf32> to vector<16x16xbf16>
    %c0_26 = arith.constant 0 : index
    %c2 = arith.constant 2 : index
    %c0_27 = arith.constant 0 : index
    %c0_28 = arith.constant 0 : index
    %28 = vector.load %arg4[%c0_26, %c2, %c0_27, %c0_28] : memref<2x3x16x16xf32, #tpu.memory_space<vmem>>, vector<1x1x16x16xf32>
    %29 = vector.shape_cast %28 : vector<1x1x16x16xf32> to vector<16x16xf32>
    %30 = arith.truncf %29 : vector<16x16xf32> to vector<16x16xbf16>
    %c1_29 = arith.constant 1 : index
    %c0_30 = arith.constant 0 : index
    %c0_31 = arith.constant 0 : index
    %c0_32 = arith.constant 0 : index
    %31 = vector.load %arg4[%c1_29, %c0_30, %c0_31, %c0_32] : memref<2x3x16x16xf32, #tpu.memory_space<vmem>>, vector<1x1x16x16xf32>
    %32 = vector.shape_cast %31 : vector<1x1x16x16xf32> to vector<16x16xf32>
    %33 = arith.truncf %32 : vector<16x16xf32> to vector<16x16xbf16>
    %c1_33 = arith.constant 1 : index
    %c1_34 = arith.constant 1 : index
    %c0_35 = arith.constant 0 : index
    %c0_36 = arith.constant 0 : index
    %34 = vector.load %arg4[%c1_33, %c1_34, %c0_35, %c0_36] : memref<2x3x16x16xf32, #tpu.memory_space<vmem>>, vector<1x1x16x16xf32>
    %35 = vector.shape_cast %34 : vector<1x1x16x16xf32> to vector<16x16xf32>
    %36 = arith.truncf %35 : vector<16x16xf32> to vector<16x16xbf16>
    %c1_37 = arith.constant 1 : index
    %c2_38 = arith.constant 2 : index
    %c0_39 = arith.constant 0 : index
    %c0_40 = arith.constant 0 : index
    %37 = vector.load %arg4[%c1_37, %c2_38, %c0_39, %c0_40] : memref<2x3x16x16xf32, #tpu.memory_space<vmem>>, vector<1x1x16x16xf32>
    %38 = vector.shape_cast %37 : vector<1x1x16x16xf32> to vector<16x16xf32>
    %39 = arith.truncf %38 : vector<16x16xf32> to vector<16x16xbf16>
    %c0_41 = arith.constant 0 : index
    %c0_42 = arith.constant 0 : index
    %c0_43 = arith.constant 0 : index
    %40 = vector.load %arg5[%c0_41, %c0_42, %c0_43] : memref<2x1x16xf32, #tpu.memory_space<vmem>>, vector<1x1x16xf32>
    %41 = vector.shape_cast %40 : vector<1x1x16xf32> to vector<1x16xf32>
    %42 = vector.shape_cast %41 : vector<1x16xf32> to vector<1x16xf32>
    %43 = vector.broadcast %42 : vector<1x16xf32> to vector<8x16xf32>
    %c1_44 = arith.constant 1 : index
    %c0_45 = arith.constant 0 : index
    %c0_46 = arith.constant 0 : index
    %44 = vector.load %arg5[%c1_44, %c0_45, %c0_46] : memref<2x1x16xf32, #tpu.memory_space<vmem>>, vector<1x1x16xf32>
    %45 = vector.shape_cast %44 : vector<1x1x16xf32> to vector<1x16xf32>
    %46 = vector.shape_cast %45 : vector<1x16xf32> to vector<1x16xf32>
    %47 = vector.broadcast %46 : vector<1x16xf32> to vector<8x16xf32>
    %cst_47 = arith.constant 0.000000e+00 : f32
    %48 = vector.broadcast %cst_47 : f32 to vector<8x16xf32>
    %c0_i32 = arith.constant 0 : i32
    %c7_i32 = arith.constant 7 : i32
    %49 = arith.subi %c7_i32, %c0_i32 : i32
    %c0_i32_48 = arith.constant 0 : i32
    %50 = arith.addi %c0_i32_48, %c0_i32 : i32
    %51 = arith.index_cast %50 : i32 to index
    %c0_49 = arith.constant 0 : index
    %c0_50 = arith.constant 0 : index
    %52 = vector.load %arg10[%51, %c0_49, %c0_50] : memref<48x8x16xf32, #tpu.memory_space<vmem>>, vector<1x8x16xf32>
    %53 = vector.shape_cast %52 : vector<1x8x16xf32> to vector<8x16xf32>
    %c8_i32 = arith.constant 8 : i32
    %54 = arith.addi %c8_i32, %c0_i32 : i32
    %55 = arith.index_cast %54 : i32 to index
    %c0_51 = arith.constant 0 : index
    %c0_52 = arith.constant 0 : index
    %56 = vector.load %arg10[%55, %c0_51, %c0_52] : memref<48x8x16xf32, #tpu.memory_space<vmem>>, vector<1x8x16xf32>
    %57 = vector.shape_cast %56 : vector<1x8x16xf32> to vector<8x16xf32>
    %c16_i32 = arith.constant 16 : i32
    %58 = arith.addi %c16_i32, %c0_i32 : i32
    %59 = arith.index_cast %58 : i32 to index
    %c0_53 = arith.constant 0 : index
    %c0_54 = arith.constant 0 : index
    %60 = vector.load %arg10[%59, %c0_53, %c0_54] : memref<48x8x16xf32, #tpu.memory_space<vmem>>, vector<1x8x16xf32>
    %61 = vector.shape_cast %60 : vector<1x8x16xf32> to vector<8x16xf32>
    %62 = arith.truncf %48 : vector<8x16xf32> to vector<8x16xbf16>
    %cst_55 = arith.constant dense<0.000000e+00> : vector<8x16xf32>
    %63 = tpu.matmul %62, %24, %cst_55 {dimension_numbers = #tpu.dot_dimension_numbers<[1], [0], [0], [1], [0, 0, 1, 1], [], []>} : vector<8x16xbf16>, vector<16x16xbf16>, vector<8x16xf32> -> vector<8x16xf32>
    %64 = arith.addf %53, %63 : vector<8x16xf32>
    %65 = arith.negf %64 : vector<8x16xf32>
    %66 = math.exp %65 : vector<8x16xf32>
    %cst_56 = arith.constant 1.000000e+00 : f32
    %67 = vector.broadcast %cst_56 : f32 to vector<8x16xf32>
    %68 = arith.addf %67, %66 : vector<8x16xf32>
    %69 = arith.divf %67, %68 : vector<8x16xf32>
    %cst_57 = arith.constant dense<0.000000e+00> : vector<8x16xf32>
    %70 = tpu.matmul %62, %27, %cst_57 {dimension_numbers = #tpu.dot_dimension_numbers<[1], [0], [0], [1], [0, 0, 1, 1], [], []>} : vector<8x16xbf16>, vector<16x16xbf16>, vector<8x16xf32> -> vector<8x16xf32>
    %71 = arith.addf %57, %70 : vector<8x16xf32>
    %72 = arith.negf %71 : vector<8x16xf32>
    %73 = math.exp %72 : vector<8x16xf32>
    %cst_58 = arith.constant 1.000000e+00 : f32
    %74 = vector.broadcast %cst_58 : f32 to vector<8x16xf32>
    %75 = arith.addf %74, %73 : vector<8x16xf32>
    %76 = arith.divf %74, %75 : vector<8x16xf32>
    %cst_59 = arith.constant dense<0.000000e+00> : vector<8x16xf32>
    %77 = tpu.matmul %62, %30, %cst_59 {dimension_numbers = #tpu.dot_dimension_numbers<[1], [0], [0], [1], [0, 0, 1, 1], [], []>} : vector<8x16xbf16>, vector<16x16xbf16>, vector<8x16xf32> -> vector<8x16xf32>
    %78 = arith.addf %77, %43 : vector<8x16xf32>
    %79 = arith.mulf %69, %78 : vector<8x16xf32>
    %80 = arith.addf %61, %79 : vector<8x16xf32>
    %81 = math.tanh %80 : vector<8x16xf32>
    %cst_60 = arith.constant 1.000000e+00 : f32
    %82 = vector.broadcast %cst_60 : f32 to vector<8x16xf32>
    %83 = arith.subf %82, %76 : vector<8x16xf32>
    %84 = arith.mulf %83, %81 : vector<8x16xf32>
    %85 = arith.mulf %76, %48 : vector<8x16xf32>
    %86 = arith.addf %84, %85 : vector<8x16xf32>
    %c24_i32 = arith.constant 24 : i32
    %87 = arith.addi %c24_i32, %49 : i32
    %88 = arith.index_cast %87 : i32 to index
    %c0_61 = arith.constant 0 : index
    %c0_62 = arith.constant 0 : index
    %89 = vector.load %arg10[%88, %c0_61, %c0_62] : memref<48x8x16xf32, #tpu.memory_space<vmem>>, vector<1x8x16xf32>
    %90 = vector.shape_cast %89 : vector<1x8x16xf32> to vector<8x16xf32>
    %c32_i32 = arith.constant 32 : i32
    %91 = arith.addi %c32_i32, %49 : i32
    %92 = arith.index_cast %91 : i32 to index
    %c0_63 = arith.constant 0 : index
    %c0_64 = arith.constant 0 : index
    %93 = vector.load %arg10[%92, %c0_63, %c0_64] : memref<48x8x16xf32, #tpu.memory_space<vmem>>, vector<1x8x16xf32>
    %94 = vector.shape_cast %93 : vector<1x8x16xf32> to vector<8x16xf32>
    %c40_i32 = arith.constant 40 : i32
    %95 = arith.addi %c40_i32, %49 : i32
    %96 = arith.index_cast %95 : i32 to index
    %c0_65 = arith.constant 0 : index
    %c0_66 = arith.constant 0 : index
    %97 = vector.load %arg10[%96, %c0_65, %c0_66] : memref<48x8x16xf32, #tpu.memory_space<vmem>>, vector<1x8x16xf32>
    %98 = vector.shape_cast %97 : vector<1x8x16xf32> to vector<8x16xf32>
    %99 = arith.truncf %48 : vector<8x16xf32> to vector<8x16xbf16>
    %cst_67 = arith.constant dense<0.000000e+00> : vector<8x16xf32>
    %100 = tpu.matmul %99, %33, %cst_67 {dimension_numbers = #tpu.dot_dimension_numbers<[1], [0], [0], [1], [0, 0, 1, 1], [], []>} : vector<8x16xbf16>, vector<16x16xbf16>, vector<8x16xf32> -> vector<8x16xf32>
    %101 = arith.addf %90, %100 : vector<8x16xf32>
    %102 = arith.negf %101 : vector<8x16xf32>
    %103 = math.exp %102 : vector<8x16xf32>
    %cst_68 = arith.constant 1.000000e+00 : f32
    %104 = vector.broadcast %cst_68 : f32 to vector<8x16xf32>
    %105 = arith.addf %104, %103 : vector<8x16xf32>
    %106 = arith.divf %104, %105 : vector<8x16xf32>
    %cst_69 = arith.constant dense<0.000000e+00> : vector<8x16xf32>
    %107 = tpu.matmul %99, %36, %cst_69 {dimension_numbers = #tpu.dot_dimension_numbers<[1], [0], [0], [1], [0, 0, 1, 1], [], []>} : vector<8x16xbf16>, vector<16x16xbf16>, vector<8x16xf32> -> vector<8x16xf32>
    %108 = arith.addf %94, %107 : vector<8x16xf32>
    %109 = arith.negf %108 : vector<8x16xf32>
    %110 = math.exp %109 : vector<8x16xf32>
    %cst_70 = arith.constant 1.000000e+00 : f32
    %111 = vector.broadcast %cst_70 : f32 to vector<8x16xf32>
    %112 = arith.addf %111, %110 : vector<8x16xf32>
    %113 = arith.divf %111, %112 : vector<8x16xf32>
    %cst_71 = arith.constant dense<0.000000e+00> : vector<8x16xf32>
    %114 = tpu.matmul %99, %39, %cst_71 {dimension_numbers = #tpu.dot_dimension_numbers<[1], [0], [0], [1], [0, 0, 1, 1], [], []>} : vector<8x16xbf16>, vector<16x16xbf16>, vector<8x16xf32> -> vector<8x16xf32>
    %115 = arith.addf %114, %47 : vector<8x16xf32>
    %116 = arith.mulf %106, %115 : vector<8x16xf32>
    %117 = arith.addf %98, %116 : vector<8x16xf32>
    %118 = math.tanh %117 : vector<8x16xf32>
    %cst_72 = arith.constant 1.000000e+00 : f32
    %119 = vector.broadcast %cst_72 : f32 to vector<8x16xf32>
    %120 = arith.subf %119, %113 : vector<8x16xf32>
    %121 = arith.mulf %120, %118 : vector<8x16xf32>
    %122 = arith.mulf %113, %48 : vector<8x16xf32>
    %123 = arith.addf %121, %122 : vector<8x16xf32>
    %124 = arith.index_cast %c0_i32 : i32 to index
    %c0_73 = arith.constant 0 : index
    %c0_74 = arith.constant 0 : index
    %125 = vector.load %arg11[%124, %c0_73, %c0_74] : memref<8x8x16xf32, #tpu.memory_space<vmem>>, vector<1x8x16xf32>
    %126 = vector.shape_cast %125 : vector<1x8x16xf32> to vector<8x16xf32>
    %127 = vector.shape_cast %86 : vector<8x16xf32> to vector<1x8x16xf32>
    tpu.vector_store %arg11[%124, %c0_73, %c0_74], %127 {strides = array<i32>} : memref<8x8x16xf32, #tpu.memory_space<vmem>>, vector<1x8x16xf32>,
    %128 = arith.index_cast %49 : i32 to index
    %c0_75 = arith.constant 0 : index
    %c0_76 = arith.constant 0 : index
    %129 = vector.load %arg12[%128, %c0_75, %c0_76] : memref<8x8x16xf32, #tpu.memory_space<vmem>>, vector<1x8x16xf32>
    %130 = vector.shape_cast %129 : vector<1x8x16xf32> to vector<8x16xf32>
    %131 = vector.shape_cast %123 : vector<8x16xf32> to vector<1x8x16xf32>
    tpu.vector_store %arg12[%128, %c0_75, %c0_76], %131 {strides = array<i32>} : memref<8x8x16xf32, #tpu.memory_space<vmem>>, vector<1x8x16xf32>,
    %c1_i32 = arith.constant 1 : i32
    %c7_i32_77 = arith.constant 7 : i32
    %132 = arith.subi %c7_i32_77, %c1_i32 : i32
    %c0_i32_78 = arith.constant 0 : i32
    %133 = arith.addi %c0_i32_78, %c1_i32 : i32
    %134 = arith.index_cast %133 : i32 to index
    %c0_79 = arith.constant 0 : index
    %c0_80 = arith.constant 0 : index
    %135 = vector.load %arg10[%134, %c0_79, %c0_80] : memref<48x8x16xf32, #tpu.memory_space<vmem>>, vector<1x8x16xf32>
    %136 = vector.shape_cast %135 : vector<1x8x16xf32> to vector<8x16xf32>
    %c8_i32_81 = arith.constant 8 : i32
    %137 = arith.addi %c8_i32_81, %c1_i32 : i32
    %138 = arith.index_cast %137 : i32 to index
    %c0_82 = arith.constant 0 : index
    %c0_83 = arith.constant 0 : index
    %139 = vector.load %arg10[%138, %c0_82, %c0_83] : memref<48x8x16xf32, #tpu.memory_space<vmem>>, vector<1x8x16xf32>
    %140 = vector.shape_cast %139 : vector<1x8x16xf32> to vector<8x16xf32>
    %c16_i32_84 = arith.constant 16 : i32
    %141 = arith.addi %c16_i32_84, %c1_i32 : i32
    %142 = arith.index_cast %141 : i32 to index
    %c0_85 = arith.constant 0 : index
    %c0_86 = arith.constant 0 : index
    %143 = vector.load %arg10[%142, %c0_85, %c0_86] : memref<48x8x16xf32, #tpu.memory_space<vmem>>, vector<1x8x16xf32>
    %144 = vector.shape_cast %143 : vector<1x8x16xf32> to vector<8x16xf32>
    %145 = arith.truncf %86 : vector<8x16xf32> to vector<8x16xbf16>
    %cst_87 = arith.constant dense<0.000000e+00> : vector<8x16xf32>
    %146 = tpu.matmul %145, %24, %cst_87 {dimension_numbers = #tpu.dot_dimension_numbers<[1], [0], [0], [1], [0, 0, 1, 1], [], []>} : vector<8x16xbf16>, vector<16x16xbf16>, vector<8x16xf32> -> vector<8x16xf32>
    %147 = arith.addf %136, %146 : vector<8x16xf32>
    %148 = arith.negf %147 : vector<8x16xf32>
    %149 = math.exp %148 : vector<8x16xf32>
    %cst_88 = arith.constant 1.000000e+00 : f32
    %150 = vector.broadcast %cst_88 : f32 to vector<8x16xf32>
    %151 = arith.addf %150, %149 : vector<8x16xf32>
    %152 = arith.divf %150, %151 : vector<8x16xf32>
    %cst_89 = arith.constant dense<0.000000e+00> : vector<8x16xf32>
    %153 = tpu.matmul %145, %27, %cst_89 {dimension_numbers = #tpu.dot_dimension_numbers<[1], [0], [0], [1], [0, 0, 1, 1], [], []>} : vector<8x16xbf16>, vector<16x16xbf16>, vector<8x16xf32> -> vector<8x16xf32>
    %154 = arith.addf %140, %153 : vector<8x16xf32>
    %155 = arith.negf %154 : vector<8x16xf32>
    %156 = math.exp %155 : vector<8x16xf32>
    %cst_90 = arith.constant 1.000000e+00 : f32
    %157 = vector.broadcast %cst_90 : f32 to vector<8x16xf32>
    %158 = arith.addf %157, %156 : vector<8x16xf32>
    %159 = arith.divf %157, %158 : vector<8x16xf32>
    %cst_91 = arith.constant dense<0.000000e+00> : vector<8x16xf32>
    %160 = tpu.matmul %145, %30, %cst_91 {dimension_numbers = #tpu.dot_dimension_numbers<[1], [0], [0], [1], [0, 0, 1, 1], [], []>} : vector<8x16xbf16>, vector<16x16xbf16>, vector<8x16xf32> -> vector<8x16xf32>
    %161 = arith.addf %160, %43 : vector<8x16xf32>
    %162 = arith.mulf %152, %161 : vector<8x16xf32>
    %163 = arith.addf %144, %162 : vector<8x16xf32>
    %164 = math.tanh %163 : vector<8x16xf32>
    %cst_92 = arith.constant 1.000000e+00 : f32
    %165 = vector.broadcast %cst_92 : f32 to vector<8x16xf32>
    %166 = arith.subf %165, %159 : vector<8x16xf32>
    %167 = arith.mulf %166, %164 : vector<8x16xf32>
    %168 = arith.mulf %159, %86 : vector<8x16xf32>
    %169 = arith.addf %167, %168 : vector<8x16xf32>
    %c24_i32_93 = arith.constant 24 : i32
    %170 = arith.addi %c24_i32_93, %132 : i32
    %171 = arith.index_cast %170 : i32 to index
    %c0_94 = arith.constant 0 : index
    %c0_95 = arith.constant 0 : index
    %172 = vector.load %arg10[%171, %c0_94, %c0_95] : memref<48x8x16xf32, #tpu.memory_space<vmem>>, vector<1x8x16xf32>
    %173 = vector.shape_cast %172 : vector<1x8x16xf32> to vector<8x16xf32>
    %c32_i32_96 = arith.constant 32 : i32
    %174 = arith.addi %c32_i32_96, %132 : i32
    %175 = arith.index_cast %174 : i32 to index
    %c0_97 = arith.constant 0 : index
    %c0_98 = arith.constant 0 : index
    %176 = vector.load %arg10[%175, %c0_97, %c0_98] : memref<48x8x16xf32, #tpu.memory_space<vmem>>, vector<1x8x16xf32>
    %177 = vector.shape_cast %176 : vector<1x8x16xf32> to vector<8x16xf32>
    %c40_i32_99 = arith.constant 40 : i32
    %178 = arith.addi %c40_i32_99, %132 : i32
    %179 = arith.index_cast %178 : i32 to index
    %c0_100 = arith.constant 0 : index
    %c0_101 = arith.constant 0 : index
    %180 = vector.load %arg10[%179, %c0_100, %c0_101] : memref<48x8x16xf32, #tpu.memory_space<vmem>>, vector<1x8x16xf32>
    %181 = vector.shape_cast %180 : vector<1x8x16xf32> to vector<8x16xf32>
    %182 = arith.truncf %123 : vector<8x16xf32> to vector<8x16xbf16>
    %cst_102 = arith.constant dense<0.000000e+00> : vector<8x16xf32>
    %183 = tpu.matmul %182, %33, %cst_102 {dimension_numbers = #tpu.dot_dimension_numbers<[1], [0], [0], [1], [0, 0, 1, 1], [], []>} : vector<8x16xbf16>, vector<16x16xbf16>, vector<8x16xf32> -> vector<8x16xf32>
    %184 = arith.addf %173, %183 : vector<8x16xf32>
    %185 = arith.negf %184 : vector<8x16xf32>
    %186 = math.exp %185 : vector<8x16xf32>
    %cst_103 = arith.constant 1.000000e+00 : f32
    %187 = vector.broadcast %cst_103 : f32 to vector<8x16xf32>
    %188 = arith.addf %187, %186 : vector<8x16xf32>
    %189 = arith.divf %187, %188 : vector<8x16xf32>
    %cst_104 = arith.constant dense<0.000000e+00> : vector<8x16xf32>
    %190 = tpu.matmul %182, %36, %cst_104 {dimension_numbers = #tpu.dot_dimension_numbers<[1], [0], [0], [1], [0, 0, 1, 1], [], []>} : vector<8x16xbf16>, vector<16x16xbf16>, vector<8x16xf32> -> vector<8x16xf32>
    %191 = arith.addf %177, %190 : vector<8x16xf32>
    %192 = arith.negf %191 : vector<8x16xf32>
    %193 = math.exp %192 : vector<8x16xf32>
    %cst_105 = arith.constant 1.000000e+00 : f32
    %194 = vector.broadcast %cst_105 : f32 to vector<8x16xf32>
    %195 = arith.addf %194, %193 : vector<8x16xf32>
    %196 = arith.divf %194, %195 : vector<8x16xf32>
    %cst_106 = arith.constant dense<0.000000e+00> : vector<8x16xf32>
    %197 = tpu.matmul %182, %39, %cst_106 {dimension_numbers = #tpu.dot_dimension_numbers<[1], [0], [0], [1], [0, 0, 1, 1], [], []>} : vector<8x16xbf16>, vector<16x16xbf16>, vector<8x16xf32> -> vector<8x16xf32>
    %198 = arith.addf %197, %47 : vector<8x16xf32>
    %199 = arith.mulf %189, %198 : vector<8x16xf32>
    %200 = arith.addf %181, %199 : vector<8x16xf32>
    %201 = math.tanh %200 : vector<8x16xf32>
    %cst_107 = arith.constant 1.000000e+00 : f32
    %202 = vector.broadcast %cst_107 : f32 to vector<8x16xf32>
    %203 = arith.subf %202, %196 : vector<8x16xf32>
    %204 = arith.mulf %203, %201 : vector<8x16xf32>
    %205 = arith.mulf %196, %123 : vector<8x16xf32>
    %206 = arith.addf %204, %205 : vector<8x16xf32>
    %207 = arith.index_cast %c1_i32 : i32 to index
    %c0_108 = arith.constant 0 : index
    %c0_109 = arith.constant 0 : index
    %208 = vector.load %arg11[%207, %c0_108, %c0_109] : memref<8x8x16xf32, #tpu.memory_space<vmem>>, vector<1x8x16xf32>
    %209 = vector.shape_cast %208 : vector<1x8x16xf32> to vector<8x16xf32>
    %210 = vector.shape_cast %169 : vector<8x16xf32> to vector<1x8x16xf32>
    tpu.vector_store %arg11[%207, %c0_108, %c0_109], %210 {strides = array<i32>} : memref<8x8x16xf32, #tpu.memory_space<vmem>>, vector<1x8x16xf32>,
    %211 = arith.index_cast %132 : i32 to index
    %c0_110 = arith.constant 0 : index
    %c0_111 = arith.constant 0 : index
    %212 = vector.load %arg12[%211, %c0_110, %c0_111] : memref<8x8x16xf32, #tpu.memory_space<vmem>>, vector<1x8x16xf32>
    %213 = vector.shape_cast %212 : vector<1x8x16xf32> to vector<8x16xf32>
    %214 = vector.shape_cast %206 : vector<8x16xf32> to vector<1x8x16xf32>
    tpu.vector_store %arg12[%211, %c0_110, %c0_111], %214 {strides = array<i32>} : memref<8x8x16xf32, #tpu.memory_space<vmem>>, vector<1x8x16xf32>,
    %c2_i32 = arith.constant 2 : i32
    %c7_i32_112 = arith.constant 7 : i32
    %215 = arith.subi %c7_i32_112, %c2_i32 : i32
    %c0_i32_113 = arith.constant 0 : i32
    %216 = arith.addi %c0_i32_113, %c2_i32 : i32
    %217 = arith.index_cast %216 : i32 to index
    %c0_114 = arith.constant 0 : index
    %c0_115 = arith.constant 0 : index
    %218 = vector.load %arg10[%217, %c0_114, %c0_115] : memref<48x8x16xf32, #tpu.memory_space<vmem>>, vector<1x8x16xf32>
    %219 = vector.shape_cast %218 : vector<1x8x16xf32> to vector<8x16xf32>
    %c8_i32_116 = arith.constant 8 : i32
    %220 = arith.addi %c8_i32_116, %c2_i32 : i32
    %221 = arith.index_cast %220 : i32 to index
    %c0_117 = arith.constant 0 : index
    %c0_118 = arith.constant 0 : index
    %222 = vector.load %arg10[%221, %c0_117, %c0_118] : memref<48x8x16xf32, #tpu.memory_space<vmem>>, vector<1x8x16xf32>
    %223 = vector.shape_cast %222 : vector<1x8x16xf32> to vector<8x16xf32>
    %c16_i32_119 = arith.constant 16 : i32
    %224 = arith.addi %c16_i32_119, %c2_i32 : i32
    %225 = arith.index_cast %224 : i32 to index
    %c0_120 = arith.constant 0 : index
    %c0_121 = arith.constant 0 : index
    %226 = vector.load %arg10[%225, %c0_120, %c0_121] : memref<48x8x16xf32, #tpu.memory_space<vmem>>, vector<1x8x16xf32>
    %227 = vector.shape_cast %226 : vector<1x8x16xf32> to vector<8x16xf32>
    %228 = arith.truncf %169 : vector<8x16xf32> to vector<8x16xbf16>
    %cst_122 = arith.constant dense<0.000000e+00> : vector<8x16xf32>
    %229 = tpu.matmul %228, %24, %cst_122 {dimension_numbers = #tpu.dot_dimension_numbers<[1], [0], [0], [1], [0, 0, 1, 1], [], []>} : vector<8x16xbf16>, vector<16x16xbf16>, vector<8x16xf32> -> vector<8x16xf32>
    %230 = arith.addf %219, %229 : vector<8x16xf32>
    %231 = arith.negf %230 : vector<8x16xf32>
    %232 = math.exp %231 : vector<8x16xf32>
    %cst_123 = arith.constant 1.000000e+00 : f32
    %233 = vector.broadcast %cst_123 : f32 to vector<8x16xf32>
    %234 = arith.addf %233, %232 : vector<8x16xf32>
    %235 = arith.divf %233, %234 : vector<8x16xf32>
    %cst_124 = arith.constant dense<0.000000e+00> : vector<8x16xf32>
    %236 = tpu.matmul %228, %27, %cst_124 {dimension_numbers = #tpu.dot_dimension_numbers<[1], [0], [0], [1], [0, 0, 1, 1], [], []>} : vector<8x16xbf16>, vector<16x16xbf16>, vector<8x16xf32> -> vector<8x16xf32>
    %237 = arith.addf %223, %236 : vector<8x16xf32>
    %238 = arith.negf %237 : vector<8x16xf32>
    %239 = math.exp %238 : vector<8x16xf32>
    %cst_125 = arith.constant 1.000000e+00 : f32
    %240 = vector.broadcast %cst_125 : f32 to vector<8x16xf32>
    %241 = arith.addf %240, %239 : vector<8x16xf32>
    %242 = arith.divf %240, %241 : vector<8x16xf32>
    %cst_126 = arith.constant dense<0.000000e+00> : vector<8x16xf32>
    %243 = tpu.matmul %228, %30, %cst_126 {dimension_numbers = #tpu.dot_dimension_numbers<[1], [0], [0], [1], [0, 0, 1, 1], [], []>} : vector<8x16xbf16>, vector<16x16xbf16>, vector<8x16xf32> -> vector<8x16xf32>
    %244 = arith.addf %243, %43 : vector<8x16xf32>
    %245 = arith.mulf %235, %244 : vector<8x16xf32>
    %246 = arith.addf %227, %245 : vector<8x16xf32>
    %247 = math.tanh %246 : vector<8x16xf32>
    %cst_127 = arith.constant 1.000000e+00 : f32
    %248 = vector.broadcast %cst_127 : f32 to vector<8x16xf32>
    %249 = arith.subf %248, %242 : vector<8x16xf32>
    %250 = arith.mulf %249, %247 : vector<8x16xf32>
    %251 = arith.mulf %242, %169 : vector<8x16xf32>
    %252 = arith.addf %250, %251 : vector<8x16xf32>
    %c24_i32_128 = arith.constant 24 : i32
    %253 = arith.addi %c24_i32_128, %215 : i32
    %254 = arith.index_cast %253 : i32 to index
    %c0_129 = arith.constant 0 : index
    %c0_130 = arith.constant 0 : index
    %255 = vector.load %arg10[%254, %c0_129, %c0_130] : memref<48x8x16xf32, #tpu.memory_space<vmem>>, vector<1x8x16xf32>
    %256 = vector.shape_cast %255 : vector<1x8x16xf32> to vector<8x16xf32>
    %c32_i32_131 = arith.constant 32 : i32
    %257 = arith.addi %c32_i32_131, %215 : i32
    %258 = arith.index_cast %257 : i32 to index
    %c0_132 = arith.constant 0 : index
    %c0_133 = arith.constant 0 : index
    %259 = vector.load %arg10[%258, %c0_132, %c0_133] : memref<48x8x16xf32, #tpu.memory_space<vmem>>, vector<1x8x16xf32>
    %260 = vector.shape_cast %259 : vector<1x8x16xf32> to vector<8x16xf32>
    %c40_i32_134 = arith.constant 40 : i32
    %261 = arith.addi %c40_i32_134, %215 : i32
    %262 = arith.index_cast %261 : i32 to index
    %c0_135 = arith.constant 0 : index
    %c0_136 = arith.constant 0 : index
    %263 = vector.load %arg10[%262, %c0_135, %c0_136] : memref<48x8x16xf32, #tpu.memory_space<vmem>>, vector<1x8x16xf32>
    %264 = vector.shape_cast %263 : vector<1x8x16xf32> to vector<8x16xf32>
    %265 = arith.truncf %206 : vector<8x16xf32> to vector<8x16xbf16>
    %cst_137 = arith.constant dense<0.000000e+00> : vector<8x16xf32>
    %266 = tpu.matmul %265, %33, %cst_137 {dimension_numbers = #tpu.dot_dimension_numbers<[1], [0], [0], [1], [0, 0, 1, 1], [], []>} : vector<8x16xbf16>, vector<16x16xbf16>, vector<8x16xf32> -> vector<8x16xf32>
    %267 = arith.addf %256, %266 : vector<8x16xf32>
    %268 = arith.negf %267 : vector<8x16xf32>
    %269 = math.exp %268 : vector<8x16xf32>
    %cst_138 = arith.constant 1.000000e+00 : f32
    %270 = vector.broadcast %cst_138 : f32 to vector<8x16xf32>
    %271 = arith.addf %270, %269 : vector<8x16xf32>
    %272 = arith.divf %270, %271 : vector<8x16xf32>
    %cst_139 = arith.constant dense<0.000000e+00> : vector<8x16xf32>
    %273 = tpu.matmul %265, %36, %cst_139 {dimension_numbers = #tpu.dot_dimension_numbers<[1], [0], [0], [1], [0, 0, 1, 1], [], []>} : vector<8x16xbf16>, vector<16x16xbf16>, vector<8x16xf32> -> vector<8x16xf32>
    %274 = arith.addf %260, %273 : vector<8x16xf32>
    %275 = arith.negf %274 : vector<8x16xf32>
    %276 = math.exp %275 : vector<8x16xf32>
    %cst_140 = arith.constant 1.000000e+00 : f32
    %277 = vector.broadcast %cst_140 : f32 to vector<8x16xf32>
    %278 = arith.addf %277, %276 : vector<8x16xf32>
    %279 = arith.divf %277, %278 : vector<8x16xf32>
    %cst_141 = arith.constant dense<0.000000e+00> : vector<8x16xf32>
    %280 = tpu.matmul %265, %39, %cst_141 {dimension_numbers = #tpu.dot_dimension_numbers<[1], [0], [0], [1], [0, 0, 1, 1], [], []>} : vector<8x16xbf16>, vector<16x16xbf16>, vector<8x16xf32> -> vector<8x16xf32>
    %281 = arith.addf %280, %47 : vector<8x16xf32>
    %282 = arith.mulf %272, %281 : vector<8x16xf32>
    %283 = arith.addf %264, %282 : vector<8x16xf32>
    %284 = math.tanh %283 : vector<8x16xf32>
    %cst_142 = arith.constant 1.000000e+00 : f32
    %285 = vector.broadcast %cst_142 : f32 to vector<8x16xf32>
    %286 = arith.subf %285, %279 : vector<8x16xf32>
    %287 = arith.mulf %286, %284 : vector<8x16xf32>
    %288 = arith.mulf %279, %206 : vector<8x16xf32>
    %289 = arith.addf %287, %288 : vector<8x16xf32>
    %290 = arith.index_cast %c2_i32 : i32 to index
    %c0_143 = arith.constant 0 : index
    %c0_144 = arith.constant 0 : index
    %291 = vector.load %arg11[%290, %c0_143, %c0_144] : memref<8x8x16xf32, #tpu.memory_space<vmem>>, vector<1x8x16xf32>
    %292 = vector.shape_cast %291 : vector<1x8x16xf32> to vector<8x16xf32>
    %293 = vector.shape_cast %252 : vector<8x16xf32> to vector<1x8x16xf32>
    tpu.vector_store %arg11[%290, %c0_143, %c0_144], %293 {strides = array<i32>} : memref<8x8x16xf32, #tpu.memory_space<vmem>>, vector<1x8x16xf32>,
    %294 = arith.index_cast %215 : i32 to index
    %c0_145 = arith.constant 0 : index
    %c0_146 = arith.constant 0 : index
    %295 = vector.load %arg12[%294, %c0_145, %c0_146] : memref<8x8x16xf32, #tpu.memory_space<vmem>>, vector<1x8x16xf32>
    %296 = vector.shape_cast %295 : vector<1x8x16xf32> to vector<8x16xf32>
    %297 = vector.shape_cast %289 : vector<8x16xf32> to vector<1x8x16xf32>
    tpu.vector_store %arg12[%294, %c0_145, %c0_146], %297 {strides = array<i32>} : memref<8x8x16xf32, #tpu.memory_space<vmem>>, vector<1x8x16xf32>,
    %c3_i32 = arith.constant 3 : i32
    %c7_i32_147 = arith.constant 7 : i32
    %298 = arith.subi %c7_i32_147, %c3_i32 : i32
    %c0_i32_148 = arith.constant 0 : i32
    %299 = arith.addi %c0_i32_148, %c3_i32 : i32
    %300 = arith.index_cast %299 : i32 to index
    %c0_149 = arith.constant 0 : index
    %c0_150 = arith.constant 0 : index
    %301 = vector.load %arg10[%300, %c0_149, %c0_150] : memref<48x8x16xf32, #tpu.memory_space<vmem>>, vector<1x8x16xf32>
    %302 = vector.shape_cast %301 : vector<1x8x16xf32> to vector<8x16xf32>
    %c8_i32_151 = arith.constant 8 : i32
    %303 = arith.addi %c8_i32_151, %c3_i32 : i32
    %304 = arith.index_cast %303 : i32 to index
    %c0_152 = arith.constant 0 : index
    %c0_153 = arith.constant 0 : index
    %305 = vector.load %arg10[%304, %c0_152, %c0_153] : memref<48x8x16xf32, #tpu.memory_space<vmem>>, vector<1x8x16xf32>
    %306 = vector.shape_cast %305 : vector<1x8x16xf32> to vector<8x16xf32>
    %c16_i32_154 = arith.constant 16 : i32
    %307 = arith.addi %c16_i32_154, %c3_i32 : i32
    %308 = arith.index_cast %307 : i32 to index
    %c0_155 = arith.constant 0 : index
    %c0_156 = arith.constant 0 : index
    %309 = vector.load %arg10[%308, %c0_155, %c0_156] : memref<48x8x16xf32, #tpu.memory_space<vmem>>, vector<1x8x16xf32>
    %310 = vector.shape_cast %309 : vector<1x8x16xf32> to vector<8x16xf32>
    %311 = arith.truncf %252 : vector<8x16xf32> to vector<8x16xbf16>
    %cst_157 = arith.constant dense<0.000000e+00> : vector<8x16xf32>
    %312 = tpu.matmul %311, %24, %cst_157 {dimension_numbers = #tpu.dot_dimension_numbers<[1], [0], [0], [1], [0, 0, 1, 1], [], []>} : vector<8x16xbf16>, vector<16x16xbf16>, vector<8x16xf32> -> vector<8x16xf32>
    %313 = arith.addf %302, %312 : vector<8x16xf32>
    %314 = arith.negf %313 : vector<8x16xf32>
    %315 = math.exp %314 : vector<8x16xf32>
    %cst_158 = arith.constant 1.000000e+00 : f32
    %316 = vector.broadcast %cst_158 : f32 to vector<8x16xf32>
    %317 = arith.addf %316, %315 : vector<8x16xf32>
    %318 = arith.divf %316, %317 : vector<8x16xf32>
    %cst_159 = arith.constant dense<0.000000e+00> : vector<8x16xf32>
    %319 = tpu.matmul %311, %27, %cst_159 {dimension_numbers = #tpu.dot_dimension_numbers<[1], [0], [0], [1], [0, 0, 1, 1], [], []>} : vector<8x16xbf16>, vector<16x16xbf16>, vector<8x16xf32> -> vector<8x16xf32>
    %320 = arith.addf %306, %319 : vector<8x16xf32>
    %321 = arith.negf %320 : vector<8x16xf32>
    %322 = math.exp %321 : vector<8x16xf32>
    %cst_160 = arith.constant 1.000000e+00 : f32
    %323 = vector.broadcast %cst_160 : f32 to vector<8x16xf32>
    %324 = arith.addf %323, %322 : vector<8x16xf32>
    %325 = arith.divf %323, %324 : vector<8x16xf32>
    %cst_161 = arith.constant dense<0.000000e+00> : vector<8x16xf32>
    %326 = tpu.matmul %311, %30, %cst_161 {dimension_numbers = #tpu.dot_dimension_numbers<[1], [0], [0], [1], [0, 0, 1, 1], [], []>} : vector<8x16xbf16>, vector<16x16xbf16>, vector<8x16xf32> -> vector<8x16xf32>
    %327 = arith.addf %326, %43 : vector<8x16xf32>
    %328 = arith.mulf %318, %327 : vector<8x16xf32>
    %329 = arith.addf %310, %328 : vector<8x16xf32>
    %330 = math.tanh %329 : vector<8x16xf32>
    %cst_162 = arith.constant 1.000000e+00 : f32
    %331 = vector.broadcast %cst_162 : f32 to vector<8x16xf32>
    %332 = arith.subf %331, %325 : vector<8x16xf32>
    %333 = arith.mulf %332, %330 : vector<8x16xf32>
    %334 = arith.mulf %325, %252 : vector<8x16xf32>
    %335 = arith.addf %333, %334 : vector<8x16xf32>
    %c24_i32_163 = arith.constant 24 : i32
    %336 = arith.addi %c24_i32_163, %298 : i32
    %337 = arith.index_cast %336 : i32 to index
    %c0_164 = arith.constant 0 : index
    %c0_165 = arith.constant 0 : index
    %338 = vector.load %arg10[%337, %c0_164, %c0_165] : memref<48x8x16xf32, #tpu.memory_space<vmem>>, vector<1x8x16xf32>
    %339 = vector.shape_cast %338 : vector<1x8x16xf32> to vector<8x16xf32>
    %c32_i32_166 = arith.constant 32 : i32
    %340 = arith.addi %c32_i32_166, %298 : i32
    %341 = arith.index_cast %340 : i32 to index
    %c0_167 = arith.constant 0 : index
    %c0_168 = arith.constant 0 : index
    %342 = vector.load %arg10[%341, %c0_167, %c0_168] : memref<48x8x16xf32, #tpu.memory_space<vmem>>, vector<1x8x16xf32>
    %343 = vector.shape_cast %342 : vector<1x8x16xf32> to vector<8x16xf32>
    %c40_i32_169 = arith.constant 40 : i32
    %344 = arith.addi %c40_i32_169, %298 : i32
    %345 = arith.index_cast %344 : i32 to index
    %c0_170 = arith.constant 0 : index
    %c0_171 = arith.constant 0 : index
    %346 = vector.load %arg10[%345, %c0_170, %c0_171] : memref<48x8x16xf32, #tpu.memory_space<vmem>>, vector<1x8x16xf32>
    %347 = vector.shape_cast %346 : vector<1x8x16xf32> to vector<8x16xf32>
    %348 = arith.truncf %289 : vector<8x16xf32> to vector<8x16xbf16>
    %cst_172 = arith.constant dense<0.000000e+00> : vector<8x16xf32>
    %349 = tpu.matmul %348, %33, %cst_172 {dimension_numbers = #tpu.dot_dimension_numbers<[1], [0], [0], [1], [0, 0, 1, 1], [], []>} : vector<8x16xbf16>, vector<16x16xbf16>, vector<8x16xf32> -> vector<8x16xf32>
    %350 = arith.addf %339, %349 : vector<8x16xf32>
    %351 = arith.negf %350 : vector<8x16xf32>
    %352 = math.exp %351 : vector<8x16xf32>
    %cst_173 = arith.constant 1.000000e+00 : f32
    %353 = vector.broadcast %cst_173 : f32 to vector<8x16xf32>
    %354 = arith.addf %353, %352 : vector<8x16xf32>
    %355 = arith.divf %353, %354 : vector<8x16xf32>
    %cst_174 = arith.constant dense<0.000000e+00> : vector<8x16xf32>
    %356 = tpu.matmul %348, %36, %cst_174 {dimension_numbers = #tpu.dot_dimension_numbers<[1], [0], [0], [1], [0, 0, 1, 1], [], []>} : vector<8x16xbf16>, vector<16x16xbf16>, vector<8x16xf32> -> vector<8x16xf32>
    %357 = arith.addf %343, %356 : vector<8x16xf32>
    %358 = arith.negf %357 : vector<8x16xf32>
    %359 = math.exp %358 : vector<8x16xf32>
    %cst_175 = arith.constant 1.000000e+00 : f32
    %360 = vector.broadcast %cst_175 : f32 to vector<8x16xf32>
    %361 = arith.addf %360, %359 : vector<8x16xf32>
    %362 = arith.divf %360, %361 : vector<8x16xf32>
    %cst_176 = arith.constant dense<0.000000e+00> : vector<8x16xf32>
    %363 = tpu.matmul %348, %39, %cst_176 {dimension_numbers = #tpu.dot_dimension_numbers<[1], [0], [0], [1], [0, 0, 1, 1], [], []>} : vector<8x16xbf16>, vector<16x16xbf16>, vector<8x16xf32> -> vector<8x16xf32>
    %364 = arith.addf %363, %47 : vector<8x16xf32>
    %365 = arith.mulf %355, %364 : vector<8x16xf32>
    %366 = arith.addf %347, %365 : vector<8x16xf32>
    %367 = math.tanh %366 : vector<8x16xf32>
    %cst_177 = arith.constant 1.000000e+00 : f32
    %368 = vector.broadcast %cst_177 : f32 to vector<8x16xf32>
    %369 = arith.subf %368, %362 : vector<8x16xf32>
    %370 = arith.mulf %369, %367 : vector<8x16xf32>
    %371 = arith.mulf %362, %289 : vector<8x16xf32>
    %372 = arith.addf %370, %371 : vector<8x16xf32>
    %373 = arith.index_cast %c3_i32 : i32 to index
    %c0_178 = arith.constant 0 : index
    %c0_179 = arith.constant 0 : index
    %374 = vector.load %arg11[%373, %c0_178, %c0_179] : memref<8x8x16xf32, #tpu.memory_space<vmem>>, vector<1x8x16xf32>
    %375 = vector.shape_cast %374 : vector<1x8x16xf32> to vector<8x16xf32>
    %376 = vector.shape_cast %335 : vector<8x16xf32> to vector<1x8x16xf32>
    tpu.vector_store %arg11[%373, %c0_178, %c0_179], %376 {strides = array<i32>} : memref<8x8x16xf32, #tpu.memory_space<vmem>>, vector<1x8x16xf32>,
    %377 = arith.index_cast %298 : i32 to index
    %c0_180 = arith.constant 0 : index
    %c0_181 = arith.constant 0 : index
    %378 = vector.load %arg12[%377, %c0_180, %c0_181] : memref<8x8x16xf32, #tpu.memory_space<vmem>>, vector<1x8x16xf32>
    %379 = vector.shape_cast %378 : vector<1x8x16xf32> to vector<8x16xf32>
    %380 = vector.shape_cast %372 : vector<8x16xf32> to vector<1x8x16xf32>
    tpu.vector_store %arg12[%377, %c0_180, %c0_181], %380 {strides = array<i32>} : memref<8x8x16xf32, #tpu.memory_space<vmem>>, vector<1x8x16xf32>,
    %c4_i32 = arith.constant 4 : i32
    %c7_i32_182 = arith.constant 7 : i32
    %381 = arith.subi %c7_i32_182, %c4_i32 : i32
    %c0_i32_183 = arith.constant 0 : i32
    %382 = arith.addi %c0_i32_183, %c4_i32 : i32
    %383 = arith.index_cast %382 : i32 to index
    %c0_184 = arith.constant 0 : index
    %c0_185 = arith.constant 0 : index
    %384 = vector.load %arg10[%383, %c0_184, %c0_185] : memref<48x8x16xf32, #tpu.memory_space<vmem>>, vector<1x8x16xf32>
    %385 = vector.shape_cast %384 : vector<1x8x16xf32> to vector<8x16xf32>
    %c8_i32_186 = arith.constant 8 : i32
    %386 = arith.addi %c8_i32_186, %c4_i32 : i32
    %387 = arith.index_cast %386 : i32 to index
    %c0_187 = arith.constant 0 : index
    %c0_188 = arith.constant 0 : index
    %388 = vector.load %arg10[%387, %c0_187, %c0_188] : memref<48x8x16xf32, #tpu.memory_space<vmem>>, vector<1x8x16xf32>
    %389 = vector.shape_cast %388 : vector<1x8x16xf32> to vector<8x16xf32>
    %c16_i32_189 = arith.constant 16 : i32
    %390 = arith.addi %c16_i32_189, %c4_i32 : i32
    %391 = arith.index_cast %390 : i32 to index
    %c0_190 = arith.constant 0 : index
    %c0_191 = arith.constant 0 : index
    %392 = vector.load %arg10[%391, %c0_190, %c0_191] : memref<48x8x16xf32, #tpu.memory_space<vmem>>, vector<1x8x16xf32>
    %393 = vector.shape_cast %392 : vector<1x8x16xf32> to vector<8x16xf32>
    %394 = arith.truncf %335 : vector<8x16xf32> to vector<8x16xbf16>
    %cst_192 = arith.constant dense<0.000000e+00> : vector<8x16xf32>
    %395 = tpu.matmul %394, %24, %cst_192 {dimension_numbers = #tpu.dot_dimension_numbers<[1], [0], [0], [1], [0, 0, 1, 1], [], []>} : vector<8x16xbf16>, vector<16x16xbf16>, vector<8x16xf32> -> vector<8x16xf32>
    %396 = arith.addf %385, %395 : vector<8x16xf32>
    %397 = arith.negf %396 : vector<8x16xf32>
    %398 = math.exp %397 : vector<8x16xf32>
    %cst_193 = arith.constant 1.000000e+00 : f32
    %399 = vector.broadcast %cst_193 : f32 to vector<8x16xf32>
    %400 = arith.addf %399, %398 : vector<8x16xf32>
    %401 = arith.divf %399, %400 : vector<8x16xf32>
    %cst_194 = arith.constant dense<0.000000e+00> : vector<8x16xf32>
    %402 = tpu.matmul %394, %27, %cst_194 {dimension_numbers = #tpu.dot_dimension_numbers<[1], [0], [0], [1], [0, 0, 1, 1], [], []>} : vector<8x16xbf16>, vector<16x16xbf16>, vector<8x16xf32> -> vector<8x16xf32>
    %403 = arith.addf %389, %402 : vector<8x16xf32>
    %404 = arith.negf %403 : vector<8x16xf32>
    %405 = math.exp %404 : vector<8x16xf32>
    %cst_195 = arith.constant 1.000000e+00 : f32
    %406 = vector.broadcast %cst_195 : f32 to vector<8x16xf32>
    %407 = arith.addf %406, %405 : vector<8x16xf32>
    %408 = arith.divf %406, %407 : vector<8x16xf32>
    %cst_196 = arith.constant dense<0.000000e+00> : vector<8x16xf32>
    %409 = tpu.matmul %394, %30, %cst_196 {dimension_numbers = #tpu.dot_dimension_numbers<[1], [0], [0], [1], [0, 0, 1, 1], [], []>} : vector<8x16xbf16>, vector<16x16xbf16>, vector<8x16xf32> -> vector<8x16xf32>
    %410 = arith.addf %409, %43 : vector<8x16xf32>
    %411 = arith.mulf %401, %410 : vector<8x16xf32>
    %412 = arith.addf %393, %411 : vector<8x16xf32>
    %413 = math.tanh %412 : vector<8x16xf32>
    %cst_197 = arith.constant 1.000000e+00 : f32
    %414 = vector.broadcast %cst_197 : f32 to vector<8x16xf32>
    %415 = arith.subf %414, %408 : vector<8x16xf32>
    %416 = arith.mulf %415, %413 : vector<8x16xf32>
    %417 = arith.mulf %408, %335 : vector<8x16xf32>
    %418 = arith.addf %416, %417 : vector<8x16xf32>
    %c24_i32_198 = arith.constant 24 : i32
    %419 = arith.addi %c24_i32_198, %381 : i32
    %420 = arith.index_cast %419 : i32 to index
    %c0_199 = arith.constant 0 : index
    %c0_200 = arith.constant 0 : index
    %421 = vector.load %arg10[%420, %c0_199, %c0_200] : memref<48x8x16xf32, #tpu.memory_space<vmem>>, vector<1x8x16xf32>
    %422 = vector.shape_cast %421 : vector<1x8x16xf32> to vector<8x16xf32>
    %c32_i32_201 = arith.constant 32 : i32
    %423 = arith.addi %c32_i32_201, %381 : i32
    %424 = arith.index_cast %423 : i32 to index
    %c0_202 = arith.constant 0 : index
    %c0_203 = arith.constant 0 : index
    %425 = vector.load %arg10[%424, %c0_202, %c0_203] : memref<48x8x16xf32, #tpu.memory_space<vmem>>, vector<1x8x16xf32>
    %426 = vector.shape_cast %425 : vector<1x8x16xf32> to vector<8x16xf32>
    %c40_i32_204 = arith.constant 40 : i32
    %427 = arith.addi %c40_i32_204, %381 : i32
    %428 = arith.index_cast %427 : i32 to index
    %c0_205 = arith.constant 0 : index
    %c0_206 = arith.constant 0 : index
    %429 = vector.load %arg10[%428, %c0_205, %c0_206] : memref<48x8x16xf32, #tpu.memory_space<vmem>>, vector<1x8x16xf32>
    %430 = vector.shape_cast %429 : vector<1x8x16xf32> to vector<8x16xf32>
    %431 = arith.truncf %372 : vector<8x16xf32> to vector<8x16xbf16>
    %cst_207 = arith.constant dense<0.000000e+00> : vector<8x16xf32>
    %432 = tpu.matmul %431, %33, %cst_207 {dimension_numbers = #tpu.dot_dimension_numbers<[1], [0], [0], [1], [0, 0, 1, 1], [], []>} : vector<8x16xbf16>, vector<16x16xbf16>, vector<8x16xf32> -> vector<8x16xf32>
    %433 = arith.addf %422, %432 : vector<8x16xf32>
    %434 = arith.negf %433 : vector<8x16xf32>
    %435 = math.exp %434 : vector<8x16xf32>
    %cst_208 = arith.constant 1.000000e+00 : f32
    %436 = vector.broadcast %cst_208 : f32 to vector<8x16xf32>
    %437 = arith.addf %436, %435 : vector<8x16xf32>
    %438 = arith.divf %436, %437 : vector<8x16xf32>
    %cst_209 = arith.constant dense<0.000000e+00> : vector<8x16xf32>
    %439 = tpu.matmul %431, %36, %cst_209 {dimension_numbers = #tpu.dot_dimension_numbers<[1], [0], [0], [1], [0, 0, 1, 1], [], []>} : vector<8x16xbf16>, vector<16x16xbf16>, vector<8x16xf32> -> vector<8x16xf32>
    %440 = arith.addf %426, %439 : vector<8x16xf32>
    %441 = arith.negf %440 : vector<8x16xf32>
    %442 = math.exp %441 : vector<8x16xf32>
    %cst_210 = arith.constant 1.000000e+00 : f32
    %443 = vector.broadcast %cst_210 : f32 to vector<8x16xf32>
    %444 = arith.addf %443, %442 : vector<8x16xf32>
    %445 = arith.divf %443, %444 : vector<8x16xf32>
    %cst_211 = arith.constant dense<0.000000e+00> : vector<8x16xf32>
    %446 = tpu.matmul %431, %39, %cst_211 {dimension_numbers = #tpu.dot_dimension_numbers<[1], [0], [0], [1], [0, 0, 1, 1], [], []>} : vector<8x16xbf16>, vector<16x16xbf16>, vector<8x16xf32> -> vector<8x16xf32>
    %447 = arith.addf %446, %47 : vector<8x16xf32>
    %448 = arith.mulf %438, %447 : vector<8x16xf32>
    %449 = arith.addf %430, %448 : vector<8x16xf32>
    %450 = math.tanh %449 : vector<8x16xf32>
    %cst_212 = arith.constant 1.000000e+00 : f32
    %451 = vector.broadcast %cst_212 : f32 to vector<8x16xf32>
    %452 = arith.subf %451, %445 : vector<8x16xf32>
    %453 = arith.mulf %452, %450 : vector<8x16xf32>
    %454 = arith.mulf %445, %372 : vector<8x16xf32>
    %455 = arith.addf %453, %454 : vector<8x16xf32>
    %456 = arith.index_cast %c4_i32 : i32 to index
    %c0_213 = arith.constant 0 : index
    %c0_214 = arith.constant 0 : index
    %457 = vector.load %arg11[%456, %c0_213, %c0_214] : memref<8x8x16xf32, #tpu.memory_space<vmem>>, vector<1x8x16xf32>
    %458 = vector.shape_cast %457 : vector<1x8x16xf32> to vector<8x16xf32>
    %459 = vector.shape_cast %418 : vector<8x16xf32> to vector<1x8x16xf32>
    tpu.vector_store %arg11[%456, %c0_213, %c0_214], %459 {strides = array<i32>} : memref<8x8x16xf32, #tpu.memory_space<vmem>>, vector<1x8x16xf32>,
    %460 = arith.index_cast %381 : i32 to index
    %c0_215 = arith.constant 0 : index
    %c0_216 = arith.constant 0 : index
    %461 = vector.load %arg12[%460, %c0_215, %c0_216] : memref<8x8x16xf32, #tpu.memory_space<vmem>>, vector<1x8x16xf32>
    %462 = vector.shape_cast %461 : vector<1x8x16xf32> to vector<8x16xf32>
    %463 = vector.shape_cast %455 : vector<8x16xf32> to vector<1x8x16xf32>
    tpu.vector_store %arg12[%460, %c0_215, %c0_216], %463 {strides = array<i32>} : memref<8x8x16xf32, #tpu.memory_space<vmem>>, vector<1x8x16xf32>,
    %c5_i32 = arith.constant 5 : i32
    %c7_i32_217 = arith.constant 7 : i32
    %464 = arith.subi %c7_i32_217, %c5_i32 : i32
    %c0_i32_218 = arith.constant 0 : i32
    %465 = arith.addi %c0_i32_218, %c5_i32 : i32
    %466 = arith.index_cast %465 : i32 to index
    %c0_219 = arith.constant 0 : index
    %c0_220 = arith.constant 0 : index
    %467 = vector.load %arg10[%466, %c0_219, %c0_220] : memref<48x8x16xf32, #tpu.memory_space<vmem>>, vector<1x8x16xf32>
    %468 = vector.shape_cast %467 : vector<1x8x16xf32> to vector<8x16xf32>
    %c8_i32_221 = arith.constant 8 : i32
    %469 = arith.addi %c8_i32_221, %c5_i32 : i32
    %470 = arith.index_cast %469 : i32 to index
    %c0_222 = arith.constant 0 : index
    %c0_223 = arith.constant 0 : index
    %471 = vector.load %arg10[%470, %c0_222, %c0_223] : memref<48x8x16xf32, #tpu.memory_space<vmem>>, vector<1x8x16xf32>
    %472 = vector.shape_cast %471 : vector<1x8x16xf32> to vector<8x16xf32>
    %c16_i32_224 = arith.constant 16 : i32
    %473 = arith.addi %c16_i32_224, %c5_i32 : i32
    %474 = arith.index_cast %473 : i32 to index
    %c0_225 = arith.constant 0 : index
    %c0_226 = arith.constant 0 : index
    %475 = vector.load %arg10[%474, %c0_225, %c0_226] : memref<48x8x16xf32, #tpu.memory_space<vmem>>, vector<1x8x16xf32>
    %476 = vector.shape_cast %475 : vector<1x8x16xf32> to vector<8x16xf32>
    %477 = arith.truncf %418 : vector<8x16xf32> to vector<8x16xbf16>
    %cst_227 = arith.constant dense<0.000000e+00> : vector<8x16xf32>
    %478 = tpu.matmul %477, %24, %cst_227 {dimension_numbers = #tpu.dot_dimension_numbers<[1], [0], [0], [1], [0, 0, 1, 1], [], []>} : vector<8x16xbf16>, vector<16x16xbf16>, vector<8x16xf32> -> vector<8x16xf32>
    %479 = arith.addf %468, %478 : vector<8x16xf32>
    %480 = arith.negf %479 : vector<8x16xf32>
    %481 = math.exp %480 : vector<8x16xf32>
    %cst_228 = arith.constant 1.000000e+00 : f32
    %482 = vector.broadcast %cst_228 : f32 to vector<8x16xf32>
    %483 = arith.addf %482, %481 : vector<8x16xf32>
    %484 = arith.divf %482, %483 : vector<8x16xf32>
    %cst_229 = arith.constant dense<0.000000e+00> : vector<8x16xf32>
    %485 = tpu.matmul %477, %27, %cst_229 {dimension_numbers = #tpu.dot_dimension_numbers<[1], [0], [0], [1], [0, 0, 1, 1], [], []>} : vector<8x16xbf16>, vector<16x16xbf16>, vector<8x16xf32> -> vector<8x16xf32>
    %486 = arith.addf %472, %485 : vector<8x16xf32>
    %487 = arith.negf %486 : vector<8x16xf32>
    %488 = math.exp %487 : vector<8x16xf32>
    %cst_230 = arith.constant 1.000000e+00 : f32
    %489 = vector.broadcast %cst_230 : f32 to vector<8x16xf32>
    %490 = arith.addf %489, %488 : vector<8x16xf32>
    %491 = arith.divf %489, %490 : vector<8x16xf32>
    %cst_231 = arith.constant dense<0.000000e+00> : vector<8x16xf32>
    %492 = tpu.matmul %477, %30, %cst_231 {dimension_numbers = #tpu.dot_dimension_numbers<[1], [0], [0], [1], [0, 0, 1, 1], [], []>} : vector<8x16xbf16>, vector<16x16xbf16>, vector<8x16xf32> -> vector<8x16xf32>
    %493 = arith.addf %492, %43 : vector<8x16xf32>
    %494 = arith.mulf %484, %493 : vector<8x16xf32>
    %495 = arith.addf %476, %494 : vector<8x16xf32>
    %496 = math.tanh %495 : vector<8x16xf32>
    %cst_232 = arith.constant 1.000000e+00 : f32
    %497 = vector.broadcast %cst_232 : f32 to vector<8x16xf32>
    %498 = arith.subf %497, %491 : vector<8x16xf32>
    %499 = arith.mulf %498, %496 : vector<8x16xf32>
    %500 = arith.mulf %491, %418 : vector<8x16xf32>
    %501 = arith.addf %499, %500 : vector<8x16xf32>
    %c24_i32_233 = arith.constant 24 : i32
    %502 = arith.addi %c24_i32_233, %464 : i32
    %503 = arith.index_cast %502 : i32 to index
    %c0_234 = arith.constant 0 : index
    %c0_235 = arith.constant 0 : index
    %504 = vector.load %arg10[%503, %c0_234, %c0_235] : memref<48x8x16xf32, #tpu.memory_space<vmem>>, vector<1x8x16xf32>
    %505 = vector.shape_cast %504 : vector<1x8x16xf32> to vector<8x16xf32>
    %c32_i32_236 = arith.constant 32 : i32
    %506 = arith.addi %c32_i32_236, %464 : i32
    %507 = arith.index_cast %506 : i32 to index
    %c0_237 = arith.constant 0 : index
    %c0_238 = arith.constant 0 : index
    %508 = vector.load %arg10[%507, %c0_237, %c0_238] : memref<48x8x16xf32, #tpu.memory_space<vmem>>, vector<1x8x16xf32>
    %509 = vector.shape_cast %508 : vector<1x8x16xf32> to vector<8x16xf32>
    %c40_i32_239 = arith.constant 40 : i32
    %510 = arith.addi %c40_i32_239, %464 : i32
    %511 = arith.index_cast %510 : i32 to index
    %c0_240 = arith.constant 0 : index
    %c0_241 = arith.constant 0 : index
    %512 = vector.load %arg10[%511, %c0_240, %c0_241] : memref<48x8x16xf32, #tpu.memory_space<vmem>>, vector<1x8x16xf32>
    %513 = vector.shape_cast %512 : vector<1x8x16xf32> to vector<8x16xf32>
    %514 = arith.truncf %455 : vector<8x16xf32> to vector<8x16xbf16>
    %cst_242 = arith.constant dense<0.000000e+00> : vector<8x16xf32>
    %515 = tpu.matmul %514, %33, %cst_242 {dimension_numbers = #tpu.dot_dimension_numbers<[1], [0], [0], [1], [0, 0, 1, 1], [], []>} : vector<8x16xbf16>, vector<16x16xbf16>, vector<8x16xf32> -> vector<8x16xf32>
    %516 = arith.addf %505, %515 : vector<8x16xf32>
    %517 = arith.negf %516 : vector<8x16xf32>
    %518 = math.exp %517 : vector<8x16xf32>
    %cst_243 = arith.constant 1.000000e+00 : f32
    %519 = vector.broadcast %cst_243 : f32 to vector<8x16xf32>
    %520 = arith.addf %519, %518 : vector<8x16xf32>
    %521 = arith.divf %519, %520 : vector<8x16xf32>
    %cst_244 = arith.constant dense<0.000000e+00> : vector<8x16xf32>
    %522 = tpu.matmul %514, %36, %cst_244 {dimension_numbers = #tpu.dot_dimension_numbers<[1], [0], [0], [1], [0, 0, 1, 1], [], []>} : vector<8x16xbf16>, vector<16x16xbf16>, vector<8x16xf32> -> vector<8x16xf32>
    %523 = arith.addf %509, %522 : vector<8x16xf32>
    %524 = arith.negf %523 : vector<8x16xf32>
    %525 = math.exp %524 : vector<8x16xf32>
    %cst_245 = arith.constant 1.000000e+00 : f32
    %526 = vector.broadcast %cst_245 : f32 to vector<8x16xf32>
    %527 = arith.addf %526, %525 : vector<8x16xf32>
    %528 = arith.divf %526, %527 : vector<8x16xf32>
    %cst_246 = arith.constant dense<0.000000e+00> : vector<8x16xf32>
    %529 = tpu.matmul %514, %39, %cst_246 {dimension_numbers = #tpu.dot_dimension_numbers<[1], [0], [0], [1], [0, 0, 1, 1], [], []>} : vector<8x16xbf16>, vector<16x16xbf16>, vector<8x16xf32> -> vector<8x16xf32>
    %530 = arith.addf %529, %47 : vector<8x16xf32>
    %531 = arith.mulf %521, %530 : vector<8x16xf32>
    %532 = arith.addf %513, %531 : vector<8x16xf32>
    %533 = math.tanh %532 : vector<8x16xf32>
    %cst_247 = arith.constant 1.000000e+00 : f32
    %534 = vector.broadcast %cst_247 : f32 to vector<8x16xf32>
    %535 = arith.subf %534, %528 : vector<8x16xf32>
    %536 = arith.mulf %535, %533 : vector<8x16xf32>
    %537 = arith.mulf %528, %455 : vector<8x16xf32>
    %538 = arith.addf %536, %537 : vector<8x16xf32>
    %539 = arith.index_cast %c5_i32 : i32 to index
    %c0_248 = arith.constant 0 : index
    %c0_249 = arith.constant 0 : index
    %540 = vector.load %arg11[%539, %c0_248, %c0_249] : memref<8x8x16xf32, #tpu.memory_space<vmem>>, vector<1x8x16xf32>
    %541 = vector.shape_cast %540 : vector<1x8x16xf32> to vector<8x16xf32>
    %542 = vector.shape_cast %501 : vector<8x16xf32> to vector<1x8x16xf32>
    tpu.vector_store %arg11[%539, %c0_248, %c0_249], %542 {strides = array<i32>} : memref<8x8x16xf32, #tpu.memory_space<vmem>>, vector<1x8x16xf32>,
    %543 = arith.index_cast %464 : i32 to index
    %c0_250 = arith.constant 0 : index
    %c0_251 = arith.constant 0 : index
    %544 = vector.load %arg12[%543, %c0_250, %c0_251] : memref<8x8x16xf32, #tpu.memory_space<vmem>>, vector<1x8x16xf32>
    %545 = vector.shape_cast %544 : vector<1x8x16xf32> to vector<8x16xf32>
    %546 = vector.shape_cast %538 : vector<8x16xf32> to vector<1x8x16xf32>
    tpu.vector_store %arg12[%543, %c0_250, %c0_251], %546 {strides = array<i32>} : memref<8x8x16xf32, #tpu.memory_space<vmem>>, vector<1x8x16xf32>,
    %c6_i32 = arith.constant 6 : i32
    %c7_i32_252 = arith.constant 7 : i32
    %547 = arith.subi %c7_i32_252, %c6_i32 : i32
    %c0_i32_253 = arith.constant 0 : i32
    %548 = arith.addi %c0_i32_253, %c6_i32 : i32
    %549 = arith.index_cast %548 : i32 to index
    %c0_254 = arith.constant 0 : index
    %c0_255 = arith.constant 0 : index
    %550 = vector.load %arg10[%549, %c0_254, %c0_255] : memref<48x8x16xf32, #tpu.memory_space<vmem>>, vector<1x8x16xf32>
    %551 = vector.shape_cast %550 : vector<1x8x16xf32> to vector<8x16xf32>
    %c8_i32_256 = arith.constant 8 : i32
    %552 = arith.addi %c8_i32_256, %c6_i32 : i32
    %553 = arith.index_cast %552 : i32 to index
    %c0_257 = arith.constant 0 : index
    %c0_258 = arith.constant 0 : index
    %554 = vector.load %arg10[%553, %c0_257, %c0_258] : memref<48x8x16xf32, #tpu.memory_space<vmem>>, vector<1x8x16xf32>
    %555 = vector.shape_cast %554 : vector<1x8x16xf32> to vector<8x16xf32>
    %c16_i32_259 = arith.constant 16 : i32
    %556 = arith.addi %c16_i32_259, %c6_i32 : i32
    %557 = arith.index_cast %556 : i32 to index
    %c0_260 = arith.constant 0 : index
    %c0_261 = arith.constant 0 : index
    %558 = vector.load %arg10[%557, %c0_260, %c0_261] : memref<48x8x16xf32, #tpu.memory_space<vmem>>, vector<1x8x16xf32>
    %559 = vector.shape_cast %558 : vector<1x8x16xf32> to vector<8x16xf32>
    %560 = arith.truncf %501 : vector<8x16xf32> to vector<8x16xbf16>
    %cst_262 = arith.constant dense<0.000000e+00> : vector<8x16xf32>
    %561 = tpu.matmul %560, %24, %cst_262 {dimension_numbers = #tpu.dot_dimension_numbers<[1], [0], [0], [1], [0, 0, 1, 1], [], []>} : vector<8x16xbf16>, vector<16x16xbf16>, vector<8x16xf32> -> vector<8x16xf32>
    %562 = arith.addf %551, %561 : vector<8x16xf32>
    %563 = arith.negf %562 : vector<8x16xf32>
    %564 = math.exp %563 : vector<8x16xf32>
    %cst_263 = arith.constant 1.000000e+00 : f32
    %565 = vector.broadcast %cst_263 : f32 to vector<8x16xf32>
    %566 = arith.addf %565, %564 : vector<8x16xf32>
    %567 = arith.divf %565, %566 : vector<8x16xf32>
    %cst_264 = arith.constant dense<0.000000e+00> : vector<8x16xf32>
    %568 = tpu.matmul %560, %27, %cst_264 {dimension_numbers = #tpu.dot_dimension_numbers<[1], [0], [0], [1], [0, 0, 1, 1], [], []>} : vector<8x16xbf16>, vector<16x16xbf16>, vector<8x16xf32> -> vector<8x16xf32>
    %569 = arith.addf %555, %568 : vector<8x16xf32>
    %570 = arith.negf %569 : vector<8x16xf32>
    %571 = math.exp %570 : vector<8x16xf32>
    %cst_265 = arith.constant 1.000000e+00 : f32
    %572 = vector.broadcast %cst_265 : f32 to vector<8x16xf32>
    %573 = arith.addf %572, %571 : vector<8x16xf32>
    %574 = arith.divf %572, %573 : vector<8x16xf32>
    %cst_266 = arith.constant dense<0.000000e+00> : vector<8x16xf32>
    %575 = tpu.matmul %560, %30, %cst_266 {dimension_numbers = #tpu.dot_dimension_numbers<[1], [0], [0], [1], [0, 0, 1, 1], [], []>} : vector<8x16xbf16>, vector<16x16xbf16>, vector<8x16xf32> -> vector<8x16xf32>
    %576 = arith.addf %575, %43 : vector<8x16xf32>
    %577 = arith.mulf %567, %576 : vector<8x16xf32>
    %578 = arith.addf %559, %577 : vector<8x16xf32>
    %579 = math.tanh %578 : vector<8x16xf32>
    %cst_267 = arith.constant 1.000000e+00 : f32
    %580 = vector.broadcast %cst_267 : f32 to vector<8x16xf32>
    %581 = arith.subf %580, %574 : vector<8x16xf32>
    %582 = arith.mulf %581, %579 : vector<8x16xf32>
    %583 = arith.mulf %574, %501 : vector<8x16xf32>
    %584 = arith.addf %582, %583 : vector<8x16xf32>
    %c24_i32_268 = arith.constant 24 : i32
    %585 = arith.addi %c24_i32_268, %547 : i32
    %586 = arith.index_cast %585 : i32 to index
    %c0_269 = arith.constant 0 : index
    %c0_270 = arith.constant 0 : index
    %587 = vector.load %arg10[%586, %c0_269, %c0_270] : memref<48x8x16xf32, #tpu.memory_space<vmem>>, vector<1x8x16xf32>
    %588 = vector.shape_cast %587 : vector<1x8x16xf32> to vector<8x16xf32>
    %c32_i32_271 = arith.constant 32 : i32
    %589 = arith.addi %c32_i32_271, %547 : i32
    %590 = arith.index_cast %589 : i32 to index
    %c0_272 = arith.constant 0 : index
    %c0_273 = arith.constant 0 : index
    %591 = vector.load %arg10[%590, %c0_272, %c0_273] : memref<48x8x16xf32, #tpu.memory_space<vmem>>, vector<1x8x16xf32>
    %592 = vector.shape_cast %591 : vector<1x8x16xf32> to vector<8x16xf32>
    %c40_i32_274 = arith.constant 40 : i32
    %593 = arith.addi %c40_i32_274, %547 : i32
    %594 = arith.index_cast %593 : i32 to index
    %c0_275 = arith.constant 0 : index
    %c0_276 = arith.constant 0 : index
    %595 = vector.load %arg10[%594, %c0_275, %c0_276] : memref<48x8x16xf32, #tpu.memory_space<vmem>>, vector<1x8x16xf32>
    %596 = vector.shape_cast %595 : vector<1x8x16xf32> to vector<8x16xf32>
    %597 = arith.truncf %538 : vector<8x16xf32> to vector<8x16xbf16>
    %cst_277 = arith.constant dense<0.000000e+00> : vector<8x16xf32>
    %598 = tpu.matmul %597, %33, %cst_277 {dimension_numbers = #tpu.dot_dimension_numbers<[1], [0], [0], [1], [0, 0, 1, 1], [], []>} : vector<8x16xbf16>, vector<16x16xbf16>, vector<8x16xf32> -> vector<8x16xf32>
    %599 = arith.addf %588, %598 : vector<8x16xf32>
    %600 = arith.negf %599 : vector<8x16xf32>
    %601 = math.exp %600 : vector<8x16xf32>
    %cst_278 = arith.constant 1.000000e+00 : f32
    %602 = vector.broadcast %cst_278 : f32 to vector<8x16xf32>
    %603 = arith.addf %602, %601 : vector<8x16xf32>
    %604 = arith.divf %602, %603 : vector<8x16xf32>
    %cst_279 = arith.constant dense<0.000000e+00> : vector<8x16xf32>
    %605 = tpu.matmul %597, %36, %cst_279 {dimension_numbers = #tpu.dot_dimension_numbers<[1], [0], [0], [1], [0, 0, 1, 1], [], []>} : vector<8x16xbf16>, vector<16x16xbf16>, vector<8x16xf32> -> vector<8x16xf32>
    %606 = arith.addf %592, %605 : vector<8x16xf32>
    %607 = arith.negf %606 : vector<8x16xf32>
    %608 = math.exp %607 : vector<8x16xf32>
    %cst_280 = arith.constant 1.000000e+00 : f32
    %609 = vector.broadcast %cst_280 : f32 to vector<8x16xf32>
    %610 = arith.addf %609, %608 : vector<8x16xf32>
    %611 = arith.divf %609, %610 : vector<8x16xf32>
    %cst_281 = arith.constant dense<0.000000e+00> : vector<8x16xf32>
    %612 = tpu.matmul %597, %39, %cst_281 {dimension_numbers = #tpu.dot_dimension_numbers<[1], [0], [0], [1], [0, 0, 1, 1], [], []>} : vector<8x16xbf16>, vector<16x16xbf16>, vector<8x16xf32> -> vector<8x16xf32>
    %613 = arith.addf %612, %47 : vector<8x16xf32>
    %614 = arith.mulf %604, %613 : vector<8x16xf32>
    %615 = arith.addf %596, %614 : vector<8x16xf32>
    %616 = math.tanh %615 : vector<8x16xf32>
    %cst_282 = arith.constant 1.000000e+00 : f32
    %617 = vector.broadcast %cst_282 : f32 to vector<8x16xf32>
    %618 = arith.subf %617, %611 : vector<8x16xf32>
    %619 = arith.mulf %618, %616 : vector<8x16xf32>
    %620 = arith.mulf %611, %538 : vector<8x16xf32>
    %621 = arith.addf %619, %620 : vector<8x16xf32>
    %622 = arith.index_cast %c6_i32 : i32 to index
    %c0_283 = arith.constant 0 : index
    %c0_284 = arith.constant 0 : index
    %623 = vector.load %arg11[%622, %c0_283, %c0_284] : memref<8x8x16xf32, #tpu.memory_space<vmem>>, vector<1x8x16xf32>
    %624 = vector.shape_cast %623 : vector<1x8x16xf32> to vector<8x16xf32>
    %625 = vector.shape_cast %584 : vector<8x16xf32> to vector<1x8x16xf32>
    tpu.vector_store %arg11[%622, %c0_283, %c0_284], %625 {strides = array<i32>} : memref<8x8x16xf32, #tpu.memory_space<vmem>>, vector<1x8x16xf32>,
    %626 = arith.index_cast %547 : i32 to index
    %c0_285 = arith.constant 0 : index
    %c0_286 = arith.constant 0 : index
    %627 = vector.load %arg12[%626, %c0_285, %c0_286] : memref<8x8x16xf32, #tpu.memory_space<vmem>>, vector<1x8x16xf32>
    %628 = vector.shape_cast %627 : vector<1x8x16xf32> to vector<8x16xf32>
    %629 = vector.shape_cast %621 : vector<8x16xf32> to vector<1x8x16xf32>
    tpu.vector_store %arg12[%626, %c0_285, %c0_286], %629 {strides = array<i32>} : memref<8x8x16xf32, #tpu.memory_space<vmem>>, vector<1x8x16xf32>,
    %c7_i32_287 = arith.constant 7 : i32
    %c7_i32_288 = arith.constant 7 : i32
    %630 = arith.subi %c7_i32_288, %c7_i32_287 : i32
    %c0_i32_289 = arith.constant 0 : i32
    %631 = arith.addi %c0_i32_289, %c7_i32_287 : i32
    %632 = arith.index_cast %631 : i32 to index
    %c0_290 = arith.constant 0 : index
    %c0_291 = arith.constant 0 : index
    %633 = vector.load %arg10[%632, %c0_290, %c0_291] : memref<48x8x16xf32, #tpu.memory_space<vmem>>, vector<1x8x16xf32>
    %634 = vector.shape_cast %633 : vector<1x8x16xf32> to vector<8x16xf32>
    %c8_i32_292 = arith.constant 8 : i32
    %635 = arith.addi %c8_i32_292, %c7_i32_287 : i32
    %636 = arith.index_cast %635 : i32 to index
    %c0_293 = arith.constant 0 : index
    %c0_294 = arith.constant 0 : index
    %637 = vector.load %arg10[%636, %c0_293, %c0_294] : memref<48x8x16xf32, #tpu.memory_space<vmem>>, vector<1x8x16xf32>
    %638 = vector.shape_cast %637 : vector<1x8x16xf32> to vector<8x16xf32>
    %c16_i32_295 = arith.constant 16 : i32
    %639 = arith.addi %c16_i32_295, %c7_i32_287 : i32
    %640 = arith.index_cast %639 : i32 to index
    %c0_296 = arith.constant 0 : index
    %c0_297 = arith.constant 0 : index
    %641 = vector.load %arg10[%640, %c0_296, %c0_297] : memref<48x8x16xf32, #tpu.memory_space<vmem>>, vector<1x8x16xf32>
    %642 = vector.shape_cast %641 : vector<1x8x16xf32> to vector<8x16xf32>
    %643 = arith.truncf %584 : vector<8x16xf32> to vector<8x16xbf16>
    %cst_298 = arith.constant dense<0.000000e+00> : vector<8x16xf32>
    %644 = tpu.matmul %643, %24, %cst_298 {dimension_numbers = #tpu.dot_dimension_numbers<[1], [0], [0], [1], [0, 0, 1, 1], [], []>} : vector<8x16xbf16>, vector<16x16xbf16>, vector<8x16xf32> -> vector<8x16xf32>
    %645 = arith.addf %634, %644 : vector<8x16xf32>
    %646 = arith.negf %645 : vector<8x16xf32>
    %647 = math.exp %646 : vector<8x16xf32>
    %cst_299 = arith.constant 1.000000e+00 : f32
    %648 = vector.broadcast %cst_299 : f32 to vector<8x16xf32>
    %649 = arith.addf %648, %647 : vector<8x16xf32>
    %650 = arith.divf %648, %649 : vector<8x16xf32>
    %cst_300 = arith.constant dense<0.000000e+00> : vector<8x16xf32>
    %651 = tpu.matmul %643, %27, %cst_300 {dimension_numbers = #tpu.dot_dimension_numbers<[1], [0], [0], [1], [0, 0, 1, 1], [], []>} : vector<8x16xbf16>, vector<16x16xbf16>, vector<8x16xf32> -> vector<8x16xf32>
    %652 = arith.addf %638, %651 : vector<8x16xf32>
    %653 = arith.negf %652 : vector<8x16xf32>
    %654 = math.exp %653 : vector<8x16xf32>
    %cst_301 = arith.constant 1.000000e+00 : f32
    %655 = vector.broadcast %cst_301 : f32 to vector<8x16xf32>
    %656 = arith.addf %655, %654 : vector<8x16xf32>
    %657 = arith.divf %655, %656 : vector<8x16xf32>
    %cst_302 = arith.constant dense<0.000000e+00> : vector<8x16xf32>
    %658 = tpu.matmul %643, %30, %cst_302 {dimension_numbers = #tpu.dot_dimension_numbers<[1], [0], [0], [1], [0, 0, 1, 1], [], []>} : vector<8x16xbf16>, vector<16x16xbf16>, vector<8x16xf32> -> vector<8x16xf32>
    %659 = arith.addf %658, %43 : vector<8x16xf32>
    %660 = arith.mulf %650, %659 : vector<8x16xf32>
    %661 = arith.addf %642, %660 : vector<8x16xf32>
    %662 = math.tanh %661 : vector<8x16xf32>
    %cst_303 = arith.constant 1.000000e+00 : f32
    %663 = vector.broadcast %cst_303 : f32 to vector<8x16xf32>
    %664 = arith.subf %663, %657 : vector<8x16xf32>
    %665 = arith.mulf %664, %662 : vector<8x16xf32>
    %666 = arith.mulf %657, %584 : vector<8x16xf32>
    %667 = arith.addf %665, %666 : vector<8x16xf32>
    %c24_i32_304 = arith.constant 24 : i32
    %668 = arith.addi %c24_i32_304, %630 : i32
    %669 = arith.index_cast %668 : i32 to index
    %c0_305 = arith.constant 0 : index
    %c0_306 = arith.constant 0 : index
    %670 = vector.load %arg10[%669, %c0_305, %c0_306] : memref<48x8x16xf32, #tpu.memory_space<vmem>>, vector<1x8x16xf32>
    %671 = vector.shape_cast %670 : vector<1x8x16xf32> to vector<8x16xf32>
    %c32_i32_307 = arith.constant 32 : i32
    %672 = arith.addi %c32_i32_307, %630 : i32
    %673 = arith.index_cast %672 : i32 to index
    %c0_308 = arith.constant 0 : index
    %c0_309 = arith.constant 0 : index
    %674 = vector.load %arg10[%673, %c0_308, %c0_309] : memref<48x8x16xf32, #tpu.memory_space<vmem>>, vector<1x8x16xf32>
    %675 = vector.shape_cast %674 : vector<1x8x16xf32> to vector<8x16xf32>
    %c40_i32_310 = arith.constant 40 : i32
    %676 = arith.addi %c40_i32_310, %630 : i32
    %677 = arith.index_cast %676 : i32 to index
    %c0_311 = arith.constant 0 : index
    %c0_312 = arith.constant 0 : index
    %678 = vector.load %arg10[%677, %c0_311, %c0_312] : memref<48x8x16xf32, #tpu.memory_space<vmem>>, vector<1x8x16xf32>
    %679 = vector.shape_cast %678 : vector<1x8x16xf32> to vector<8x16xf32>
    %680 = arith.truncf %621 : vector<8x16xf32> to vector<8x16xbf16>
    %cst_313 = arith.constant dense<0.000000e+00> : vector<8x16xf32>
    %681 = tpu.matmul %680, %33, %cst_313 {dimension_numbers = #tpu.dot_dimension_numbers<[1], [0], [0], [1], [0, 0, 1, 1], [], []>} : vector<8x16xbf16>, vector<16x16xbf16>, vector<8x16xf32> -> vector<8x16xf32>
    %682 = arith.addf %671, %681 : vector<8x16xf32>
    %683 = arith.negf %682 : vector<8x16xf32>
    %684 = math.exp %683 : vector<8x16xf32>
    %cst_314 = arith.constant 1.000000e+00 : f32
    %685 = vector.broadcast %cst_314 : f32 to vector<8x16xf32>
    %686 = arith.addf %685, %684 : vector<8x16xf32>
    %687 = arith.divf %685, %686 : vector<8x16xf32>
    %cst_315 = arith.constant dense<0.000000e+00> : vector<8x16xf32>
    %688 = tpu.matmul %680, %36, %cst_315 {dimension_numbers = #tpu.dot_dimension_numbers<[1], [0], [0], [1], [0, 0, 1, 1], [], []>} : vector<8x16xbf16>, vector<16x16xbf16>, vector<8x16xf32> -> vector<8x16xf32>
    %689 = arith.addf %675, %688 : vector<8x16xf32>
    %690 = arith.negf %689 : vector<8x16xf32>
    %691 = math.exp %690 : vector<8x16xf32>
    %cst_316 = arith.constant 1.000000e+00 : f32
    %692 = vector.broadcast %cst_316 : f32 to vector<8x16xf32>
    %693 = arith.addf %692, %691 : vector<8x16xf32>
    %694 = arith.divf %692, %693 : vector<8x16xf32>
    %cst_317 = arith.constant dense<0.000000e+00> : vector<8x16xf32>
    %695 = tpu.matmul %680, %39, %cst_317 {dimension_numbers = #tpu.dot_dimension_numbers<[1], [0], [0], [1], [0, 0, 1, 1], [], []>} : vector<8x16xbf16>, vector<16x16xbf16>, vector<8x16xf32> -> vector<8x16xf32>
    %696 = arith.addf %695, %47 : vector<8x16xf32>
    %697 = arith.mulf %687, %696 : vector<8x16xf32>
    %698 = arith.addf %679, %697 : vector<8x16xf32>
    %699 = math.tanh %698 : vector<8x16xf32>
    %cst_318 = arith.constant 1.000000e+00 : f32
    %700 = vector.broadcast %cst_318 : f32 to vector<8x16xf32>
    %701 = arith.subf %700, %694 : vector<8x16xf32>
    %702 = arith.mulf %701, %699 : vector<8x16xf32>
    %703 = arith.mulf %694, %621 : vector<8x16xf32>
    %704 = arith.addf %702, %703 : vector<8x16xf32>
    %705 = arith.index_cast %c7_i32_287 : i32 to index
    %c0_319 = arith.constant 0 : index
    %c0_320 = arith.constant 0 : index
    %706 = vector.load %arg11[%705, %c0_319, %c0_320] : memref<8x8x16xf32, #tpu.memory_space<vmem>>, vector<1x8x16xf32>
    %707 = vector.shape_cast %706 : vector<1x8x16xf32> to vector<8x16xf32>
    %708 = vector.shape_cast %667 : vector<8x16xf32> to vector<1x8x16xf32>
    tpu.vector_store %arg11[%705, %c0_319, %c0_320], %708 {strides = array<i32>} : memref<8x8x16xf32, #tpu.memory_space<vmem>>, vector<1x8x16xf32>,
    %709 = arith.index_cast %630 : i32 to index
    %c0_321 = arith.constant 0 : index
    %c0_322 = arith.constant 0 : index
    %710 = vector.load %arg12[%709, %c0_321, %c0_322] : memref<8x8x16xf32, #tpu.memory_space<vmem>>, vector<1x8x16xf32>
    %711 = vector.shape_cast %710 : vector<1x8x16xf32> to vector<8x16xf32>
    %712 = vector.shape_cast %704 : vector<8x16xf32> to vector<1x8x16xf32>
    tpu.vector_store %arg12[%709, %c0_321, %c0_322], %712 {strides = array<i32>} : memref<8x8x16xf32, #tpu.memory_space<vmem>>, vector<1x8x16xf32>,
    %c8_i32_323 = arith.constant 8 : i32
    %c0_324 = arith.constant 0 : index
    %c0_325 = arith.constant 0 : index
    %c0_326 = arith.constant 0 : index
    %713 = vector.load %arg11[%c0_324, %c0_325, %c0_326] : memref<8x8x16xf32, #tpu.memory_space<vmem>>, vector<8x8x16xf32>
    %c0_327 = arith.constant 0 : index
    %c0_328 = arith.constant 0 : index
    %c0_329 = arith.constant 0 : index
    %714 = vector.load %arg12[%c0_327, %c0_328, %c0_329] : memref<8x8x16xf32, #tpu.memory_space<vmem>>, vector<8x8x16xf32>
    %c0_330 = arith.constant 0 : index
    %c0_331 = arith.constant 0 : index
    %715 = vector.load %arg6[%c0_330, %c0_331] : memref<32x32xf32, #tpu.memory_space<vmem>>, vector<32x32xf32>
    %716 = arith.truncf %715 : vector<32x32xf32> to vector<32x32xbf16>
    %717 = vector.shape_cast %713 : vector<8x8x16xf32> to vector<64x16xf32>
    %718 = arith.truncf %717 : vector<64x16xf32> to vector<64x16xbf16>
    %719 = vector.extract_strided_slice %716 {offsets = [0, 0], sizes = [16, 32], strides = [1, 1]} : vector<32x32xbf16> to vector<16x32xbf16>
    %cst_332 = arith.constant dense<0.000000e+00> : vector<64x32xf32>
    %720 = tpu.matmul %718, %719, %cst_332 {dimension_numbers = #tpu.dot_dimension_numbers<[1], [0], [0], [1], [0, 0, 1, 1], [], []>} : vector<64x16xbf16>, vector<16x32xbf16>, vector<64x32xf32> -> vector<64x32xf32>
    %721 = vector.shape_cast %714 : vector<8x8x16xf32> to vector<64x16xf32>
    %722 = arith.truncf %721 : vector<64x16xf32> to vector<64x16xbf16>
    %723 = vector.extract_strided_slice %716 {offsets = [16, 0], sizes = [16, 32], strides = [1, 1]} : vector<32x32xbf16> to vector<16x32xbf16>
    %cst_333 = arith.constant dense<0.000000e+00> : vector<64x32xf32>
    %724 = tpu.matmul %722, %723, %cst_333 {dimension_numbers = #tpu.dot_dimension_numbers<[1], [0], [0], [1], [0, 0, 1, 1], [], []>} : vector<64x16xbf16>, vector<16x32xbf16>, vector<64x32xf32> -> vector<64x32xf32>
    %725 = arith.addf %720, %724 : vector<64x32xf32>
    %c0_334 = arith.constant 0 : index
    %c0_335 = arith.constant 0 : index
    %726 = vector.load %arg7[%c0_334, %c0_335] : memref<1x32xf32, #tpu.memory_space<vmem>>, vector<1x32xf32>
    %727 = vector.broadcast %726 : vector<1x32xf32> to vector<64x32xf32>
    %728 = arith.addf %725, %727 : vector<64x32xf32>
    %729 = math.tanh %728 : vector<64x32xf32>
    %730 = vector.shape_cast %729 : vector<64x32xf32> to vector<8x8x32xf32>
    %c0_336 = arith.constant 0 : index
    %c0_337 = arith.constant 0 : index
    %731 = vector.load %arg8[%c0_336, %c0_337] : memref<1x32xf32, #tpu.memory_space<vmem>>, vector<1x32xf32>
    %732 = vector.shape_cast %731 : vector<1x32xf32> to vector<1x1x32xf32>
    %733 = vector.broadcast %732 : vector<1x1x32xf32> to vector<8x8x32xf32>
    %734 = arith.mulf %730, %733 : vector<8x8x32xf32>
    %cst_338 = arith.constant dense<0.000000e+00> : vector<8x8xf32>
    %735 = vector.multi_reduction <add>, %734, %cst_338 [2] : vector<8x8x32xf32> to vector<8x8xf32>
    %736 = vector.shape_cast %735 : vector<8x8xf32> to vector<8x8x1xf32>
    %737 = math.tanh %736 : vector<8x8x1xf32>
    %cst_339 = arith.constant dense<0xFF800000> : vector<8x1xf32>
    %738 = vector.multi_reduction <maximumf>, %737, %cst_339 [0] : vector<8x8x1xf32> to vector<8x1xf32>
    %739 = vector.shape_cast %738 : vector<8x1xf32> to vector<1x8x1xf32>
    %740 = vector.broadcast %739 : vector<1x8x1xf32> to vector<8x8x1xf32>
    %741 = arith.subf %737, %740 : vector<8x8x1xf32>
    %742 = math.exp %741 : vector<8x8x1xf32>
    %cst_340 = arith.constant dense<0.000000e+00> : vector<8x1xf32>
    %743 = vector.multi_reduction <add>, %742, %cst_340 [0] : vector<8x8x1xf32> to vector<8x1xf32>
    %744 = vector.shape_cast %743 : vector<8x1xf32> to vector<1x8x1xf32>
    %745 = vector.broadcast %744 : vector<1x8x1xf32> to vector<8x8x1xf32>
    %746 = arith.divf %742, %745 : vector<8x8x1xf32>
    %747 = vector.broadcast %746 : vector<8x8x1xf32> to vector<8x8x16xf32>
    %748 = arith.mulf %713, %747 : vector<8x8x16xf32>
    %cst_341 = arith.constant dense<0.000000e+00> : vector<8x16xf32>
    %749 = vector.multi_reduction <add>, %748, %cst_341 [0] : vector<8x8x16xf32> to vector<8x16xf32>
    %750 = vector.broadcast %746 : vector<8x8x1xf32> to vector<8x8x16xf32>
    %751 = arith.mulf %714, %750 : vector<8x8x16xf32>
    %cst_342 = arith.constant dense<0.000000e+00> : vector<8x16xf32>
    %752 = vector.multi_reduction <add>, %751, %cst_342 [0] : vector<8x8x16xf32> to vector<8x16xf32>
    %c0_343 = arith.constant 0 : index
    %c0_344 = arith.constant 0 : index
    %753 = vector.load %arg9[%c0_343, %c0_344] : memref<8x32xf32, #tpu.memory_space<vmem>>, vector<8x16xf32>
    tpu.vector_store %arg9[%c0_343, %c0_344], %749 {strides = array<i32>} : memref<8x32xf32, #tpu.memory_space<vmem>>, vector<8x16xf32>,
    %c0_345 = arith.constant 0 : index
    %c16_346 = arith.constant 16 : index
    %754 = vector.load %arg9[%c0_345, %c16_346] : memref<8x32xf32, #tpu.memory_space<vmem>>, vector<8x16xf32>
    tpu.vector_store %arg9[%c0_345, %c16_346], %752 {strides = array<i32>} : memref<8x32xf32, #tpu.memory_space<vmem>>, vector<8x16xf32>,
    return
  }
  func.func @transform_0(%arg0: i32) -> (i32, i32, i32) {
    %c0_i32 = arith.constant 0 : i32
    %c0_i32_0 = arith.constant 0 : i32
    %c0_i32_1 = arith.constant 0 : i32
    return %c0_i32, %arg0, %c0_i32_0 : i32, i32, i32
  }
  func.func @transform_1(%arg0: i32) -> (i32, i32) {
    %c0_i32 = arith.constant 0 : i32
    %c0_i32_0 = arith.constant 0 : i32
    %c0_i32_1 = arith.constant 0 : i32
    return %c0_i32, %c0_i32_0 : i32, i32
  }
  func.func @transform_2(%arg0: i32) -> (i32, i32) {
    %c0_i32 = arith.constant 0 : i32
    %c0_i32_0 = arith.constant 0 : i32
    %c0_i32_1 = arith.constant 0 : i32
    return %c0_i32, %c0_i32_0 : i32, i32
  }
  func.func @transform_3(%arg0: i32) -> (i32, i32, i32, i32) {
    %c0_i32 = arith.constant 0 : i32
    %c0_i32_0 = arith.constant 0 : i32
    %c0_i32_1 = arith.constant 0 : i32
    %c0_i32_2 = arith.constant 0 : i32
    %c0_i32_3 = arith.constant 0 : i32
    return %c0_i32, %c0_i32_0, %c0_i32_1, %c0_i32_2 : i32, i32, i32, i32
  }
  func.func @transform_4(%arg0: i32) -> (i32, i32, i32) {
    %c0_i32 = arith.constant 0 : i32
    %c0_i32_0 = arith.constant 0 : i32
    %c0_i32_1 = arith.constant 0 : i32
    %c0_i32_2 = arith.constant 0 : i32
    return %c0_i32, %c0_i32_0, %c0_i32_1 : i32, i32, i32
  }
  func.func @transform_5(%arg0: i32) -> (i32, i32) {
    %c0_i32 = arith.constant 0 : i32
    %c0_i32_0 = arith.constant 0 : i32
    %c0_i32_1 = arith.constant 0 : i32
    return %c0_i32, %c0_i32_0 : i32, i32
  }
  func.func @transform_6(%arg0: i32) -> (i32, i32) {
    %c0_i32 = arith.constant 0 : i32
    %c0_i32_0 = arith.constant 0 : i32
    %c0_i32_1 = arith.constant 0 : i32
    return %c0_i32, %c0_i32_0 : i32, i32
  }
  func.func @transform_7(%arg0: i32) -> (i32, i32) {
    %c0_i32 = arith.constant 0 : i32
    %c0_i32_0 = arith.constant 0 : i32
    %c0_i32_1 = arith.constant 0 : i32
    return %c0_i32, %c0_i32_0 : i32, i32
  }
  func.func @transform_8(%arg0: i32) -> (i32, i32) {
    %c0_i32 = arith.constant 0 : i32
    %c0_i32_0 = arith.constant 0 : i32
    return %arg0, %c0_i32 : i32, i32
  }
}

</mosaic_0001>

<bundles_post_ra>
// kernel: hiernet_forward.3
= control target key start
LH: loop header
LB: loop body
LE: loop exit
PB: predicated region body
PF: predicated region fallthrough
CT: control target
= control target key end

     0   :  { %v2192_v3 = vmov 0.0   ;;  %vm2193_vm0 = vmmov 0   ;;  %vm55_vm1 = vcmask 261120   ;;  %v2194_v22 = vmov 0   ;;  %s2196_s11 = smov 80   ;;  %s2197_s12 = smov 96   ;;  %s2662_s1 = inlined_call_operand.vmem [shape: f32[32,96], index: 1, kind: input, shape index: {}]   ;;  %s2663_s0 = inlined_call_operand.vmem [shape: f32[4,8,32], index: 0, kind: input, shape index: {}]   ;;  %s2664_s3 = inlined_call_operand.vmem [shape: f32[2,3,16,16], index: 3, kind: input, shape index: {}]   ;;  %s2665_s2 = inlined_call_operand.vmem [shape: f32[1,96], index: 2, kind: input, shape index: {}]   ;;  %s2666_s4 = inlined_call_operand.vmem [shape: f32[2,1,16], index: 4, kind: input, shape index: {}]   ;;  %s2667_s5 = inlined_call_operand.vmem [shape: f32[32,32], index: 5, kind: input, shape index: {}]   ;;  %s2668_s6 = inlined_call_operand.vmem [shape: f32[1,32], index: 6, kind: input, shape index: {}]   ;;  %s2669_s7 = inlined_call_operand.vmem [shape: f32[1,32], index: 7, kind: input, shape index: {}]   ;;  %s2670_s8 = inlined_call_operand.vmem [shape: f32[32,5], index: 8, kind: input, shape index: {}]   ;;  %s2671_s9 = inlined_call_operand.vmem [shape: f32[1,5], index: 9, kind: input, shape index: {}]   ;;  %s2672_s10 = inlined_call_operand.vmem [shape: f32[8,5], index: 10, kind: output, shape index: {}]  }
   0x1   :  { %v42_v0 = vld [vmem:[%s2662_s1] sm:$0xff]  ;;  %v43_v1 = vld [vmem:[%s2662_s1 + $0x8] sm:$0xff]  ;;  %v44_v2 = vld [vmem:[%s2662_s1 + $0x10] sm:$0xff]  ;;  %1906 = vmatprep.subr.bf16.mxu1 %v2192_v3  ;;  %1908 = vmatprep.mubr.msk.bf16.mxu1 %vm2193_vm0, %v2192_v3  ;;  %vm111_vm2 = vcmask 130048   ;;  %s2198_s13 = smov 112   ;;  %s2199_s14 = smov 48  }
   0x2   :  { %v46_v4 = vpack.c.bf16 %v43_v1, %v42_v0  ;;  %v45_v5 = vld [vmem:[%s2662_s1 + $0x18] sm:$0xff]  ;;  %v36_v6 = vld [vmem:[%s2663_s0] sm:$0xff]  ;;  %v37_v7 = vld [vmem:[%s2663_s0 + $0x8] sm:$0xff]  ;;  %vm1771_vm3 = vcmask 39936  }
   0x3   :  { %v47_v8 = vpack.c.bf16 %v45_v5, %v44_v2  ;;  %v40_v9 = vpack.c.bf16 %v37_v7, %v36_v6  ;;  %v205_v10 = vld [vmem:[%s2664_s3] sm:$0xff]  ;;  %v38_v11 = vld [vmem:[%s2663_s0 + $0x10] sm:$0xff]  ;;  %v206_v12 = vld [vmem:[%s2664_s3 + $0x8] sm:$0xff] }
   0x4   :  { %1898 = vmatprep.subr.bf16.mxu0 %v46_v4  ;;  %v39_v13 = vld [vmem:[%s2663_s0 + $0x18] sm:$0xff]  ;;  %v2289_v14 = vpack.c.bf16 %v206_v12, %v205_v10  ;;  %v1780_v15 = vld [vmem:[%s2664_s3 + $0x10] sm:$0xff]  ;;  %v1782_v17 = vld [vmem:[%s2664_s3 + $0x20] sm:$0xff] }
   0x5   :  { %1899 = vmatpush3.bf16.msra.mxu0 %v46_v4  ;;  %1902 = vmatprep.mubr.msk.bf16.mxu0 %vm55_vm1, %v40_v9  ;;  %v1781_v16 = vld [vmem:[%s2664_s3 + $0x18] sm:$0xff]  ;;  %v1783_v18 = vld [vmem:[%s2664_s3 + $0x28] sm:$0xff]  ;;  %v41_v20 = vpack.c.bf16 %v39_v13, %v38_v11  ;;  %v1784_v23 = vld [vmem:[%s2664_s3 + $0x30] sm:$0xff] }
   0x6   :  { %1900 = vmatprep.subr.bf16.mxu0 %v47_v8  ;;  %1907 = vmatpush3.bf16.msra.mxu1 %v2289_v14  ;;  %v2304_v19 = vpack.c.bf16 %v1781_v16, %v1780_v15  ;;  %v2307_v21 = vpack.c.bf16 %v1783_v18, %v1782_v17  ;;  %v1785_v24 = vld [vmem:[%s2664_s3 + $0x38] sm:$0xff]  ;;  %v1786_v25 = vld [vmem:[%s2664_s3 + $0x40] sm:$0xff]  ;;  %v1787_v26 = vld [vmem:[%s2664_s3 + $0x48] sm:$0xff] }
   0x7   :  { %1912 = vmatprep.subr.bf16.mxu1 %v2192_v3  ;;  %v2331_v27 = vpack.c.bf16 %v1785_v24, %v1784_v23  ;;  %v2333_v28 = vpack.c.bf16 %v1787_v26, %v1786_v25  ;;  %v1788_v29 = vld [vmem:[%s2664_s3 + $0x50] sm:$0xff]  ;;  %v1789_v30 = vld [vmem:[%s2664_s3 + $0x58] sm:$0xff]  ;;  %v1777_v32 = vld [vmem:[%s2665_s2] ss:$0 sm:$0xff]  ;;  %s2195_s2 = smov 64  }
   0x8   :  { %v2349_v31 = vpack.c.bf16 %v1789_v30, %v1788_v29  ;;  %v2399_v7 = vld [vmem:[%s2666_s4] ss:$0 sm:$0xff] }
   0x9   :  { %1901 = vmatpush3.bf16.msra.mxu0 %v47_v8  ;;  %1909 = vmatmul.mubr.bf16.vlgmr.msra.gmra.mrb[0].mxu1 %v2194_v22 }
   0xa   :  { %1918 = vmatprep.subr.bf16.mxu0 %v2192_v3  ;;  %1913 = vmatpush3.bf16.msra.mxu1 %v2304_v19 }
   0xb   :  { %1914 = vmatprep.mubr.msk.bf16.mxu1 %vm2193_vm0, %v2192_v3  ;;  %1924 = vmatprep.subr.bf16.mxu1 %v2192_v3 }
   0xc   :  { %1903 = vmatmul.mubr.msk.bf16.vlgmr.msra.gmra.mrb[0].mxu0 %vm55_vm1, %v41_v20 }
   0xd   :  { %1919 = vmatpush3.bf16.msra.mxu0 %v2307_v21  ;;  %1920 = vmatprep.mubr.msk.bf16.mxu0 %vm2193_vm0, %v2192_v3 }
   0xe   :  { %1930 = vmatprep.subr.bf16.mxu0 %v2192_v3 }
  0x11   :  { %1915 = vmatmul.mubr.bf16.vlgmr.msra.gmra.mrb[4].mxu1 %v2194_v22 }
  0x12   :  { %1925 = vmatpush3.bf16.msra.mxu1 %v2331_v27  ;;  %1926 = vmatprep.mubr.msk.bf16.mxu1 %vm2193_vm0, %v2192_v3 }
  0x13   :  { %1936 = vmatprep.subr.bf16.mxu1 %v2192_v3 }
  0x14   :  { %1921 = vmatmul.mubr.bf16.vlgmr.msra.gmra.mrb[4].mxu0 %v2194_v22 }
  0x15   :  { %1931 = vmatpush3.bf16.msra.mxu0 %v2333_v28  ;;  %1932 = vmatprep.mubr.msk.bf16.mxu0 %vm2193_vm0, %v2192_v3 }
  0x16   :  { %1942 = vmatprep.subr.bf16.mxu0 %v2192_v3 }
  0x19   :  { %1927 = vmatmul.mubr.bf16.vlgmr.msra.gmra.mrb[8].mxu1 %v2194_v22 }
  0x1a   :  { %1937 = vmatpush3.bf16.msra.mxu1 %v2349_v31  ;;  %1938 = vmatprep.mubr.msk.bf16.mxu1 %vm2193_vm0, %v2192_v3 }
  0x1b   :  { %1948 = vmatprep.subr.bf16.mxu1 %v2192_v3 }
  0x1c   :  { %1933 = vmatmul.mubr.bf16.vlgmr.msra.gmra.mrb[8].mxu0 %v2194_v22 }
  0x1d   :  { %1943 = vmatpush3.bf16.msra.mxu0 %v2289_v14  ;;  %1944 = vmatprep.mubr.msk.bf16.mxu0 %vm2193_vm0, %v2192_v3 }
  0x1e   :  { %1954 = vmatprep.subr.bf16.mxu0 %v2192_v3 }
  0x21   :  { %1939 = vmatmul.mubr.bf16.vlgmr.msra.gmra.mrb[12].mxu1 %v2194_v22 }
  0x22   :  { %1949 = vmatpush3.bf16.msra.mxu1 %v2304_v19  ;;  %1950 = vmatprep.mubr.msk.bf16.mxu1 %vm2193_vm0, %v2192_v3 }
  0x23   :  { %1960 = vmatprep.subr.bf16.mxu1 %v2192_v3 }
  0xdc   :  { %v283_v33 = vpop.f32.mrb[0].mxu1 }
  0xdd   :  { %v1910_v34 = vpop.f32.mrb[1].mxu1 }
  0xde   :  { %v286_v36 = vpop.f32.mrb[2].mxu1 }
  0xdf   :  { %v1904_v35 = vpop.f32.mrb[0].mxu0  ;;  %v1911_v39 = vpop.f32.mrb[3].mxu1 }
  0xe0   :  { %v105_v37 = vadd.f32 %v1904_v35, %v1777_v32  ;;  %v96_v38 = vpop.f32.mrb[1].mxu0 }
  0xe1   :  { %v2366_v40 = vadd.f32 %v1777_v32, %v96_v38  ;;  %v1905_v41 = vpop.f32.mrb[2].mxu0 }
  0xe2   :  { %114 = vst.msk [vmem:[#allocation2 + $0x10] sm:$0xff] %vm111_vm2, %v105_v37  ;;  %v108_v42 = vadd.f32 %v1905_v41, %v1777_v32  ;;  %v99_v43 = vpop.f32.mrb[3].mxu0 }
  0xe3   :  { %112 = vst.msk [vmem:[#allocation2] sm:$0xff] %vm111_vm2, %v2366_v40  ;;  %v100_v44 = vadd.f32 %v1777_v32, %v99_v43 }
  0xe4   :  { %115 = vst.msk [vmem:[#allocation2 + $0x18] sm:$0xff] %vm111_vm2, %v108_v42  ;;  %177 = vrot.lane.b32.xlu1 %v108_v42, %s2195_s2  ;;  %160 = vrot.lane.b32.xlu0 %v108_v42, %s2196_s11  ;;  %v2375_v45 = vpop.f32.mrb[4].mxu1 }
  0xe5   :  { %113 = vst.msk [vmem:[#allocation2 + $0x8] sm:$0xff] %vm111_vm2, %v100_v44  ;;  %v1916_v46 = vpop.f32.mrb[5].mxu1 }
  0xe6   :  { %v333_v48 = vpop.f32.mrb[6].mxu1 }
  0xe7   :  { %v377_v47 = vpop.f32.mrb[4].mxu0  ;;  %v1917_v49 = vpop.f32.mrb[7].mxu1 }
  0xe8   :  { %137 = vrot.lane.b32.xlu1 %v2366_v40, %s2197_s12  ;;  %120 = vrot.lane.b32.xlu0 %v2366_v40, %s2198_s13  ;;  %v1922_v50 = vpop.f32.mrb[5].mxu0  ;;  %v378_v8 = vadd.f32 %v2399_v7, %v377_v47  ;;  %v2428_v49 = vld [vmem:[%s2666_s4 + $0x1] ss:$0 sm:$0xff] }
  0xe9   :  { %v380_v51 = vpop.f32.mrb[6].mxu0 }
  0xea   :  { %v243_v52 = vld [vmem:[#allocation2] sm:$0xff]  ;;  %v1923_v53 = vpop.f32.mrb[7].mxu0 }
  0xeb   :  { %v289_v54 = vadd.f32 %v283_v33, %v243_v52 }
  0xec   :  { %158 = vrot.lane.b32.xlu1 %v105_v37, %s2196_s11  ;;  %194 = vrot.lane.b32.xlu0 %v108_v42, %s2199_s14  ;;  %v430_v56 = vpop.f32.mrb[8].mxu1 }
  0xed   :  { %v1793_v55 = vmul.f32 -1.442695, %v289_v54  ;;  %v1928_v57 = vpop.f32.mrb[9].mxu1 }
  0xee   :  { %v433_v58 = vpop.f32.mrb[10].mxu1 }
  0xef   :  { %2086 = vpow2.f32 %v1793_v55  ;;  %v477_v59 = vpop.f32.mrb[8].mxu0  ;;  %v1929_v60 = vpop.f32.mrb[11].mxu1 }
  0xf0   :  { %175 = vrot.lane.b32.xlu1 %v105_v37, %s2195_s2  ;;  %122 = vrot.lane.b32.xlu0 %v100_v44, %s2198_s13  ;;  %v1934_v61 = vpop.f32.mrb[9].mxu0 }
  0xf1   :  { %v480_v62 = vpop.f32.mrb[10].mxu0 }
  0xf2   :  { %v1935_v63 = vpop.f32.mrb[11].mxu0 }
  0xf4   :  { %192 = vrot.lane.b32.xlu1 %v105_v37, %s2199_s14  ;;  %139 = vrot.lane.b32.xlu0 %v100_v44, %s2197_s12  ;;  %v2387_v0 = vpop.f32.mrb[12].mxu1 }
  0xf5   :  { %v1940_v1 = vpop.f32.mrb[13].mxu1  ;;  %v525_v53 = vadd.f32 %v2428_v49, %v2387_v0 }
  0xf6   :  { %v527_v2 = vpop.f32.mrb[14].mxu1 }
  0xf7   :  { %v1941_v5 = vpop.f32.mrb[15].mxu1 }
  0xf8   :  { %124 = vrot.lane.b32.xlu1 %v105_v37, %s2198_s13  ;;  %156 = vrot.lane.b32.xlu0 %v100_v44, %s2196_s11 }
  0xf9   :  { %v2087_v4 = vpop.eup %2086 }
  0xfa   :  { %v293_v6 = vadd.f32 1.0, %v2087_v4 }
  0xfc   :  { %2088 = vrcp.f32 %v293_v6  ;;  %141 = vrot.lane.b32.xlu1 %v105_v37, %s2197_s12  ;;  %173 = vrot.lane.b32.xlu0 %v100_v44, %s2195_s2 }
 0x100   :  { %154 = vrot.lane.b32.xlu1 %v2366_v40, %s2196_s11  ;;  %190 = vrot.lane.b32.xlu0 %v100_v44, %s2199_s14 }
 0x104   :  { %126 = vrot.lane.b32.xlu1 %v108_v42, %s2198_s13  ;;  %171 = vrot.lane.b32.xlu0 %v2366_v40, %s2195_s2 }
 0x106   :  { %v2089_v9 = vpop.eup %2088 }
 0x107   :  { %v383_v10 = vmul.f32 %v2089_v9, %v378_v8 }
 0x108   :  { %143 = vrot.lane.b32.xlu1 %v108_v42, %s2197_s12  ;;  %188 = vrot.lane.b32.xlu0 %v2366_v40, %s2199_s14 }
 0x156   :  { %v178_v11 = vpop.permute.xlu1 %177  ;;  %v161_v12 = vpop.permute.xlu0 %160 }
 0x157   :  { %187 = vst.msk [vmem:[#allocation2 + $0x98] sm:$0xff] %vm111_vm2, %v178_v11  ;;  %170 = vst.msk [vmem:[#allocation2 + $0x78] sm:$0xff] %vm111_vm2, %v161_v12  ;;  %v541_v12 = vld [vmem:[#allocation2 + $0x8] sm:$0xff] }
 0x15a   :  { %v138_v13 = vpop.permute.xlu1 %137  ;;  %v121_v15 = vpop.permute.xlu0 %120 }
 0x15b   :  { %150 = vst.msk [vmem:[#allocation2 + $0x40] sm:$0xff] %vm111_vm2, %v138_v13  ;;  %133 = vst.msk [vmem:[#allocation2 + $0x20] sm:$0xff] %vm111_vm2, %v121_v15 }
 0x15e   :  { %v391_v16 = vld [vmem:[#allocation2 + $0x78] sm:$0xff]  ;;  %v159_v17 = vpop.permute.xlu1 %158  ;;  %v195_v18 = vpop.permute.xlu0 %194 }
 0x15f   :  { %v436_v20 = vadd.f32 %v430_v56, %v391_v16  ;;  %v393_v22 = vld [vmem:[#allocation2 + $0x98] sm:$0xff]  ;;  %169 = vst.msk [vmem:[#allocation2 + $0x70] sm:$0xff] %vm111_vm2, %v159_v17  ;;  %204 = vst.msk [vmem:[#allocation2 + $0xb8] sm:$0xff] %vm111_vm2, %v195_v18 }
 0x160   :  { %v483_v25 = vadd.f32 %v477_v59, %v393_v22 }
 0x161   :  { %v1795_v23 = vmul.f32 -1.442695, %v436_v20 }
 0x162   :  { %v244_v24 = vld [vmem:[#allocation2 + $0x20] sm:$0xff]  ;;  %v176_v26 = vpop.permute.xlu1 %175  ;;  %v123_v29 = vpop.permute.xlu0 %122  ;;  %v1796_v33 = vmul.f32 -1.442695, %v483_v25 }
 0x163   :  { %v336_v30 = vadd.f32 %v2375_v45, %v244_v24  ;;  %2090 = vpow2.f32 %v1795_v23  ;;  %186 = vst.msk [vmem:[#allocation2 + $0x90] sm:$0xff] %vm111_vm2, %v176_v26  ;;  %134 = vst.msk [vmem:[#allocation2 + $0x28] sm:$0xff] %vm111_vm2, %v123_v29  ;;  %v245_v42 = vld [vmem:[#allocation2 + $0x40] sm:$0xff] }
 0x164   :  { %v384_v47 = vadd.f32 %v383_v10, %v245_v42 }
 0x165   :  { %v1794_v32 = vmul.f32 -1.442695, %v336_v30 }
 0x166   :  { %v193_v34 = vpop.permute.xlu1 %192  ;;  %v140_v35 = vpop.permute.xlu0 %139  ;;  %v395_v58 = vld [vmem:[#allocation2 + $0xb8] sm:$0xff] }
 0x167   :  { %203 = vst.msk [vmem:[#allocation2 + $0xb0] sm:$0xff] %vm111_vm2, %v193_v34  ;;  %151 = vst.msk [vmem:[#allocation2 + $0x48] sm:$0xff] %vm111_vm2, %v140_v35  ;;  %2092 = vpow2.f32 %v1794_v32  ;;  %v692_v34 = vld [vmem:[#allocation2 + $0x70] sm:$0xff] }
 0x168   :  { %2094 = vpow2.f32 %v1796_v33 }
 0x16a   :  { %v125_v36 = vpop.permute.xlu1 %124  ;;  %v157_v37 = vpop.permute.xlu0 %156  ;;  %v543_v24 = vld [vmem:[#allocation2 + $0x28] sm:$0xff] }
 0x16b   :  { %135 = vst.msk [vmem:[#allocation2 + $0x30] sm:$0xff] %vm111_vm2, %v125_v36  ;;  %168 = vst.msk [vmem:[#allocation2 + $0x68] sm:$0xff] %vm111_vm2, %v157_v37 }
 0x16d   :  { %v2091_v38 = vpop.eup %2090 }
 0x16e   :  { %v440_v39 = vadd.f32 1.0, %v2091_v38  ;;  %v142_v40 = vpop.permute.xlu1 %141  ;;  %v174_v41 = vpop.permute.xlu0 %173 }
 0x16f   :  { %152 = vst.msk [vmem:[#allocation2 + $0x50] sm:$0xff] %vm111_vm2, %v142_v40  ;;  %185 = vst.msk [vmem:[#allocation2 + $0x88] sm:$0xff] %vm111_vm2, %v174_v41 }
 0x170   :  { %2096 = vrcp.f32 %v440_v39 }
 0x171   :  { %v2093_v43 = vpop.eup %2092 }
 0x172   :  { %v155_v44 = vpop.permute.xlu1 %154  ;;  %v191_v45 = vpop.permute.xlu0 %190  ;;  %v340_v46 = vadd.f32 1.0, %v2093_v43 }
 0x173   :  { %167 = vst.msk [vmem:[#allocation2 + $0x60] sm:$0xff] %vm111_vm2, %v155_v44  ;;  %202 = vst.msk [vmem:[#allocation2 + $0xa8] sm:$0xff] %vm111_vm2, %v191_v45  ;;  %v2095_v48 = vpop.eup %2094  ;;  %v694_v45 = vld [vmem:[#allocation2 + $0x90] sm:$0xff] }
 0x174   :  { %2098 = vrcp.f32 %v340_v46  ;;  %v487_v52 = vadd.f32 1.0, %v2095_v48 }
 0x175   :  { %2100 = vtanh.f32 %v384_v47 }
 0x176   :  { %v127_v50 = vpop.permute.xlu1 %126  ;;  %v172_v51 = vpop.permute.xlu0 %171  ;;  %2102 = vrcp.f32 %v487_v52 }
 0x177   :  { %136 = vst.msk [vmem:[#allocation2 + $0x38] sm:$0xff] %vm111_vm2, %v127_v50  ;;  %184 = vst.msk [vmem:[#allocation2 + $0x80] sm:$0xff] %vm111_vm2, %v172_v51 }
 0x17a   :  { %v2097_v54 = vpop.eup %2096  ;;  %v144_v55 = vpop.permute.xlu1 %143 }
 0x17b   :  { %v189_v56 = vpop.permute.xlu0 %188  ;;  %v530_v57 = vmul.f32 %v2097_v54, %v525_v53  ;;  %153 = vst.msk [vmem:[#allocation2 + $0x58] sm:$0xff] %vm111_vm2, %v144_v55 }
 0x17c   :  { %201 = vst.msk [vmem:[#allocation2 + $0xa0] sm:$0xff] %vm111_vm2, %v189_v56 }
 0x17d   :  { %v531_v59 = vadd.f32 %v530_v57, %v395_v58 }
 0x17e   :  { %v2099_v60 = vpop.eup %2098 }
 0x17f   :  { %2104 = vtanh.f32 %v531_v59  ;;  %v386_v61 = vsub.f32 1.0, %v2099_v60  ;;  %v2101_v62 = vpop.eup %2100  ;;  %v388_v0 = vmul.f32 0.0, %v2099_v60 }
 0x180   :  { %v2103_v2 = vpop.eup %2102 }
 0x181   :  { %v387_v63 = vmul.f32 %v2101_v62, %v386_v61  ;;  %v533_v5 = vsub.f32 1.0, %v2103_v2  ;;  %v535_v8 = vmul.f32 0.0, %v2103_v2 }
 0x183   :  { %v2436_v1 = vadd.f32 %v388_v0, %v387_v63  ;;  %v545_v0 = vld [vmem:[#allocation2 + $0x48] sm:$0xff] }
 0x185   :  { %537 = vst.msk [vmem:[#allocation3] sm:$0xff] %vm111_vm2, %v2436_v1  ;;  %v546_v4 = vpack.c.bf16 %v2436_v1, %v2436_v1 }
 0x187   :  { %1945 = vmatmul.mubr.msk.bf16.vlgmr.msra.gmra.mrb[12].mxu0 %vm111_vm2, %v546_v4  ;;  %1951 = vmatmul.mubr.msk.bf16.vlgmr.msra.gmra.mrb[16].mxu1 %vm111_vm2, %v546_v4 }
 0x188   :  { %1961 = vmatpush3.bf16.msra.mxu1 %v2331_v27  ;;  %1955 = vmatpush3.bf16.msra.mxu0 %v2307_v21 }
 0x189   :  { %v2105_v6 = vpop.eup %2104  ;;  %1956 = vmatprep.mubr.msk.bf16.mxu0 %vm2193_vm0, %v2192_v3  ;;  %1962 = vmatprep.mubr.msk.bf16.mxu1 %vm2193_vm0, %v2192_v3 }
 0x18a   :  { %v534_v9 = vmul.f32 %v2105_v6, %v533_v5  ;;  %1966 = vmatprep.subr.bf16.mxu0 %v2192_v3  ;;  %1972 = vmatprep.subr.bf16.mxu1 %v2192_v3 }
 0x18c   :  { %v2452_v10 = vadd.f32 %v535_v8, %v534_v9 }
 0x18e   :  { %539 = vst.msk [vmem:[#allocation4 + $0x18] sm:$0xff] %vm111_vm2, %v2452_v10  ;;  %v697_v11 = vpack.c.bf16 %v2452_v10, %v2452_v10 }
 0x18f   :  { %1957 = vmatmul.mubr.msk.bf16.vlgmr.msra.gmra.mrb[16].mxu0 %vm111_vm2, %v546_v4 }
 0x190   :  { %1963 = vmatmul.mubr.msk.bf16.vlgmr.msra.gmra.mrb[20].mxu1 %vm111_vm2, %v697_v11  ;;  %1967 = vmatpush3.bf16.msra.mxu0 %v2333_v28 }
 0x191   :  { %1973 = vmatpush3.bf16.msra.mxu1 %v2349_v31  ;;  %1968 = vmatprep.mubr.msk.bf16.mxu0 %vm2193_vm0, %v2192_v3 }
 0x192   :  { %1974 = vmatprep.mubr.msk.bf16.mxu1 %vm2193_vm0, %v2192_v3  ;;  %1978 = vmatprep.subr.bf16.mxu0 %v2192_v3 }
 0x193   :  { %1984 = vmatprep.subr.bf16.mxu1 %v2192_v3 }
 0x197   :  { %1969 = vmatmul.mubr.msk.bf16.vlgmr.msra.gmra.mrb[20].mxu0 %vm111_vm2, %v697_v11 }
 0x198   :  { %1975 = vmatmul.mubr.msk.bf16.vlgmr.msra.gmra.mrb[24].mxu1 %vm111_vm2, %v697_v11  ;;  %1979 = vmatpush3.bf16.msra.mxu0 %v2289_v14 }
 0x199   :  { %1985 = vmatpush3.bf16.msra.mxu1 %v2304_v19  ;;  %1980 = vmatprep.mubr.msk.bf16.mxu0 %vm2193_vm0, %v2192_v3 }
 0x19a   :  { %1986 = vmatprep.mubr.msk.bf16.mxu1 %vm2193_vm0, %v2192_v3  ;;  %1996 = vmatprep.subr.bf16.mxu1 %v2192_v3 }
 0x19b   :  { %1990 = vmatprep.subr.bf16.mxu0 %v2192_v3 }
 0x25a   :  { %v584_v13 = vpop.f32.mrb[12].mxu0  ;;  %v631_v15 = vpop.f32.mrb[16].mxu1 }
 0x25b   :  { %v590_v16 = vadd.f32 %v584_v13, %v541_v12  ;;  %v1946_v17 = vpop.f32.mrb[13].mxu0  ;;  %v1952_v18 = vpop.f32.mrb[17].mxu1  ;;  %v637_v29 = vadd.f32 %v631_v15, %v543_v24  ;;  %v696_v12 = vld [vmem:[#allocation2 + $0xb0] sm:$0xff] }
 0x25c   :  { %v587_v20 = vpop.f32.mrb[14].mxu0  ;;  %v634_v22 = vpop.f32.mrb[18].mxu1 }
 0x25d   :  { %v1798_v23 = vmul.f32 -1.442695, %v590_v16  ;;  %v1947_v25 = vpop.f32.mrb[15].mxu0  ;;  %v1953_v26 = vpop.f32.mrb[19].mxu1  ;;  %v1800_v30 = vmul.f32 -1.442695, %v637_v29 }
 0x25f   :  { %2106 = vpow2.f32 %v1798_v23 }
 0x260   :  { %2108 = vpow2.f32 %v1800_v30 }
 0x262   :  { %v678_v32 = vpop.f32.mrb[16].mxu0 }
 0x263   :  { %v1958_v33 = vpop.f32.mrb[17].mxu0  ;;  %v735_v35 = vpop.f32.mrb[20].mxu1  ;;  %v679_v61 = vadd.f32 %v2399_v7, %v678_v32 }
 0x264   :  { %v741_v36 = vadd.f32 %v735_v35, %v692_v34  ;;  %v681_v37 = vpop.f32.mrb[18].mxu0  ;;  %v1964_v38 = vpop.f32.mrb[21].mxu1 }
 0x265   :  { %v1959_v39 = vpop.f32.mrb[19].mxu0  ;;  %v738_v40 = vpop.f32.mrb[22].mxu1 }
 0x266   :  { %v1803_v41 = vmul.f32 -1.442695, %v741_v36  ;;  %v1965_v42 = vpop.f32.mrb[23].mxu1 }
 0x268   :  { %2110 = vpow2.f32 %v1803_v41 }
 0x269   :  { %v2107_v43 = vpop.eup %2106 }
 0x26a   :  { %v594_v44 = vadd.f32 1.0, %v2107_v43  ;;  %v782_v46 = vpop.f32.mrb[20].mxu0  ;;  %v2109_v57 = vpop.eup %2108 }
 0x26b   :  { %v788_v47 = vadd.f32 %v782_v46, %v694_v45  ;;  %v1970_v48 = vpop.f32.mrb[21].mxu0  ;;  %v829_v50 = vpop.f32.mrb[24].mxu1  ;;  %v641_v59 = vadd.f32 1.0, %v2109_v57  ;;  %v998_v45 = vld [vmem:[#allocation2 + $0x68] sm:$0xff] }
 0x26c   :  { %2112 = vrcp.f32 %v594_v44  ;;  %v785_v51 = vpop.f32.mrb[22].mxu0  ;;  %v1976_v52 = vpop.f32.mrb[25].mxu1  ;;  %v830_v6 = vadd.f32 %v2428_v49, %v829_v50  ;;  %v1000_v57 = vld [vmem:[#allocation2 + $0x88] sm:$0xff] }
 0x26d   :  { %v1805_v53 = vmul.f32 -1.442695, %v788_v47  ;;  %v1971_v54 = vpop.f32.mrb[23].mxu0  ;;  %v832_v55 = vpop.f32.mrb[26].mxu1 }
 0x26e   :  { %v1977_v56 = vpop.f32.mrb[27].mxu1 }
 0x26f   :  { %2114 = vpow2.f32 %v1805_v53 }
 0x272   :  { %v2111_v58 = vpop.eup %2110 }
 0x273   :  { %v745_v60 = vadd.f32 1.0, %v2111_v58 }
 0x275   :  { %2116 = vrcp.f32 %v745_v60 }
 0x276   :  { %v2113_v62 = vpop.eup %2112  ;;  %2118 = vrcp.f32 %v641_v59 }
 0x277   :  { %v684_v63 = vmul.f32 %v2113_v62, %v679_v61 }
 0x279   :  { %v2115_v2 = vpop.eup %2114  ;;  %v685_v4 = vadd.f32 %v684_v63, %v545_v0 }
 0x27a   :  { %v792_v5 = vadd.f32 1.0, %v2115_v2 }
 0x27b   :  { %2120 = vtanh.f32 %v685_v4 }
 0x27c   :  { %2122 = vrcp.f32 %v792_v5 }
 0x27f   :  { %v2117_v8 = vpop.eup %2116 }
 0x280   :  { %v835_v9 = vmul.f32 %v2117_v8, %v830_v6  ;;  %v2119_v11 = vpop.eup %2118 }
 0x281   :  { %v687_v15 = vsub.f32 1.0, %v2119_v11  ;;  %v689_v17 = vmul.f32 %v2119_v11, %v2436_v1 }
 0x282   :  { %v836_v13 = vadd.f32 %v835_v9, %v696_v12 }
 0x284   :  { %2124 = vtanh.f32 %v836_v13 }
 0x285   :  { %v2121_v16 = vpop.eup %2120 }
 0x286   :  { %v688_v18 = vmul.f32 %v2121_v16, %v687_v15  ;;  %v2123_v22 = vpop.eup %2122  ;;  %v851_v16 = vld [vmem:[#allocation2 + $0x50] sm:$0xff] }
 0x287   :  { %v838_v24 = vsub.f32 1.0, %v2123_v22  ;;  %v840_v25 = vmul.f32 %v2123_v22, %v2452_v10  ;;  %v847_v10 = vld [vmem:[#allocation2 + $0x10] sm:$0xff] }
 0x288   :  { %v2481_v20 = vadd.f32 %v689_v17, %v688_v18 }
 0x28a   :  { %843 = vst.msk [vmem:[#allocation3 + $0x8] sm:$0xff] %vm111_vm2, %v2481_v20  ;;  %v852_v23 = vpack.c.bf16 %v2481_v20, %v2481_v20 }
 0x28c   :  { %1981 = vmatmul.mubr.msk.bf16.vlgmr.msra.gmra.mrb[24].mxu0 %vm111_vm2, %v852_v23  ;;  %1987 = vmatmul.mubr.msk.bf16.vlgmr.msra.gmra.mrb[28].mxu1 %vm111_vm2, %v852_v23 }
 0x28d   :  { %1997 = vmatpush3.bf16.msra.mxu1 %v2331_v27  ;;  %1991 = vmatpush3.bf16.msra.mxu0 %v2307_v21 }
 0x28e   :  { %v2125_v1 = vpop.eup %2124  ;;  %1992 = vmatprep.mubr.msk.bf16.mxu0 %vm2193_vm0, %v2192_v3  ;;  %1998 = vmatprep.mubr.msk.bf16.mxu1 %vm2193_vm0, %v2192_v3 }
 0x28f   :  { %v839_v26 = vmul.f32 %v2125_v1, %v838_v24  ;;  %2002 = vmatprep.subr.bf16.mxu0 %v2192_v3  ;;  %2008 = vmatprep.subr.bf16.mxu1 %v2192_v3 }
 0x291   :  { %v2498_v29 = vadd.f32 %v840_v25, %v839_v26  ;;  %v1002_v26 = vld [vmem:[#allocation2 + $0xa8] sm:$0xff] }
 0x293   :  { %845 = vst.msk [vmem:[#allocation4 + $0x10] sm:$0xff] %vm111_vm2, %v2498_v29  ;;  %v1003_v30 = vpack.c.bf16 %v2498_v29, %v2498_v29 }
 0x294   :  { %1993 = vmatmul.mubr.msk.bf16.vlgmr.msra.gmra.mrb[28].mxu0 %vm111_vm2, %v852_v23 }
 0x295   :  { %1999 = vmatmul.mubr.msk.bf16.vlgmr.msra.gmra.mrb[32].mxu1 %vm111_vm2, %v1003_v30  ;;  %2003 = vmatpush3.bf16.msra.mxu0 %v2333_v28 }
 0x296   :  { %2009 = vmatpush3.bf16.msra.mxu1 %v2349_v31  ;;  %2004 = vmatprep.mubr.msk.bf16.mxu0 %vm2193_vm0, %v2192_v3 }
 0x297   :  { %2010 = vmatprep.mubr.msk.bf16.mxu1 %vm2193_vm0, %v2192_v3  ;;  %2020 = vmatprep.subr.bf16.mxu1 %v2192_v3 }
 0x298   :  { %2014 = vmatprep.subr.bf16.mxu0 %v2192_v3 }
 0x29c   :  { %2005 = vmatmul.mubr.msk.bf16.vlgmr.msra.gmra.mrb[32].mxu0 %vm111_vm2, %v1003_v30 }
 0x29d   :  { %2011 = vmatmul.mubr.msk.bf16.vlgmr.msra.gmra.mrb[36].mxu1 %vm111_vm2, %v1003_v30  ;;  %2015 = vmatpush3.bf16.msra.mxu0 %v2289_v14 }
 0x29e   :  { %2021 = vmatpush3.bf16.msra.mxu1 %v2304_v19  ;;  %2016 = vmatprep.mubr.msk.bf16.mxu0 %vm2193_vm0, %v2192_v3  ;;  %v849_v19 = vld [vmem:[#allocation2 + $0x30] sm:$0xff] }
 0x29f   :  { %2022 = vmatprep.mubr.msk.bf16.mxu1 %vm2193_vm0, %v2192_v3  ;;  %2032 = vmatprep.subr.bf16.mxu1 %v2192_v3 }
 0x2a0   :  { %2026 = vmatprep.subr.bf16.mxu0 %v2192_v3 }
 0x35f   :  { %v890_v32 = vpop.f32.mrb[24].mxu0  ;;  %v937_v33 = vpop.f32.mrb[28].mxu1 }
 0x360   :  { %v896_v34 = vadd.f32 %v890_v32, %v847_v10  ;;  %v1982_v35 = vpop.f32.mrb[25].mxu0  ;;  %v1988_v36 = vpop.f32.mrb[29].mxu1  ;;  %v943_v41 = vadd.f32 %v937_v33, %v849_v19 }
 0x361   :  { %v893_v37 = vpop.f32.mrb[26].mxu0  ;;  %v940_v14 = vpop.f32.mrb[30].mxu1 }
 0x362   :  { %v1808_v38 = vmul.f32 -1.442695, %v896_v34  ;;  %v1983_v39 = vpop.f32.mrb[27].mxu0  ;;  %v1989_v40 = vpop.f32.mrb[31].mxu1  ;;  %v1810_v42 = vmul.f32 -1.442695, %v943_v41 }
 0x363   :  { %v1463_v40 = vld [vmem:[%s2667_s5 + $0x8] sm:$0xff] }
 0x364   :  { %2126 = vpow2.f32 %v1808_v38 }
 0x365   :  { %2128 = vpow2.f32 %v1810_v42  ;;  %v1153_v42 = vld [vmem:[#allocation2 + $0x18] sm:$0xff] }
 0x367   :  { %v984_v43 = vpop.f32.mrb[28].mxu0 }
 0x368   :  { %v1994_v44 = vpop.f32.mrb[29].mxu0  ;;  %v1041_v46 = vpop.f32.mrb[32].mxu1  ;;  %v985_v12 = vadd.f32 %v2399_v7, %v984_v43 }
 0x369   :  { %v1047_v47 = vadd.f32 %v1041_v46, %v998_v45  ;;  %v987_v48 = vpop.f32.mrb[30].mxu0  ;;  %v2000_v50 = vpop.f32.mrb[33].mxu1 }
 0x36a   :  { %v1995_v51 = vpop.f32.mrb[31].mxu0  ;;  %v1044_v52 = vpop.f32.mrb[34].mxu1 }
 0x36b   :  { %v1813_v53 = vmul.f32 -1.442695, %v1047_v47  ;;  %v2001_v54 = vpop.f32.mrb[35].mxu1  ;;  %v1155_v52 = vld [vmem:[#allocation2 + $0x38] sm:$0xff] }
 0x36d   :  { %2130 = vpow2.f32 %v1813_v53 }
 0x36e   :  { %v2127_v55 = vpop.eup %2126 }
 0x36f   :  { %v900_v56 = vadd.f32 1.0, %v2127_v55  ;;  %v1088_v58 = vpop.f32.mrb[32].mxu0  ;;  %v2129_v6 = vpop.eup %2128 }
 0x370   :  { %v1094_v59 = vadd.f32 %v1088_v58, %v1000_v57  ;;  %v2006_v60 = vpop.f32.mrb[33].mxu0  ;;  %v1135_v61 = vpop.f32.mrb[36].mxu1  ;;  %v947_v9 = vadd.f32 1.0, %v2129_v6 }
 0x371   :  { %2132 = vrcp.f32 %v900_v56  ;;  %v1091_v62 = vpop.f32.mrb[34].mxu0  ;;  %v2012_v63 = vpop.f32.mrb[37].mxu1  ;;  %v1136_v23 = vadd.f32 %v2428_v49, %v1135_v61 }
 0x372   :  { %v1815_v0 = vmul.f32 -1.442695, %v1094_v59  ;;  %v2007_v2 = vpop.f32.mrb[35].mxu0  ;;  %v1138_v4 = vpop.f32.mrb[38].mxu1  ;;  %v1303_v59 = vld [vmem:[#allocation2 + $0x60] sm:$0xff] }
 0x373   :  { %v2013_v5 = vpop.f32.mrb[39].mxu1 }
 0x374   :  { %2134 = vpow2.f32 %v1815_v0 }
 0x377   :  { %v2131_v8 = vpop.eup %2130 }
 0x378   :  { %v1051_v11 = vadd.f32 1.0, %v2131_v8 }
 0x37a   :  { %2136 = vrcp.f32 %v1051_v11 }
 0x37b   :  { %v2133_v13 = vpop.eup %2132  ;;  %2138 = vrcp.f32 %v947_v9  ;;  %v1304_v9 = vld [vmem:[#allocation2 + $0x80] sm:$0xff] }
 0x37c   :  { %v990_v15 = vmul.f32 %v2133_v13, %v985_v12 }
 0x37e   :  { %v2135_v17 = vpop.eup %2134  ;;  %v991_v18 = vadd.f32 %v990_v15, %v851_v16 }
 0x37f   :  { %v1098_v22 = vadd.f32 1.0, %v2135_v17 }
 0x380   :  { %2140 = vtanh.f32 %v991_v18 }
 0x381   :  { %2142 = vrcp.f32 %v1098_v22 }
 0x384   :  { %v2137_v24 = vpop.eup %2136 }
 0x385   :  { %v1141_v1 = vmul.f32 %v2137_v24, %v1136_v23  ;;  %v2139_v25 = vpop.eup %2138 }
 0x386   :  { %v993_v10 = vsub.f32 1.0, %v2139_v25  ;;  %v995_v33 = vmul.f32 %v2139_v25, %v2481_v20 }
 0x387   :  { %v1142_v30 = vadd.f32 %v1141_v1, %v1002_v26 }
 0x389   :  { %2144 = vtanh.f32 %v1142_v30 }
 0x38a   :  { %v2141_v32 = vpop.eup %2140 }
 0x38b   :  { %v994_v34 = vmul.f32 %v2141_v32, %v993_v10  ;;  %v2143_v36 = vpop.eup %2142 }
 0x38c   :  { %v1144_v14 = vsub.f32 1.0, %v2143_v36  ;;  %v1146_v38 = vmul.f32 %v2143_v36, %v2498_v29  ;;  %v1462_v29 = vld [vmem:[%s2667_s5] sm:$0xff] }
 0x38d   :  { %v2527_v35 = vadd.f32 %v995_v33, %v994_v34  ;;  %v2575_v41 = vpack.c.bf16 %v1463_v40, %v1462_v29  ;;  %v1157_v34 = vld [vmem:[#allocation2 + $0x58] sm:$0xff] }
 0x38f   :  { %1149 = vst.msk [vmem:[#allocation3 + $0x10] sm:$0xff] %vm111_vm2, %v2527_v35  ;;  %v1158_v37 = vpack.c.bf16 %v2527_v35, %v2527_v35 }
 0x391   :  { %2017 = vmatmul.mubr.msk.bf16.vlgmr.msra.gmra.mrb[36].mxu0 %vm111_vm2, %v1158_v37  ;;  %2023 = vmatmul.mubr.msk.bf16.vlgmr.msra.gmra.mrb[40].mxu1 %vm111_vm2, %v1158_v37 }
 0x392   :  { %2033 = vmatpush3.bf16.msra.mxu1 %v2331_v27  ;;  %2027 = vmatpush3.bf16.msra.mxu0 %v2307_v21  ;;  %v1464_v27 = vld [vmem:[%s2667_s5 + $0x10] sm:$0xff] }
 0x393   :  { %v2145_v20 = vpop.eup %2144  ;;  %2028 = vmatprep.mubr.msk.bf16.mxu0 %vm2193_vm0, %v2192_v3  ;;  %2034 = vmatprep.mubr.msk.bf16.mxu1 %vm2193_vm0, %v2192_v3 }
 0x394   :  { %v1145_v19 = vmul.f32 %v2145_v20, %v1144_v14  ;;  %2038 = vmatprep.subr.bf16.mxu0 %v2192_v3  ;;  %2044 = vmatprep.subr.bf16.mxu1 %v2192_v3 }
 0x396   :  { %v2544_v39 = vadd.f32 %v1146_v38, %v1145_v19 }
 0x398   :  { %1151 = vst.msk [vmem:[#allocation4 + $0x8] sm:$0xff] %vm111_vm2, %v2544_v39  ;;  %v1306_v21 = vpack.c.bf16 %v2544_v39, %v2544_v39 }
 0x399   :  { %2029 = vmatmul.mubr.msk.bf16.vlgmr.msra.gmra.mrb[40].mxu0 %vm111_vm2, %v1158_v37 }
 0x39a   :  { %2035 = vmatmul.mubr.msk.bf16.vlgmr.msra.gmra.mrb[44].mxu1 %vm111_vm2, %v1306_v21  ;;  %2039 = vmatpush3.bf16.msra.mxu0 %v2333_v28  ;;  %v1465_v28 = vld [vmem:[%s2667_s5 + $0x18] sm:$0xff] }
 0x39b   :  { %2045 = vmatpush3.bf16.msra.mxu1 %v2349_v31  ;;  %2040 = vmatprep.mubr.msk.bf16.mxu0 %vm2193_vm0, %v2192_v3  ;;  %v1467_v31 = vpack.c.bf16 %v1465_v28, %v1464_v27  ;;  %v1305_v27 = vld [vmem:[#allocation2 + $0xa0] sm:$0xff] }
 0x39c   :  { %2046 = vmatprep.mubr.msk.bf16.mxu1 %vm2193_vm0, %v2192_v3  ;;  %2062 = vmatprep.subr.bf16.mxu1 %v2192_v3 }
 0x39d   :  { %2050 = vmatprep.subr.bf16.mxu0 %v1467_v31 }
 0x3a1   :  { %2041 = vmatmul.mubr.msk.bf16.vlgmr.msra.gmra.mrb[44].mxu0 %vm111_vm2, %v1306_v21 }
 0x3a2   :  { %2047 = vmatmul.mubr.msk.bf16.vlgmr.msra.gmra.mrb[48].mxu1 %vm111_vm2, %v1306_v21  ;;  %2051 = vmatpush3.bf16.msra.mxu0 %v1467_v31 }
 0x3a3   :  { %2064 = vmatprep.mubr.msk.bf16.mxu1 %vm2193_vm0, %v2192_v3  ;;  %2056 = vmatprep.subr.bf16.mxu0 %v2575_v41 }
 0x464   :  { %v1196_v43 = vpop.f32.mrb[36].mxu0  ;;  %v1243_v44 = vpop.f32.mrb[40].mxu1 }
 0x465   :  { %v1202_v45 = vadd.f32 %v1196_v43, %v1153_v42  ;;  %v2018_v46 = vpop.f32.mrb[37].mxu0  ;;  %v2024_v47 = vpop.f32.mrb[41].mxu1  ;;  %v1249_v55 = vadd.f32 %v1243_v44, %v1155_v52 }
 0x466   :  { %v1199_v48 = vpop.f32.mrb[38].mxu0  ;;  %v1246_v50 = vpop.f32.mrb[42].mxu1 }
 0x467   :  { %v1818_v51 = vmul.f32 -1.442695, %v1202_v45  ;;  %v2019_v53 = vpop.f32.mrb[39].mxu0  ;;  %v2025_v54 = vpop.f32.mrb[43].mxu1  ;;  %v1820_v56 = vmul.f32 -1.442695, %v1249_v55 }
 0x468   :  { %v2584_v48 = vld [vmem:[#allocation4 + $0x10] sm:$0xff]  ;;  %v2594_v53 = vld [vmem:[#allocation4 + $0x18] sm:$0xff]  ;;  %v2598_v54 = vld [vmem:[#allocation3] sm:$0xff] }
 0x469   :  { %2146 = vpow2.f32 %v1818_v51  ;;  %v2588_v51 = vld [vmem:[#allocation4 + $0x8] sm:$0xff] }
 0x46a   :  { %2148 = vpow2.f32 %v1820_v56 }
 0x46c   :  { %v1290_v57 = vpop.f32.mrb[40].mxu0 }
 0x46d   :  { %v2030_v58 = vpop.f32.mrb[41].mxu0  ;;  %v1344_v60 = vpop.f32.mrb[44].mxu1  ;;  %v1291_v10 = vadd.f32 %v2399_v7, %v1290_v57  ;;  %v2608_v57 = vld [vmem:[#allocation3 + $0x10] sm:$0xff] }
 0x46e   :  { %v1350_v61 = vadd.f32 %v1344_v60, %v1303_v59  ;;  %v1293_v62 = vpop.f32.mrb[42].mxu0  ;;  %v2036_v63 = vpop.f32.mrb[45].mxu1  ;;  %v1831_v59 = vld [vmem:[%s2668_s6] ss:$0 sm:$0xff] }
 0x46f   :  { %v2031_v0 = vpop.f32.mrb[43].mxu0  ;;  %v1347_v2 = vpop.f32.mrb[46].mxu1 }
 0x470   :  { %v1823_v4 = vmul.f32 -1.442695, %v1350_v61  ;;  %v2037_v5 = vpop.f32.mrb[47].mxu1 }
 0x471   :  { %v1832_v5 = vld [vmem:[%s2669_s7] ss:$0 sm:$0xff] }
 0x472   :  { %2150 = vpow2.f32 %v1823_v4 }
 0x473   :  { %v2147_v6 = vpop.eup %2146 }
 0x474   :  { %v1206_v8 = vadd.f32 1.0, %v2147_v6  ;;  %v1391_v11 = vpop.f32.mrb[44].mxu0  ;;  %v2149_v1 = vpop.eup %2148 }
 0x475   :  { %v1397_v12 = vadd.f32 %v1391_v11, %v1304_v9  ;;  %v2042_v13 = vpop.f32.mrb[45].mxu0  ;;  %v1438_v15 = vpop.f32.mrb[48].mxu1  ;;  %v1253_v26 = vadd.f32 1.0, %v2149_v1  ;;  %v1672_v1 = vld [vmem:[%s2670_s8 + $0x18] sm:$0xff] }
 0x476   :  { %2152 = vrcp.f32 %v1206_v8  ;;  %v1394_v16 = vpop.f32.mrb[46].mxu0  ;;  %v2048_v17 = vpop.f32.mrb[49].mxu1  ;;  %v1439_v20 = vadd.f32 %v2428_v49, %v1438_v15 }
 0x477   :  { %v1825_v18 = vmul.f32 -1.442695, %v1397_v12  ;;  %v2043_v22 = vpop.f32.mrb[47].mxu0  ;;  %v1441_v23 = vpop.f32.mrb[50].mxu1 }
 0x478   :  { %v2049_v24 = vpop.f32.mrb[51].mxu1 }
 0x479   :  { %2154 = vpow2.f32 %v1825_v18  ;;  %v1671_v24 = vld [vmem:[%s2670_s8 + $0x10] sm:$0xff] }
 0x47c   :  { %v2151_v25 = vpop.eup %2150 }
 0x47d   :  { %v1354_v30 = vadd.f32 1.0, %v2151_v25  ;;  %v1674_v25 = vpack.c.bf16 %v1672_v1, %v1671_v24 }
 0x47f   :  { %2156 = vrcp.f32 %v1354_v30  ;;  %2063 = vmatpush3.bf16.msra.mxu1 %v1674_v25 }
 0x480   :  { %v2153_v32 = vpop.eup %2152  ;;  %2158 = vrcp.f32 %v1253_v26  ;;  %2068 = vmatprep.subr.bf16.mxu1 %v2192_v3 }
 0x481   :  { %v1296_v33 = vmul.f32 %v2153_v32, %v1291_v10 }
 0x483   :  { %v2155_v36 = vpop.eup %2154  ;;  %v1297_v37 = vadd.f32 %v1296_v33, %v1157_v34 }
 0x484   :  { %v1401_v14 = vadd.f32 1.0, %v2155_v36 }
 0x485   :  { %2160 = vtanh.f32 %v1297_v37 }
 0x486   :  { %2162 = vrcp.f32 %v1401_v14 }
 0x489   :  { %v2157_v38 = vpop.eup %2156 }
 0x48a   :  { %v1444_v19 = vmul.f32 %v2157_v38, %v1439_v20  ;;  %v2159_v21 = vpop.eup %2158 }
 0x48b   :  { %v1299_v31 = vsub.f32 1.0, %v2159_v21  ;;  %v1301_v29 = vmul.f32 %v2159_v21, %v2527_v35  ;;  %v2590_v35 = vld [vmem:[#allocation3 + $0x8] sm:$0xff] }
 0x48c   :  { %v1445_v28 = vadd.f32 %v1444_v19, %v1305_v27  ;;  %v1468_v55 = vpack.c.bf16 %v2590_v35, %v2598_v54 }
 0x48e   :  { %2164 = vtanh.f32 %v1445_v28 }
 0x48f   :  { %v2161_v7 = vpop.eup %2160 }
 0x490   :  { %v1300_v40 = vmul.f32 %v2161_v7, %v1299_v31  ;;  %v2163_v43 = vpop.eup %2162 }
 0x491   :  { %v1447_v44 = vsub.f32 1.0, %v2163_v43  ;;  %v1449_v49 = vmul.f32 %v2163_v43, %v2544_v39  ;;  %v1471_v39 = vpack.c.bf16 %v2594_v53, %v2584_v48 }
 0x492   :  { %v1302_v42 = vadd.f32 %v1301_v29, %v1300_v40 }
 0x494   :  { %1452 = vst.msk [vmem:[#allocation3 + $0x18] sm:$0xff] %vm111_vm2, %v1302_v42 }
 0x498   :  { %v2165_v45 = vpop.eup %2164 }
 0x499   :  { %v1448_v46 = vmul.f32 %v2165_v45, %v1447_v44 }
 0x49b   :  { %v1450_v47 = vadd.f32 %v1449_v49, %v1448_v46  ;;  %v2606_v56 = vld [vmem:[#allocation3 + $0x18] sm:$0xff] }
 0x49c   :  { %v1469_v58 = vpack.c.bf16 %v2606_v56, %v2608_v57 }
 0x49d   :  { %1453 = vst.msk [vmem:[#allocation4] sm:$0xff] %vm111_vm2, %v1450_v47 }
 0x4a4   :  { %v2586_v50 = vld [vmem:[#allocation4] sm:$0xff] }
 0x4a5   :  { %v1470_v52 = vpack.c.bf16 %v2588_v51, %v2586_v50 }
 0x4a7   :  { %2052 = vmatprep.mubr.msk.bf16.mxu0 %vm111_vm2, %v1470_v52 }
 0x4a8   :  { %2053 = vmatmul.mubr.msk.bf16.vlgmr.msra.gmra.mrb[48].mxu0 %vm111_vm2, %v1471_v39 }
 0x4a9   :  { %2057 = vmatpush3.bf16.msra.mxu0 %v2575_v41  ;;  %2058 = vmatprep.mubr.msk.bf16.mxu0 %vm111_vm2, %v1468_v55 }
 0x4b4   :  { %2059 = vmatmul.mubr.msk.bf16.vlgmr.msra.gmra.mrb[48].mxu0 %vm111_vm2, %v1469_v58 }
 0x587   :  { %v2060_v60 = vpop.f32.mrb[48].mxu0 }
 0x588   :  { %v1591_v61 = vadd.f32 %v2060_v60, %v1831_v59  ;;  %v1567_v62 = vpop.f32.mrb[49].mxu0 }
 0x589   :  { %v1589_v63 = vadd.f32 %v1831_v59, %v1567_v62  ;;  %v2061_v41 = vpop.f32.mrb[50].mxu0 }
 0x58a   :  { %2166 = vtanh.f32 %v1591_v61  ;;  %v1570_v0 = vpop.f32.mrb[51].mxu0  ;;  %v1592_v2 = vadd.f32 %v2061_v41, %v1831_v59 }
 0x58b   :  { %2168 = vtanh.f32 %v1589_v63  ;;  %v1590_v4 = vadd.f32 %v1831_v59, %v1570_v0 }
 0x58d   :  { %2170 = vtanh.f32 %v1590_v4 }
 0x58e   :  { %2172 = vtanh.f32 %v1592_v2 }
 0x594   :  { %v2167_v6 = vpop.eup %2166 }
 0x595   :  { %v2169_v8 = vpop.eup %2168  ;;  %v1606_v15 = vmul.f32 %v2167_v6, %v1832_v5 }
 0x596   :  { %v1604_v9 = vmul.f32 %v2169_v8, %v1832_v5 }
 0x597   :  { %v2171_v11 = vpop.eup %2170  ;;  %v1614_v18 = vsel %vm55_vm1, %v1606_v15, 0.0 }
 0x598   :  { %v1608_v12 = vsel %vm55_vm1, %v1604_v9, 0.0  ;;  %v1605_v13 = vmul.f32 %v2171_v11, %v1832_v5  ;;  %v2173_v16 = vpop.eup %2172 }
 0x599   :  { %1609 = vadd.xlane.f32.xlu0 %v1608_v12  ;;  %v1607_v22 = vmul.f32 %v2173_v16, %v1832_v5 }
 0x59a   :  { %v1611_v17 = vsel %vm55_vm1, %v1605_v13, 0.0 }
 0x59b   :  { %1612 = vadd.xlane.f32.xlu1 %v1611_v17  ;;  %v1617_v23 = vsel %vm55_vm1, %v1607_v22, 0.0 }
 0x59d   :  { %1615 = vadd.xlane.f32.xlu0 %v1614_v18 }
 0x5a1   :  { %1618 = vadd.xlane.f32.xlu0 %v1617_v23 }
 0x626   :  { %v1610_v26 = vpop.xlane.xlu0 %1609 }
 0x627   :  { %2174 = vtanh.f32 %v1610_v26  ;;  %v1835_v26 = vld [vmem:[%s2671_s9] ss:$0 sm:$0xff] }
 0x628   :  { %v1613_v30 = vpop.xlane.xlu1 %1612 }
 0x629   :  { %2176 = vtanh.f32 %v1613_v30 }
 0x62a   :  { %v1616_v10 = vpop.xlane.xlu0 %1615 }
 0x62b   :  { %2178 = vtanh.f32 %v1616_v10 }
 0x62e   :  { %v1619_v32 = vpop.xlane.xlu0 %1618 }
 0x62f   :  { %2180 = vtanh.f32 %v1619_v32 }
 0x631   :  { %v2175_v33 = vpop.eup %2174 }
 0x633   :  { %v2177_v34 = vpop.eup %2176 }
 0x634   :  { %v1624_v14 = vmax.f32 %v2175_v33, %v2177_v34 }
 0x635   :  { %v2179_v36 = vpop.eup %2178 }
 0x639   :  { %v2181_v37 = vpop.eup %2180 }
 0x63a   :  { %v1625_v20 = vmax.f32 %v2179_v36, %v2181_v37 }
 0x63c   :  { %v1626_v38 = vmax.f32 %v1624_v14, %v1625_v20 }
 0x63e   :  { %v1627_v19 = vsub.f32 %v2175_v33, %v1626_v38  ;;  %v1628_v21 = vsub.f32 %v2177_v34, %v1626_v38  ;;  %v1629_v27 = vsub.f32 %v2179_v36, %v1626_v38  ;;  %v1630_v28 = vsub.f32 %v2181_v37, %v1626_v38 }
 0x640   :  { %v1631_v31 = vmul.f32 1.442695, %v1627_v19  ;;  %v1633_v7 = vmul.f32 1.442695, %v1628_v21  ;;  %v1635_v29 = vmul.f32 1.442695, %v1629_v27 }
 0x641   :  { %v1637_v40 = vmul.f32 1.442695, %v1630_v28 }
 0x642   :  { %2182 = vpow2.f32 %v1631_v31 }
 0x643   :  { %2184 = vpow2.f32 %v1633_v7 }
 0x644   :  { %2186 = vpow2.f32 %v1635_v29 }
 0x645   :  { %2188 = vpow2.f32 %v1637_v40 }
 0x64c   :  { %v2183_v42 = vpop.eup %2182 }
 0x64d   :  { %v2185_v43 = vpop.eup %2184 }
 0x64e   :  { %v1639_v44 = vadd.f32 %v2185_v43, %v2183_v42  ;;  %v2187_v45 = vpop.eup %2186 }
 0x64f   :  { %v2189_v46 = vpop.eup %2188 }
 0x650   :  { %v1640_v49 = vadd.f32 %v2187_v45, %v1639_v44 }
 0x652   :  { %v1641_v47 = vadd.f32 %v2189_v46, %v1640_v49 }
 0x654   :  { %2190 = vrcp.f32 %v1641_v47 }
 0x65e   :  { %v2191_v52 = vpop.eup %2190 }
 0x65f   :  { %v1643_v39 = vmul.f32 %v2191_v52, %v2183_v42  ;;  %v1644_v55 = vmul.f32 %v2191_v52, %v2185_v43  ;;  %v1645_v58 = vmul.f32 %v2191_v52, %v2187_v45  ;;  %v1646_v59 = vmul.f32 %v2191_v52, %v2189_v46 }
 0x661   :  { %v1658_v60 = vmul.f32 %v1643_v39, %v2586_v50  ;;  %v1659_v61 = vmul.f32 %v1644_v55, %v2588_v51  ;;  %v1660_v62 = vmul.f32 %v1645_v58, %v2584_v48  ;;  %v1647_v63 = vmul.f32 %v1643_v39, %v2598_v54 }
 0x662   :  { %v1648_v41 = vmul.f32 %v1644_v55, %v2590_v35  ;;  %v1661_v0 = vmul.f32 %v1646_v59, %v2594_v53  ;;  %v1649_v51 = vmul.f32 %v1645_v58, %v2608_v57  ;;  %v1669_v35 = vld [vmem:[%s2670_s8] sm:$0xff]  ;;  %v1670_v53 = vld [vmem:[%s2670_s8 + $0x8] sm:$0xff]  ;;  %v1650_v13 = vmul.f32 %v1646_v59, %v2606_v56 }
 0x663   :  { %v1662_v2 = vsel %vm111_vm2, %v1658_v60, 0.0  ;;  %v1663_v4 = vsel %vm111_vm2, %v1659_v61, 0.0  ;;  %v1651_v6 = vsel %vm111_vm2, %v1647_v63, 0.0  ;;  %v1665_v50 = vsel %vm111_vm2, %v1660_v62, 0.0 }
 0x664   :  { %v1664_v5 = vadd.f32 %v1663_v4, %v1662_v2  ;;  %v1652_v8 = vsel %vm111_vm2, %v1648_v41, 0.0  ;;  %v1667_v9 = vsel %vm111_vm2, %v1661_v0, 0.0  ;;  %v1673_v12 = vpack.c.bf16 %v1670_v53, %v1669_v35 }
 0x665   :  { %v1653_v54 = vadd.f32 %v1652_v8, %v1651_v6  ;;  %v1654_v15 = vsel %vm111_vm2, %v1649_v51, 0.0  ;;  %v1656_v17 = vsel %vm111_vm2, %v1650_v13, 0.0 }
 0x666   :  { %v1666_v48 = vadd.f32 %v1665_v50, %v1664_v5 }
 0x667   :  { %v1655_v57 = vadd.f32 %v1654_v15, %v1653_v54 }
 0x668   :  { %v1668_v11 = vadd.f32 %v1667_v9, %v1666_v48 }
 0x669   :  { %v1657_v18 = vadd.f32 %v1656_v17, %v1655_v57 }
 0x66a   :  { %v1676_v16 = vpack.c.bf16 %v1668_v11, %v1668_v11 }
 0x66b   :  { %v1675_v22 = vpack.c.bf16 %v1657_v18, %v1657_v18 }
 0x66c   :  { %2065 = vmatmul.mubr.msk.bf16.vlgmr.msra.gmra.mrb[52].mxu1 %vm111_vm2, %v1676_v16 }
 0x66d   :  { %2069 = vmatpush3.bf16.msra.mxu1 %v1673_v12  ;;  %2070 = vmatprep.mubr.msk.bf16.mxu1 %vm2193_vm0, %v2192_v3 }
 0x674   :  { %2071 = vmatmul.mubr.msk.bf16.vlgmr.msra.gmra.mrb[56].mxu1 %vm111_vm2, %v1675_v22 }
 0x73f   :  { %v1714_v23 = vpop.f32.mrb[52].mxu1 }
 0x740   :  { %v2066_v24 = vpop.f32.mrb[53].mxu1 }
 0x741   :  { %v1717_v1 = vpop.f32.mrb[54].mxu1 }
 0x742   :  { %v2067_v56 = vpop.f32.mrb[55].mxu1 }
 0x747   :  { %v1757_v25 = vpop.f32.mrb[56].mxu1 }
 0x748   :  { %v1758_v30 = vadd.f32 %v1757_v25, %v1714_v23  ;;  %v2072_v10 = vpop.f32.mrb[57].mxu1 }
 0x749   :  { %v1760_v32 = vpop.f32.mrb[58].mxu1 }
 0x74a   :  { %v1770_v3 = vadd.f32 %v1835_v26, %v1758_v30  ;;  %v2073_v33 = vpop.f32.mrb[59].mxu1 }
 0x74c   :  { %1772 = vst.msk [vmem:[%s2672_s10] sm:$0xff] %vm1771_vm3, %v1770_v3 }

// kernel: hiernet_forward.2
= control target key start
LH: loop header
LB: loop body
LE: loop exit
PB: predicated region body
PF: predicated region fallthrough
CT: control target
= control target key end

     0   :  { %v3909_v3 = vmov 0.0   ;;  %vm3910_vm0 = vmmov 0   ;;  %vm55_vm1 = vcmask 261120   ;;  %v3911_v25 = vmov 0   ;;  %s3913_s29 = smov 80   ;;  %s3914_s30 = smov 96   ;;  %s4724_s1 = inlined_call_operand.vmem [shape: f32[32,96], index: 1, kind: input, shape index: {}]   ;;  %s4725_s0 = inlined_call_operand.vmem [shape: f32[8,8,32], index: 0, kind: input, shape index: {}]   ;;  %s4726_s3 = inlined_call_operand.vmem [shape: f32[2,3,16,16], index: 3, kind: input, shape index: {}]   ;;  %s4727_s2 = inlined_call_operand.vmem [shape: f32[1,96], index: 2, kind: input, shape index: {}]   ;;  %s4728_s4 = inlined_call_operand.vmem [shape: f32[2,1,16], index: 4, kind: input, shape index: {}]   ;;  %s4729_s5 = inlined_call_operand.vmem [shape: f32[32,32], index: 5, kind: input, shape index: {}]   ;;  %s4730_s6 = inlined_call_operand.vmem [shape: f32[1,32], index: 6, kind: input, shape index: {}]   ;;  %s4731_s7 = inlined_call_operand.vmem [shape: f32[1,32], index: 7, kind: input, shape index: {}]   ;;  %s4732_s8 = inlined_call_operand.vmem [shape: f32[8,32], index: 8, kind: output, shape index: {}]  }
   0x1   :  { %v42_v0 = vld [vmem:[%s4724_s1] sm:$0xff]  ;;  %v43_v1 = vld [vmem:[%s4724_s1 + $0x8] sm:$0xff]  ;;  %v44_v2 = vld [vmem:[%s4724_s1 + $0x10] sm:$0xff]  ;;  %3372 = vmatprep.subr.bf16.mxu1 %v3909_v3  ;;  %3374 = vmatprep.mubr.msk.bf16.mxu1 %vm3910_vm0, %v3909_v3  ;;  %vm133_vm2 = vcmask 130048   ;;  %s3915_s9 = smov 112   ;;  %s3916_s10 = smov 48  }
   0x2   :  { %v46_v4 = vpack.c.bf16 %v43_v1, %v42_v0  ;;  %v45_v5 = vld [vmem:[%s4724_s1 + $0x18] sm:$0xff]  ;;  %v30_v6 = vld [vmem:[%s4725_s0] sm:$0xff]  ;;  %v31_v7 = vld [vmem:[%s4725_s0 + $0x8] sm:$0xff]  ;;  %vm3140_vm3 = vcmask 261248  }
   0x3   :  { %v47_v8 = vpack.c.bf16 %v45_v5, %v44_v2  ;;  %v38_v9 = vpack.c.bf16 %v31_v7, %v30_v6  ;;  %v32_v10 = vld [vmem:[%s4725_s0 + $0x10] sm:$0xff]  ;;  %v33_v11 = vld [vmem:[%s4725_s0 + $0x18] sm:$0xff]  ;;  %v315_v12 = vld [vmem:[%s4726_s3] sm:$0xff] }
   0x4   :  { %3360 = vmatprep.subr.bf16.mxu0 %v46_v4  ;;  %v316_v13 = vld [vmem:[%s4726_s3 + $0x8] sm:$0xff]  ;;  %v3151_v14 = vld [vmem:[%s4726_s3 + $0x10] sm:$0xff]  ;;  %v34_v15 = vld [vmem:[%s4725_s0 + $0x20] sm:$0xff]  ;;  %v39_v21 = vpack.c.bf16 %v33_v11, %v32_v10 }
   0x5   :  { %3361 = vmatpush3.bf16.msra.mxu0 %v46_v4  ;;  %3364 = vmatprep.mubr.msk.bf16.mxu0 %vm55_vm1, %v38_v9  ;;  %v35_v16 = vld [vmem:[%s4725_s0 + $0x28] sm:$0xff]  ;;  %v4006_v17 = vpack.c.bf16 %v316_v13, %v315_v12  ;;  %v3152_v18 = vld [vmem:[%s4726_s3 + $0x18] sm:$0xff]  ;;  %v3155_v19 = vld [vmem:[%s4726_s3 + $0x30] sm:$0xff] }
   0x6   :  { %3362 = vmatprep.subr.bf16.mxu0 %v47_v8  ;;  %v3156_v20 = vld [vmem:[%s4726_s3 + $0x38] sm:$0xff]  ;;  %v4018_v22 = vpack.c.bf16 %v3152_v18, %v3151_v14  ;;  %v40_v23 = vpack.c.bf16 %v35_v16, %v34_v15  ;;  %v36_v26 = vld [vmem:[%s4725_s0 + $0x30] sm:$0xff]  ;;  %v3153_v28 = vld [vmem:[%s4726_s3 + $0x20] sm:$0xff] }
   0x7   :  { %3373 = vmatpush3.bf16.msra.mxu1 %v4006_v17  ;;  %v4022_v24 = vpack.c.bf16 %v3156_v20, %v3155_v19  ;;  %v37_v27 = vld [vmem:[%s4725_s0 + $0x38] sm:$0xff]  ;;  %v3154_v29 = vld [vmem:[%s4726_s3 + $0x28] sm:$0xff]  ;;  %v3157_v32 = vld [vmem:[%s4726_s3 + $0x40] sm:$0xff] }
   0x8   :  { %3378 = vmatprep.subr.bf16.mxu1 %v3909_v3  ;;  %v41_v30 = vpack.c.bf16 %v37_v27, %v36_v26  ;;  %v4044_v31 = vpack.c.bf16 %v3154_v29, %v3153_v28  ;;  %v3158_v33 = vld [vmem:[%s4726_s3 + $0x48] sm:$0xff]  ;;  %v3159_v34 = vld [vmem:[%s4726_s3 + $0x50] sm:$0xff]  ;;  %v3160_v35 = vld [vmem:[%s4726_s3 + $0x58] sm:$0xff] }
   0x9   :  { %3363 = vmatpush3.bf16.msra.mxu0 %v47_v8  ;;  %v4065_v36 = vpack.c.bf16 %v3158_v33, %v3157_v32  ;;  %v4067_v37 = vpack.c.bf16 %v3160_v35, %v3159_v34  ;;  %v3146_v38 = vld [vmem:[%s4727_s2] ss:$0 sm:$0xff]  ;;  %s3912_s2 = smov 64  }
   0xa   :  { %3390 = vmatprep.subr.bf16.mxu0 %v3909_v3  ;;  %3375 = vmatmul.mubr.bf16.vlgmr.msra.gmra.mrb[0].mxu1 %v3911_v25  ;;  %v4155_v20 = vld [vmem:[%s4728_s4] ss:$0 sm:$0xff] }
   0xb   :  { %3379 = vmatpush3.bf16.msra.mxu1 %v4018_v22  ;;  %3380 = vmatprep.mubr.msk.bf16.mxu1 %vm3910_vm0, %v3909_v3 }
   0xc   :  { %3365 = vmatmul.mubr.msk.bf16.vlgmr.msra.gmra.mrb[0].mxu0 %vm55_vm1, %v39_v21  ;;  %3384 = vmatprep.subr.bf16.mxu1 %v3909_v3 }
   0xd   :  { %3368 = vmatprep.mubr.msk.bf16.mxu0 %vm55_vm1, %v40_v23  ;;  %3391 = vmatpush3.bf16.msra.mxu0 %v4022_v24 }
   0xe   :  { %3402 = vmatprep.subr.bf16.mxu0 %v3909_v3 }
  0x12   :  { %3381 = vmatmul.mubr.bf16.vlgmr.msra.gmra.mrb[4].mxu1 %v3911_v25 }
  0x13   :  { %3385 = vmatpush3.bf16.msra.mxu1 %v4044_v31  ;;  %3386 = vmatprep.mubr.msk.bf16.mxu1 %vm3910_vm0, %v3909_v3 }
  0x14   :  { %3369 = vmatmul.mubr.msk.bf16.gmra.mrb[4].mxu0 %vm55_vm1, %v41_v30  ;;  %3396 = vmatprep.subr.bf16.mxu1 %v3909_v3 }
  0x15   :  { %3392 = vmatprep.mubr.msk.bf16.mxu0 %vm3910_vm0, %v3909_v3 }
  0x1a   :  { %3387 = vmatmul.mubr.bf16.vlgmr.msra.gmra.mrb[8].mxu1 %v3911_v25 }
  0x1b   :  { %3397 = vmatpush3.bf16.msra.mxu1 %v4065_v36  ;;  %3398 = vmatprep.mubr.msk.bf16.mxu1 %vm3910_vm0, %v3909_v3 }
  0x1c   :  { %3393 = vmatmul.mubr.bf16.vlgmr.msra.gmra.mrb[8].mxu0 %v3911_v25  ;;  %3408 = vmatprep.subr.bf16.mxu1 %v3909_v3 }
  0x1d   :  { %3403 = vmatpush3.bf16.msra.mxu0 %v4067_v37  ;;  %3404 = vmatprep.mubr.msk.bf16.mxu0 %vm3910_vm0, %v3909_v3 }
  0x1e   :  { %3414 = vmatprep.subr.bf16.mxu0 %v3909_v3 }
  0x22   :  { %3399 = vmatmul.mubr.bf16.vlgmr.msra.gmra.mrb[12].mxu1 %v3911_v25 }
  0x23   :  { %3409 = vmatpush3.bf16.msra.mxu1 %v4006_v17  ;;  %3410 = vmatprep.mubr.msk.bf16.mxu1 %vm3910_vm0, %v3909_v3 }
  0x24   :  { %3405 = vmatmul.mubr.bf16.vlgmr.msra.gmra.mrb[12].mxu0 %v3911_v25  ;;  %3420 = vmatprep.subr.bf16.mxu1 %v3909_v3 }
  0x25   :  { %3415 = vmatpush3.bf16.msra.mxu0 %v4018_v22  ;;  %3416 = vmatprep.mubr.msk.bf16.mxu0 %vm3910_vm0, %v3909_v3 }
  0x26   :  { %3426 = vmatprep.subr.bf16.mxu0 %v3909_v3 }
  0xdd   :  { %v393_v39 = vpop.f32.mrb[0].mxu1 }
  0xde   :  { %v3376_v41 = vpop.f32.mrb[1].mxu1 }
  0xdf   :  { %v3366_v40 = vpop.f32.mrb[0].mxu0  ;;  %v396_v44 = vpop.f32.mrb[2].mxu1 }
  0xe0   :  { %v4088_v42 = vadd.f32 %v3366_v40, %v3146_v38  ;;  %v102_v43 = vpop.f32.mrb[1].mxu0  ;;  %v3377_v47 = vpop.f32.mrb[3].mxu1 }
  0xe1   :  { %v4090_v45 = vadd.f32 %v3146_v38, %v102_v43  ;;  %v3367_v46 = vpop.f32.mrb[2].mxu0 }
  0xe2   :  { %136 = vst.msk [vmem:[#allocation2 + $0x10] sm:$0xff] %vm133_vm2, %v4088_v42  ;;  %v4094_v48 = vadd.f32 %v3367_v46, %v3146_v38  ;;  %v105_v49 = vpop.f32.mrb[3].mxu0 }
  0xe3   :  { %134 = vst.msk [vmem:[#allocation2] sm:$0xff] %vm133_vm2, %v4090_v45  ;;  %v4098_v50 = vadd.f32 %v3146_v38, %v105_v49 }
  0xe4   :  { %137 = vst.msk [vmem:[#allocation2 + $0x18] sm:$0xff] %vm133_vm2, %v4094_v48 }
  0xe5   :  { %135 = vst.msk [vmem:[#allocation2 + $0x8] sm:$0xff] %vm133_vm2, %v4098_v50  ;;  %v4104_v51 = vpop.f32.mrb[4].mxu1 }
  0xe6   :  { %v3382_v53 = vpop.f32.mrb[5].mxu1 }
  0xe7   :  { %v3370_v52 = vpop.f32.mrb[4].mxu0  ;;  %v443_v56 = vpop.f32.mrb[6].mxu1 }
  0xe8   :  { %v4106_v54 = vadd.f32 %v3370_v52, %v3146_v38  ;;  %v118_v55 = vpop.f32.mrb[5].mxu0  ;;  %v3383_v59 = vpop.f32.mrb[7].mxu1 }
  0xe9   :  { %v4108_v57 = vadd.f32 %v3146_v38, %v118_v55  ;;  %v3371_v58 = vpop.f32.mrb[6].mxu0 }
  0xea   :  { %140 = vst.msk [vmem:[#allocation2 + $0x30] sm:$0xff] %vm133_vm2, %v4106_v54  ;;  %v4112_v60 = vadd.f32 %v3371_v58, %v3146_v38  ;;  %v121_v61 = vpop.f32.mrb[7].mxu0  ;;  %v353_v62 = vld [vmem:[#allocation2] sm:$0xff] }
  0xeb   :  { %138 = vst.msk [vmem:[#allocation2 + $0x20] sm:$0xff] %vm133_vm2, %v4108_v57  ;;  %v4116_v63 = vadd.f32 %v3146_v38, %v121_v61  ;;  %v399_v0 = vadd.f32 %v393_v39, %v353_v62 }
  0xec   :  { %141 = vst.msk [vmem:[#allocation2 + $0x38] sm:$0xff] %vm133_vm2, %v4112_v60  ;;  %263 = vrot.lane.b32.xlu1 %v4112_v60, %s3912_s2  ;;  %230 = vrot.lane.b32.xlu0 %v4112_v60, %s3913_s29 }
  0xed   :  { %139 = vst.msk [vmem:[#allocation2 + $0x28] sm:$0xff] %vm133_vm2, %v4116_v63  ;;  %v3164_v1 = vmul.f32 -1.442695, %v399_v0  ;;  %v487_v2 = vpop.f32.mrb[8].mxu1 }
  0xee   :  { %v3388_v4 = vpop.f32.mrb[9].mxu1  ;;  %v488_v25 = vadd.f32 %v4155_v20, %v487_v2 }
  0xef   :  { %3697 = vpow2.f32 %v3164_v1  ;;  %v4126_v5 = vpop.f32.mrb[8].mxu0  ;;  %v490_v6 = vpop.f32.mrb[10].mxu1 }
  0xf0   :  { %183 = vrot.lane.b32.xlu1 %v4090_v45, %s3914_s30  ;;  %150 = vrot.lane.b32.xlu0 %v4090_v45, %s3915_s9  ;;  %v3394_v7 = vpop.f32.mrb[9].mxu0  ;;  %v3389_v8 = vpop.f32.mrb[11].mxu1 }
  0xf1   :  { %v543_v9 = vpop.f32.mrb[10].mxu0 }
  0xf2   :  { %v3395_v10 = vpop.f32.mrb[11].mxu0 }
  0xf4   :  { %228 = vrot.lane.b32.xlu1 %v4106_v54, %s3913_s29  ;;  %296 = vrot.lane.b32.xlu0 %v4112_v60, %s3916_s10 }
  0xf5   :  { %v4136_v11 = vpop.f32.mrb[12].mxu1 }
  0xf6   :  { %v3400_v12 = vpop.f32.mrb[13].mxu1 }
  0xf7   :  { %v590_v13 = vpop.f32.mrb[14].mxu1  ;;  %v4146_v18 = vpop.f32.mrb[12].mxu0 }
  0xf8   :  { %261 = vrot.lane.b32.xlu1 %v4106_v54, %s3912_s2  ;;  %152 = vrot.lane.b32.xlu0 %v4098_v50, %s3915_s9  ;;  %v3401_v15 = vpop.f32.mrb[15].mxu1  ;;  %v3406_v19 = vpop.f32.mrb[13].mxu0 }
  0xf9   :  { %v3698_v14 = vpop.eup %3697  ;;  %v637_v21 = vpop.f32.mrb[14].mxu0 }
  0xfa   :  { %v403_v16 = vadd.f32 1.0, %v3698_v14  ;;  %v3407_v23 = vpop.f32.mrb[15].mxu0 }
  0xfc   :  { %3699 = vrcp.f32 %v403_v16  ;;  %294 = vrot.lane.b32.xlu1 %v4106_v54, %s3916_s10  ;;  %185 = vrot.lane.b32.xlu0 %v4098_v50, %s3914_s30 }
 0x100   :  { %154 = vrot.lane.b32.xlu1 %v4088_v42, %s3915_s9  ;;  %226 = vrot.lane.b32.xlu0 %v4116_v63, %s3913_s29 }
 0x104   :  { %187 = vrot.lane.b32.xlu1 %v4088_v42, %s3914_s30  ;;  %259 = vrot.lane.b32.xlu0 %v4116_v63, %s3912_s2 }
 0x106   :  { %v3700_v26 = vpop.eup %3699 }
 0x107   :  { %v4162_v27 = vmul.f32 %v3700_v26, %v488_v25 }
 0x108   :  { %224 = vrot.lane.b32.xlu1 %v4108_v57, %s3913_s29  ;;  %292 = vrot.lane.b32.xlu0 %v4116_v63, %s3916_s10 }
 0x10c   :  { %257 = vrot.lane.b32.xlu1 %v4108_v57, %s3912_s2  ;;  %156 = vrot.lane.b32.xlu0 %v4094_v48, %s3915_s9 }
 0x110   :  { %290 = vrot.lane.b32.xlu1 %v4108_v57, %s3916_s10  ;;  %189 = vrot.lane.b32.xlu0 %v4094_v48, %s3914_s30 }
 0x114   :  { %158 = vrot.lane.b32.xlu1 %v4108_v57, %s3915_s9  ;;  %222 = vrot.lane.b32.xlu0 %v4094_v48, %s3913_s29 }
 0x118   :  { %191 = vrot.lane.b32.xlu1 %v4108_v57, %s3914_s30  ;;  %255 = vrot.lane.b32.xlu0 %v4094_v48, %s3912_s2 }
 0x11c   :  { %220 = vrot.lane.b32.xlu1 %v4088_v42, %s3913_s29  ;;  %288 = vrot.lane.b32.xlu0 %v4094_v48, %s3916_s10 }
 0x120   :  { %253 = vrot.lane.b32.xlu1 %v4088_v42, %s3912_s2  ;;  %160 = vrot.lane.b32.xlu0 %v4116_v63, %s3915_s9 }
 0x124   :  { %286 = vrot.lane.b32.xlu1 %v4088_v42, %s3916_s10  ;;  %193 = vrot.lane.b32.xlu0 %v4116_v63, %s3914_s30  ;;  %v4239_v63 = vld [vmem:[%s4728_s4 + $0x1] ss:$0 sm:$0xff] }
 0x125   :  { %v635_v4 = vadd.f32 %v4239_v63, %v4146_v18 }
 0x128   :  { %162 = vrot.lane.b32.xlu1 %v4106_v54, %s3915_s9  ;;  %218 = vrot.lane.b32.xlu0 %v4098_v50, %s3913_s29 }
 0x12c   :  { %195 = vrot.lane.b32.xlu1 %v4106_v54, %s3914_s30  ;;  %251 = vrot.lane.b32.xlu0 %v4098_v50, %s3912_s2 }
 0x130   :  { %216 = vrot.lane.b32.xlu1 %v4090_v45, %s3913_s29  ;;  %284 = vrot.lane.b32.xlu0 %v4098_v50, %s3916_s10 }
 0x134   :  { %164 = vrot.lane.b32.xlu1 %v4112_v60, %s3915_s9  ;;  %249 = vrot.lane.b32.xlu0 %v4090_v45, %s3912_s2 }
 0x138   :  { %197 = vrot.lane.b32.xlu1 %v4112_v60, %s3914_s30  ;;  %282 = vrot.lane.b32.xlu0 %v4090_v45, %s3916_s10 }
 0x15e   :  { %v264_v28 = vpop.permute.xlu1 %263  ;;  %v231_v29 = vpop.permute.xlu0 %230 }
 0x15f   :  { %281 = vst.msk [vmem:[#allocation2 + $0x138] sm:$0xff] %vm133_vm2, %v264_v28  ;;  %248 = vst.msk [vmem:[#allocation2 + $0xf8] sm:$0xff] %vm133_vm2, %v231_v29 }
 0x162   :  { %v184_v30 = vpop.permute.xlu1 %183  ;;  %v151_v32 = vpop.permute.xlu0 %150 }
 0x163   :  { %208 = vst.msk [vmem:[#allocation2 + $0x80] sm:$0xff] %vm133_vm2, %v184_v30  ;;  %175 = vst.msk [vmem:[#allocation2 + $0x40] sm:$0xff] %vm133_vm2, %v151_v32 }
 0x166   :  { %v501_v33 = vld [vmem:[#allocation2 + $0xf8] sm:$0xff]  ;;  %v229_v34 = vpop.permute.xlu1 %228  ;;  %v297_v35 = vpop.permute.xlu0 %296 }
 0x167   :  { %v546_v38 = vadd.f32 %v4126_v5, %v501_v33  ;;  %v503_v39 = vld [vmem:[#allocation2 + $0x138] sm:$0xff]  ;;  %247 = vst.msk [vmem:[#allocation2 + $0xf0] sm:$0xff] %vm133_vm2, %v229_v34  ;;  %314 = vst.msk [vmem:[#allocation2 + $0x178] sm:$0xff] %vm133_vm2, %v297_v35 }
 0x168   :  { %v593_v42 = vadd.f32 %v4136_v11, %v503_v39 }
 0x169   :  { %v3166_v40 = vmul.f32 -1.442695, %v546_v38 }
 0x16a   :  { %v354_v41 = vld [vmem:[#allocation2 + $0x40] sm:$0xff]  ;;  %v262_v43 = vpop.permute.xlu1 %261  ;;  %v153_v44 = vpop.permute.xlu0 %152  ;;  %v3167_v47 = vmul.f32 -1.442695, %v593_v42 }
 0x16b   :  { %v446_v45 = vadd.f32 %v4104_v51, %v354_v41  ;;  %3701 = vpow2.f32 %v3166_v40  ;;  %280 = vst.msk [vmem:[#allocation2 + $0x130] sm:$0xff] %vm133_vm2, %v262_v43  ;;  %176 = vst.msk [vmem:[#allocation2 + $0x48] sm:$0xff] %vm133_vm2, %v153_v44  ;;  %v355_v56 = vld [vmem:[#allocation2 + $0x80] sm:$0xff] }
 0x16c   :  { %v494_v61 = vadd.f32 %v4162_v27, %v355_v56 }
 0x16d   :  { %v3165_v46 = vmul.f32 -1.442695, %v446_v45 }
 0x16e   :  { %v295_v48 = vpop.permute.xlu1 %294  ;;  %v186_v49 = vpop.permute.xlu0 %185  ;;  %v505_v9 = vld [vmem:[#allocation2 + $0x178] sm:$0xff] }
 0x16f   :  { %313 = vst.msk [vmem:[#allocation2 + $0x170] sm:$0xff] %vm133_vm2, %v295_v48  ;;  %209 = vst.msk [vmem:[#allocation2 + $0x88] sm:$0xff] %vm133_vm2, %v186_v49  ;;  %3703 = vpow2.f32 %v3165_v46 }
 0x170   :  { %3705 = vpow2.f32 %v3167_v47 }
 0x172   :  { %v155_v50 = vpop.permute.xlu1 %154  ;;  %v227_v52 = vpop.permute.xlu0 %226 }
 0x173   :  { %177 = vst.msk [vmem:[#allocation2 + $0x50] sm:$0xff] %vm133_vm2, %v155_v50  ;;  %246 = vst.msk [vmem:[#allocation2 + $0xe8] sm:$0xff] %vm133_vm2, %v227_v52 }
 0x175   :  { %v3702_v51 = vpop.eup %3701 }
 0x176   :  { %v550_v53 = vadd.f32 1.0, %v3702_v51  ;;  %v188_v54 = vpop.permute.xlu1 %187  ;;  %v260_v55 = vpop.permute.xlu0 %259  ;;  %v651_v51 = vld [vmem:[#allocation2 + $0x8] sm:$0xff] }
 0x177   :  { %210 = vst.msk [vmem:[#allocation2 + $0x90] sm:$0xff] %vm133_vm2, %v188_v54  ;;  %279 = vst.msk [vmem:[#allocation2 + $0x128] sm:$0xff] %vm133_vm2, %v260_v55 }
 0x178   :  { %3707 = vrcp.f32 %v550_v53 }
 0x179   :  { %v3704_v57 = vpop.eup %3703 }
 0x17a   :  { %v225_v58 = vpop.permute.xlu1 %224  ;;  %v293_v59 = vpop.permute.xlu0 %292  ;;  %v450_v60 = vadd.f32 1.0, %v3704_v57 }
 0x17b   :  { %245 = vst.msk [vmem:[#allocation2 + $0xe0] sm:$0xff] %vm133_vm2, %v225_v58  ;;  %312 = vst.msk [vmem:[#allocation2 + $0x168] sm:$0xff] %vm133_vm2, %v293_v59  ;;  %v3706_v62 = vpop.eup %3705 }
 0x17c   :  { %3709 = vrcp.f32 %v450_v60  ;;  %v597_v2 = vadd.f32 1.0, %v3706_v62 }
 0x17d   :  { %3711 = vtanh.f32 %v494_v61  ;;  %v653_v61 = vld [vmem:[#allocation2 + $0x48] sm:$0xff] }
 0x17e   :  { %v258_v0 = vpop.permute.xlu1 %257  ;;  %v157_v1 = vpop.permute.xlu0 %156  ;;  %3713 = vrcp.f32 %v597_v2 }
 0x17f   :  { %278 = vst.msk [vmem:[#allocation2 + $0x120] sm:$0xff] %vm133_vm2, %v258_v0  ;;  %178 = vst.msk [vmem:[#allocation2 + $0x58] sm:$0xff] %vm133_vm2, %v157_v1 }
 0x182   :  { %v3708_v5 = vpop.eup %3707  ;;  %v291_v6 = vpop.permute.xlu1 %290 }
 0x183   :  { %v190_v7 = vpop.permute.xlu0 %189  ;;  %v640_v8 = vmul.f32 %v3708_v5, %v635_v4  ;;  %311 = vst.msk [vmem:[#allocation2 + $0x160] sm:$0xff] %vm133_vm2, %v291_v6  ;;  %v802_v6 = vld [vmem:[#allocation2 + $0xf0] sm:$0xff] }
 0x184   :  { %211 = vst.msk [vmem:[#allocation2 + $0x98] sm:$0xff] %vm133_vm2, %v190_v7 }
 0x185   :  { %v641_v10 = vadd.f32 %v640_v8, %v505_v9 }
 0x186   :  { %v3710_v11 = vpop.eup %3709  ;;  %v159_v12 = vpop.permute.xlu1 %158 }
 0x187   :  { %v223_v13 = vpop.permute.xlu0 %222  ;;  %3715 = vtanh.f32 %v641_v10  ;;  %179 = vst.msk [vmem:[#allocation2 + $0x60] sm:$0xff] %vm133_vm2, %v159_v12  ;;  %v496_v14 = vsub.f32 1.0, %v3710_v11  ;;  %v3712_v15 = vpop.eup %3711  ;;  %v498_v18 = vmul.f32 0.0, %v3710_v11 }
 0x188   :  { %244 = vst.msk [vmem:[#allocation2 + $0xd8] sm:$0xff] %vm133_vm2, %v223_v13  ;;  %v3714_v25 = vpop.eup %3713 }
 0x189   :  { %v497_v16 = vmul.f32 %v3712_v15, %v496_v14  ;;  %v643_v29 = vsub.f32 1.0, %v3714_v25  ;;  %v645_v32 = vmul.f32 0.0, %v3714_v25 }
 0x18a   :  { %v192_v19 = vpop.permute.xlu1 %191 }
 0x18b   :  { %v256_v21 = vpop.permute.xlu0 %255  ;;  %212 = vst.msk [vmem:[#allocation2 + $0xa0] sm:$0xff] %vm133_vm2, %v192_v19  ;;  %v4251_v23 = vadd.f32 %v498_v18, %v497_v16  ;;  %v804_v18 = vld [vmem:[#allocation2 + $0x130] sm:$0xff] }
 0x18c   :  { %277 = vst.msk [vmem:[#allocation2 + $0x118] sm:$0xff] %vm133_vm2, %v256_v21 }
 0x18d   :  { %647 = vst.msk [vmem:[#allocation3] sm:$0xff] %vm133_vm2, %v4251_v23  ;;  %v656_v26 = vpack.c.bf16 %v4251_v23, %v4251_v23 }
 0x18e   :  { %v221_v27 = vpop.permute.xlu1 %220 }
 0x18f   :  { %v289_v28 = vpop.permute.xlu0 %288  ;;  %243 = vst.msk [vmem:[#allocation2 + $0xd0] sm:$0xff] %vm133_vm2, %v221_v27  ;;  %3411 = vmatmul.mubr.msk.bf16.vlgmr.msra.gmra.mrb[16].mxu1 %vm133_vm2, %v656_v26  ;;  %3417 = vmatmul.mubr.msk.bf16.vlgmr.msra.gmra.mrb[16].mxu0 %vm133_vm2, %v656_v26 }
 0x190   :  { %310 = vst.msk [vmem:[#allocation2 + $0x158] sm:$0xff] %vm133_vm2, %v289_v28  ;;  %3427 = vmatpush3.bf16.msra.mxu0 %v4022_v24  ;;  %3421 = vmatpush3.bf16.msra.mxu1 %v4044_v31 }
 0x191   :  { %v3716_v30 = vpop.eup %3715  ;;  %3422 = vmatprep.mubr.msk.bf16.mxu1 %vm3910_vm0, %v3909_v3  ;;  %3428 = vmatprep.mubr.msk.bf16.mxu0 %vm3910_vm0, %v3909_v3 }
 0x192   :  { %v644_v33 = vmul.f32 %v3716_v30, %v643_v29  ;;  %v254_v34 = vpop.permute.xlu1 %253  ;;  %3432 = vmatprep.subr.bf16.mxu1 %v3909_v3  ;;  %3438 = vmatprep.subr.bf16.mxu0 %v3909_v3 }
 0x193   :  { %v161_v35 = vpop.permute.xlu0 %160  ;;  %276 = vst.msk [vmem:[#allocation2 + $0x110] sm:$0xff] %vm133_vm2, %v254_v34 }
 0x194   :  { %180 = vst.msk [vmem:[#allocation2 + $0x68] sm:$0xff] %vm133_vm2, %v161_v35  ;;  %v4271_v38 = vadd.f32 %v645_v32, %v644_v33 }
 0x196   :  { %v287_v39 = vpop.permute.xlu1 %286  ;;  %649 = vst.msk [vmem:[#allocation4 + $0x38] sm:$0xff] %vm133_vm2, %v4271_v38  ;;  %v807_v41 = vpack.c.bf16 %v4271_v38, %v4271_v38 }
 0x197   :  { %v194_v40 = vpop.permute.xlu0 %193  ;;  %309 = vst.msk [vmem:[#allocation2 + $0x150] sm:$0xff] %vm133_vm2, %v287_v39  ;;  %3423 = vmatmul.mubr.msk.bf16.vlgmr.msra.gmra.mrb[20].mxu1 %vm133_vm2, %v656_v26 }
 0x198   :  { %213 = vst.msk [vmem:[#allocation2 + $0xa8] sm:$0xff] %vm133_vm2, %v194_v40  ;;  %3429 = vmatmul.mubr.msk.bf16.vlgmr.msra.gmra.mrb[20].mxu0 %vm133_vm2, %v807_v41  ;;  %3433 = vmatpush3.bf16.msra.mxu1 %v4065_v36 }
 0x199   :  { %3439 = vmatpush3.bf16.msra.mxu0 %v4067_v37  ;;  %3434 = vmatprep.mubr.msk.bf16.mxu1 %vm3910_vm0, %v3909_v3 }
 0x19a   :  { %v163_v42 = vpop.permute.xlu1 %162  ;;  %3440 = vmatprep.mubr.msk.bf16.mxu0 %vm3910_vm0, %v3909_v3  ;;  %3444 = vmatprep.subr.bf16.mxu1 %v3909_v3 }
 0x19b   :  { %v219_v43 = vpop.permute.xlu0 %218  ;;  %181 = vst.msk [vmem:[#allocation2 + $0x70] sm:$0xff] %vm133_vm2, %v163_v42  ;;  %3450 = vmatprep.subr.bf16.mxu0 %v3909_v3 }
 0x19c   :  { %242 = vst.msk [vmem:[#allocation2 + $0xc8] sm:$0xff] %vm133_vm2, %v219_v43 }
 0x19e   :  { %v196_v44 = vpop.permute.xlu1 %195 }
 0x19f   :  { %v252_v45 = vpop.permute.xlu0 %251  ;;  %214 = vst.msk [vmem:[#allocation2 + $0xb0] sm:$0xff] %vm133_vm2, %v196_v44  ;;  %3435 = vmatmul.mubr.msk.bf16.vlgmr.msra.gmra.mrb[24].mxu1 %vm133_vm2, %v807_v41  ;;  %v655_v44 = vld [vmem:[#allocation2 + $0x88] sm:$0xff] }
 0x1a0   :  { %275 = vst.msk [vmem:[#allocation2 + $0x108] sm:$0xff] %vm133_vm2, %v252_v45  ;;  %3441 = vmatmul.mubr.msk.bf16.vlgmr.msra.gmra.mrb[24].mxu0 %vm133_vm2, %v807_v41  ;;  %3445 = vmatpush3.bf16.msra.mxu1 %v4006_v17 }
 0x1a1   :  { %3451 = vmatpush3.bf16.msra.mxu0 %v4018_v22  ;;  %3446 = vmatprep.mubr.msk.bf16.mxu1 %vm3910_vm0, %v3909_v3 }
 0x1a2   :  { %v217_v46 = vpop.permute.xlu1 %216  ;;  %3452 = vmatprep.mubr.msk.bf16.mxu0 %vm3910_vm0, %v3909_v3  ;;  %3462 = vmatprep.subr.bf16.mxu0 %v3909_v3 }
 0x1a3   :  { %v285_v47 = vpop.permute.xlu0 %284  ;;  %241 = vst.msk [vmem:[#allocation2 + $0xc0] sm:$0xff] %vm133_vm2, %v217_v46  ;;  %3456 = vmatprep.subr.bf16.mxu1 %v3909_v3 }
 0x1a4   :  { %308 = vst.msk [vmem:[#allocation2 + $0x148] sm:$0xff] %vm133_vm2, %v285_v47 }
 0x1a6   :  { %v165_v48 = vpop.permute.xlu1 %164 }
 0x1a7   :  { %v250_v49 = vpop.permute.xlu0 %249  ;;  %182 = vst.msk [vmem:[#allocation2 + $0x78] sm:$0xff] %vm133_vm2, %v165_v48 }
 0x1a8   :  { %274 = vst.msk [vmem:[#allocation2 + $0x100] sm:$0xff] %vm133_vm2, %v250_v49 }
 0x1aa   :  { %v198_v50 = vpop.permute.xlu1 %197 }
 0x1ab   :  { %v283_v52 = vpop.permute.xlu0 %282  ;;  %215 = vst.msk [vmem:[#allocation2 + $0xb8] sm:$0xff] %vm133_vm2, %v198_v50 }
 0x1ac   :  { %307 = vst.msk [vmem:[#allocation2 + $0x140] sm:$0xff] %vm133_vm2, %v283_v52 }
 0x262   :  { %v694_v53 = vpop.f32.mrb[16].mxu1  ;;  %v741_v54 = vpop.f32.mrb[16].mxu0 }
 0x263   :  { %v700_v55 = vadd.f32 %v694_v53, %v651_v51  ;;  %v3412_v56 = vpop.f32.mrb[17].mxu1  ;;  %v3418_v57 = vpop.f32.mrb[17].mxu0  ;;  %v747_v1 = vadd.f32 %v741_v54, %v653_v61  ;;  %v806_v51 = vld [vmem:[#allocation2 + $0x170] sm:$0xff] }
 0x264   :  { %v697_v58 = vpop.f32.mrb[18].mxu1  ;;  %v744_v59 = vpop.f32.mrb[18].mxu0 }
 0x265   :  { %v3169_v60 = vmul.f32 -1.442695, %v700_v55  ;;  %v3413_v62 = vpop.f32.mrb[19].mxu1  ;;  %v3419_v0 = vpop.f32.mrb[19].mxu0  ;;  %v3171_v2 = vmul.f32 -1.442695, %v747_v1 }
 0x267   :  { %3717 = vpow2.f32 %v3169_v60 }
 0x268   :  { %3719 = vpow2.f32 %v3171_v2 }
 0x26a   :  { %v788_v4 = vpop.f32.mrb[20].mxu1 }
 0x26b   :  { %v3424_v5 = vpop.f32.mrb[21].mxu1  ;;  %v845_v7 = vpop.f32.mrb[20].mxu0  ;;  %v789_v41 = vadd.f32 %v4155_v20, %v788_v4 }
 0x26c   :  { %v851_v8 = vadd.f32 %v845_v7, %v802_v6  ;;  %v791_v9 = vpop.f32.mrb[22].mxu1  ;;  %v3430_v10 = vpop.f32.mrb[21].mxu0 }
 0x26d   :  { %v3425_v11 = vpop.f32.mrb[23].mxu1  ;;  %v848_v12 = vpop.f32.mrb[22].mxu0 }
 0x26e   :  { %v3174_v13 = vmul.f32 -1.442695, %v851_v8  ;;  %v3431_v14 = vpop.f32.mrb[23].mxu0  ;;  %v959_v12 = vld [vmem:[#allocation2 + $0x50] sm:$0xff] }
 0x270   :  { %3721 = vpow2.f32 %v3174_v13 }
 0x271   :  { %v3718_v15 = vpop.eup %3717 }
 0x272   :  { %v704_v16 = vadd.f32 1.0, %v3718_v15  ;;  %v892_v19 = vpop.f32.mrb[24].mxu1  ;;  %v3720_v34 = vpop.eup %3719 }
 0x273   :  { %v898_v21 = vadd.f32 %v892_v19, %v804_v18  ;;  %v3436_v25 = vpop.f32.mrb[25].mxu1  ;;  %v939_v26 = vpop.f32.mrb[24].mxu0  ;;  %v751_v39 = vadd.f32 1.0, %v3720_v34 }
 0x274   :  { %3723 = vrcp.f32 %v704_v16  ;;  %v895_v27 = vpop.f32.mrb[26].mxu1  ;;  %v3442_v28 = vpop.f32.mrb[25].mxu0  ;;  %v940_v48 = vadd.f32 %v4239_v63, %v939_v26 }
 0x275   :  { %v3176_v29 = vmul.f32 -1.442695, %v898_v21  ;;  %v3437_v30 = vpop.f32.mrb[27].mxu1  ;;  %v942_v32 = vpop.f32.mrb[26].mxu0  ;;  %v1108_v21 = vld [vmem:[#allocation2 + $0xe8] sm:$0xff] }
 0x276   :  { %v3443_v33 = vpop.f32.mrb[27].mxu0 }
 0x277   :  { %3725 = vpow2.f32 %v3176_v29 }
 0x27a   :  { %v3722_v35 = vpop.eup %3721 }
 0x27b   :  { %v855_v40 = vadd.f32 1.0, %v3722_v35 }
 0x27d   :  { %3727 = vrcp.f32 %v855_v40 }
 0x27e   :  { %v3724_v42 = vpop.eup %3723  ;;  %3729 = vrcp.f32 %v751_v39  ;;  %v1110_v39 = vld [vmem:[#allocation2 + $0x128] sm:$0xff] }
 0x27f   :  { %v794_v43 = vmul.f32 %v3724_v42, %v789_v41 }
 0x281   :  { %v3726_v45 = vpop.eup %3725  ;;  %v795_v46 = vadd.f32 %v794_v43, %v655_v44 }
 0x282   :  { %v902_v47 = vadd.f32 1.0, %v3726_v45 }
 0x283   :  { %3731 = vtanh.f32 %v795_v46 }
 0x284   :  { %3733 = vrcp.f32 %v902_v47 }
 0x287   :  { %v3728_v49 = vpop.eup %3727 }
 0x288   :  { %v945_v50 = vmul.f32 %v3728_v49, %v940_v48  ;;  %v3730_v52 = vpop.eup %3729 }
 0x289   :  { %v797_v54 = vsub.f32 1.0, %v3730_v52  ;;  %v799_v56 = vmul.f32 %v3730_v52, %v4251_v23 }
 0x28a   :  { %v946_v53 = vadd.f32 %v945_v50, %v806_v51 }
 0x28c   :  { %3735 = vtanh.f32 %v946_v53 }
 0x28d   :  { %v3732_v55 = vpop.eup %3731 }
 0x28e   :  { %v798_v57 = vmul.f32 %v3732_v55, %v797_v54  ;;  %v3734_v59 = vpop.eup %3733 }
 0x28f   :  { %v948_v61 = vsub.f32 1.0, %v3734_v59  ;;  %v950_v62 = vmul.f32 %v3734_v59, %v4271_v38  ;;  %v957_v38 = vld [vmem:[#allocation2 + $0x10] sm:$0xff] }
 0x290   :  { %v4312_v58 = vadd.f32 %v799_v56, %v798_v57  ;;  %v961_v57 = vld [vmem:[#allocation2 + $0x90] sm:$0xff] }
 0x292   :  { %953 = vst.msk [vmem:[#allocation3 + $0x8] sm:$0xff] %vm133_vm2, %v4312_v58  ;;  %v962_v60 = vpack.c.bf16 %v4312_v58, %v4312_v58 }
 0x294   :  { %3447 = vmatmul.mubr.msk.bf16.vlgmr.msra.gmra.mrb[28].mxu1 %vm133_vm2, %v962_v60  ;;  %3453 = vmatmul.mubr.msk.bf16.vlgmr.msra.gmra.mrb[28].mxu0 %vm133_vm2, %v962_v60 }
 0x295   :  { %3463 = vmatpush3.bf16.msra.mxu0 %v4022_v24  ;;  %3457 = vmatpush3.bf16.msra.mxu1 %v4044_v31 }
 0x296   :  { %v3736_v23 = vpop.eup %3735  ;;  %3458 = vmatprep.mubr.msk.bf16.mxu1 %vm3910_vm0, %v3909_v3  ;;  %3464 = vmatprep.mubr.msk.bf16.mxu0 %vm3910_vm0, %v3909_v3 }
 0x297   :  { %v949_v0 = vmul.f32 %v3736_v23, %v948_v61  ;;  %3468 = vmatprep.subr.bf16.mxu1 %v3909_v3  ;;  %3474 = vmatprep.subr.bf16.mxu0 %v3909_v3 }
 0x299   :  { %v4329_v1 = vadd.f32 %v950_v62, %v949_v0 }
 0x29b   :  { %955 = vst.msk [vmem:[#allocation4 + $0x30] sm:$0xff] %vm133_vm2, %v4329_v1  ;;  %v1113_v2 = vpack.c.bf16 %v4329_v1, %v4329_v1 }
 0x29c   :  { %3459 = vmatmul.mubr.msk.bf16.vlgmr.msra.gmra.mrb[32].mxu1 %vm133_vm2, %v962_v60 }
 0x29d   :  { %3465 = vmatmul.mubr.msk.bf16.vlgmr.msra.gmra.mrb[32].mxu0 %vm133_vm2, %v1113_v2  ;;  %3469 = vmatpush3.bf16.msra.mxu1 %v4065_v36 }
 0x29e   :  { %3475 = vmatpush3.bf16.msra.mxu0 %v4067_v37  ;;  %3470 = vmatprep.mubr.msk.bf16.mxu1 %vm3910_vm0, %v3909_v3 }
 0x29f   :  { %3476 = vmatprep.mubr.msk.bf16.mxu0 %vm3910_vm0, %v3909_v3  ;;  %3480 = vmatprep.subr.bf16.mxu1 %v3909_v3 }
 0x2a0   :  { %3486 = vmatprep.subr.bf16.mxu0 %v3909_v3 }
 0x2a4   :  { %3471 = vmatmul.mubr.msk.bf16.vlgmr.msra.gmra.mrb[36].mxu1 %vm133_vm2, %v1113_v2 }
 0x2a5   :  { %3477 = vmatmul.mubr.msk.bf16.vlgmr.msra.gmra.mrb[36].mxu0 %vm133_vm2, %v1113_v2  ;;  %3481 = vmatpush3.bf16.msra.mxu1 %v4006_v17 }
 0x2a6   :  { %3487 = vmatpush3.bf16.msra.mxu0 %v4018_v22  ;;  %3482 = vmatprep.mubr.msk.bf16.mxu1 %vm3910_vm0, %v3909_v3 }
 0x2a7   :  { %3488 = vmatprep.mubr.msk.bf16.mxu0 %vm3910_vm0, %v3909_v3  ;;  %3498 = vmatprep.subr.bf16.mxu0 %v3909_v3 }
 0x2a8   :  { %3492 = vmatprep.subr.bf16.mxu1 %v3909_v3 }
 0x367   :  { %v1000_v4 = vpop.f32.mrb[28].mxu1  ;;  %v1047_v5 = vpop.f32.mrb[28].mxu0 }
 0x368   :  { %v1006_v6 = vadd.f32 %v1000_v4, %v957_v38  ;;  %v3448_v7 = vpop.f32.mrb[29].mxu1  ;;  %v3454_v8 = vpop.f32.mrb[29].mxu0  ;;  %v1053_v15 = vadd.f32 %v1047_v5, %v959_v12  ;;  %v1112_v38 = vld [vmem:[#allocation2 + $0x168] sm:$0xff] }
 0x369   :  { %v1003_v9 = vpop.f32.mrb[30].mxu1  ;;  %v1050_v10 = vpop.f32.mrb[30].mxu0 }
 0x36a   :  { %v3179_v11 = vmul.f32 -1.442695, %v1006_v6  ;;  %v3449_v13 = vpop.f32.mrb[31].mxu1  ;;  %v3455_v14 = vpop.f32.mrb[31].mxu0  ;;  %v3181_v16 = vmul.f32 -1.442695, %v1053_v15 }
 0x36c   :  { %3737 = vpow2.f32 %v3179_v11 }
 0x36d   :  { %3739 = vpow2.f32 %v3181_v16 }
 0x36f   :  { %v1094_v18 = vpop.f32.mrb[32].mxu1 }
 0x370   :  { %v3460_v19 = vpop.f32.mrb[33].mxu1  ;;  %v1151_v25 = vpop.f32.mrb[32].mxu0  ;;  %v1095_v54 = vadd.f32 %v4155_v20, %v1094_v18 }
 0x371   :  { %v1157_v26 = vadd.f32 %v1151_v25, %v1108_v21  ;;  %v1097_v27 = vpop.f32.mrb[34].mxu1  ;;  %v3466_v28 = vpop.f32.mrb[33].mxu0 }
 0x372   :  { %v3461_v29 = vpop.f32.mrb[35].mxu1  ;;  %v1154_v30 = vpop.f32.mrb[34].mxu0 }
 0x373   :  { %v3184_v32 = vmul.f32 -1.442695, %v1157_v26  ;;  %v3467_v33 = vpop.f32.mrb[35].mxu0  ;;  %v1265_v30 = vld [vmem:[#allocation2 + $0x58] sm:$0xff] }
 0x375   :  { %3741 = vpow2.f32 %v3184_v32 }
 0x376   :  { %v3738_v34 = vpop.eup %3737 }
 0x377   :  { %v1010_v35 = vadd.f32 1.0, %v3738_v34  ;;  %v1198_v40 = vpop.f32.mrb[36].mxu1  ;;  %v3740_v50 = vpop.eup %3739 }
 0x378   :  { %v1204_v41 = vadd.f32 %v1198_v40, %v1110_v39  ;;  %v3472_v42 = vpop.f32.mrb[37].mxu1  ;;  %v1245_v43 = vpop.f32.mrb[36].mxu0  ;;  %v1057_v51 = vadd.f32 1.0, %v3740_v50 }
 0x379   :  { %3743 = vrcp.f32 %v1010_v35  ;;  %v1201_v44 = vpop.f32.mrb[38].mxu1  ;;  %v3478_v45 = vpop.f32.mrb[37].mxu0  ;;  %v1246_v23 = vadd.f32 %v4239_v63, %v1245_v43 }
 0x37a   :  { %v3186_v46 = vmul.f32 -1.442695, %v1204_v41  ;;  %v3473_v47 = vpop.f32.mrb[39].mxu1  ;;  %v1248_v48 = vpop.f32.mrb[38].mxu0  ;;  %v1414_v41 = vld [vmem:[#allocation2 + $0xe0] sm:$0xff] }
 0x37b   :  { %v3479_v49 = vpop.f32.mrb[39].mxu0 }
 0x37c   :  { %3745 = vpow2.f32 %v3186_v46 }
 0x37f   :  { %v3742_v52 = vpop.eup %3741 }
 0x380   :  { %v1161_v53 = vadd.f32 1.0, %v3742_v52 }
 0x382   :  { %3747 = vrcp.f32 %v1161_v53 }
 0x383   :  { %v3744_v55 = vpop.eup %3743  ;;  %3749 = vrcp.f32 %v1057_v51  ;;  %v1416_v51 = vld [vmem:[#allocation2 + $0x120] sm:$0xff] }
 0x384   :  { %v1100_v56 = vmul.f32 %v3744_v55, %v1095_v54 }
 0x386   :  { %v3746_v59 = vpop.eup %3745  ;;  %v1101_v60 = vadd.f32 %v1100_v56, %v961_v57 }
 0x387   :  { %v1208_v61 = vadd.f32 1.0, %v3746_v59 }
 0x388   :  { %3751 = vtanh.f32 %v1101_v60 }
 0x389   :  { %3753 = vrcp.f32 %v1208_v61 }
 0x38c   :  { %v3748_v62 = vpop.eup %3747 }
 0x38d   :  { %v1251_v0 = vmul.f32 %v3748_v62, %v1246_v23  ;;  %v3750_v2 = vpop.eup %3749 }
 0x38e   :  { %v1103_v5 = vsub.f32 1.0, %v3750_v2  ;;  %v1105_v7 = vmul.f32 %v3750_v2, %v4312_v58 }
 0x38f   :  { %v1252_v4 = vadd.f32 %v1251_v0, %v1112_v38 }
 0x391   :  { %3755 = vtanh.f32 %v1252_v4 }
 0x392   :  { %v3752_v6 = vpop.eup %3751 }
 0x393   :  { %v1104_v8 = vmul.f32 %v3752_v6, %v1103_v5  ;;  %v3754_v10 = vpop.eup %3753 }
 0x394   :  { %v1254_v12 = vsub.f32 1.0, %v3754_v10  ;;  %v1256_v13 = vmul.f32 %v3754_v10, %v4329_v1  ;;  %v1263_v1 = vld [vmem:[#allocation2 + $0x18] sm:$0xff] }
 0x395   :  { %v4358_v9 = vadd.f32 %v1105_v7, %v1104_v8  ;;  %v1267_v8 = vld [vmem:[#allocation2 + $0x98] sm:$0xff] }
 0x397   :  { %1259 = vst.msk [vmem:[#allocation3 + $0x10] sm:$0xff] %vm133_vm2, %v4358_v9  ;;  %v1268_v11 = vpack.c.bf16 %v4358_v9, %v4358_v9 }
 0x399   :  { %3483 = vmatmul.mubr.msk.bf16.vlgmr.msra.gmra.mrb[40].mxu1 %vm133_vm2, %v1268_v11  ;;  %3489 = vmatmul.mubr.msk.bf16.vlgmr.msra.gmra.mrb[40].mxu0 %vm133_vm2, %v1268_v11 }
 0x39a   :  { %3499 = vmatpush3.bf16.msra.mxu0 %v4022_v24  ;;  %3493 = vmatpush3.bf16.msra.mxu1 %v4044_v31 }
 0x39b   :  { %v3756_v58 = vpop.eup %3755  ;;  %3494 = vmatprep.mubr.msk.bf16.mxu1 %vm3910_vm0, %v3909_v3  ;;  %3500 = vmatprep.mubr.msk.bf16.mxu0 %vm3910_vm0, %v3909_v3 }
 0x39c   :  { %v1255_v14 = vmul.f32 %v3756_v58, %v1254_v12  ;;  %3504 = vmatprep.subr.bf16.mxu1 %v3909_v3  ;;  %3510 = vmatprep.subr.bf16.mxu0 %v3909_v3 }
 0x39e   :  { %v4375_v15 = vadd.f32 %v1256_v13, %v1255_v14 }
 0x3a0   :  { %1261 = vst.msk [vmem:[#allocation4 + $0x28] sm:$0xff] %vm133_vm2, %v4375_v15  ;;  %v1419_v16 = vpack.c.bf16 %v4375_v15, %v4375_v15 }
 0x3a1   :  { %3495 = vmatmul.mubr.msk.bf16.vlgmr.msra.gmra.mrb[44].mxu1 %vm133_vm2, %v1268_v11 }
 0x3a2   :  { %3501 = vmatmul.mubr.msk.bf16.vlgmr.msra.gmra.mrb[44].mxu0 %vm133_vm2, %v1419_v16  ;;  %3505 = vmatpush3.bf16.msra.mxu1 %v4065_v36 }
 0x3a3   :  { %3511 = vmatpush3.bf16.msra.mxu0 %v4067_v37  ;;  %3506 = vmatprep.mubr.msk.bf16.mxu1 %vm3910_vm0, %v3909_v3 }
 0x3a4   :  { %3512 = vmatprep.mubr.msk.bf16.mxu0 %vm3910_vm0, %v3909_v3  ;;  %3516 = vmatprep.subr.bf16.mxu1 %v3909_v3 }
 0x3a5   :  { %3522 = vmatprep.subr.bf16.mxu0 %v3909_v3 }
 0x3a9   :  { %3507 = vmatmul.mubr.msk.bf16.vlgmr.msra.gmra.mrb[48].mxu1 %vm133_vm2, %v1419_v16 }
 0x3aa   :  { %3513 = vmatmul.mubr.msk.bf16.vlgmr.msra.gmra.mrb[48].mxu0 %vm133_vm2, %v1419_v16  ;;  %3517 = vmatpush3.bf16.msra.mxu1 %v4006_v17 }
 0x3ab   :  { %3523 = vmatpush3.bf16.msra.mxu0 %v4018_v22  ;;  %3518 = vmatprep.mubr.msk.bf16.mxu1 %vm3910_vm0, %v3909_v3 }
 0x3ac   :  { %3524 = vmatprep.mubr.msk.bf16.mxu0 %vm3910_vm0, %v3909_v3  ;;  %3534 = vmatprep.subr.bf16.mxu0 %v3909_v3 }
 0x3ad   :  { %3528 = vmatprep.subr.bf16.mxu1 %v3909_v3 }
 0x46c   :  { %v1306_v18 = vpop.f32.mrb[40].mxu1  ;;  %v1353_v19 = vpop.f32.mrb[40].mxu0 }
 0x46d   :  { %v1312_v21 = vadd.f32 %v1306_v18, %v1263_v1  ;;  %v3484_v25 = vpop.f32.mrb[41].mxu1  ;;  %v3490_v26 = vpop.f32.mrb[41].mxu0  ;;  %v1359_v34 = vadd.f32 %v1353_v19, %v1265_v30  ;;  %v1418_v1 = vld [vmem:[#allocation2 + $0x160] sm:$0xff] }
 0x46e   :  { %v1309_v27 = vpop.f32.mrb[42].mxu1  ;;  %v1356_v28 = vpop.f32.mrb[42].mxu0 }
 0x46f   :  { %v3189_v29 = vmul.f32 -1.442695, %v1312_v21  ;;  %v3485_v32 = vpop.f32.mrb[43].mxu1  ;;  %v3491_v33 = vpop.f32.mrb[43].mxu0  ;;  %v3191_v35 = vmul.f32 -1.442695, %v1359_v34 }
 0x471   :  { %3757 = vpow2.f32 %v3189_v29 }
 0x472   :  { %3759 = vpow2.f32 %v3191_v35 }
 0x474   :  { %v1400_v39 = vpop.f32.mrb[44].mxu1 }
 0x475   :  { %v3496_v40 = vpop.f32.mrb[45].mxu1  ;;  %v1457_v42 = vpop.f32.mrb[44].mxu0  ;;  %v1401_v5 = vadd.f32 %v4155_v20, %v1400_v39 }
 0x476   :  { %v1463_v43 = vadd.f32 %v1457_v42, %v1414_v41  ;;  %v1403_v44 = vpop.f32.mrb[46].mxu1  ;;  %v3502_v45 = vpop.f32.mrb[45].mxu0 }
 0x477   :  { %v3497_v46 = vpop.f32.mrb[47].mxu1  ;;  %v1460_v47 = vpop.f32.mrb[46].mxu0 }
 0x478   :  { %v3194_v48 = vmul.f32 -1.442695, %v1463_v43  ;;  %v3503_v49 = vpop.f32.mrb[47].mxu0  ;;  %v1571_v46 = vld [vmem:[#allocation2 + $0x60] sm:$0xff] }
 0x47a   :  { %3761 = vpow2.f32 %v3194_v48 }
 0x47b   :  { %v3758_v50 = vpop.eup %3757 }
 0x47c   :  { %v1316_v52 = vadd.f32 1.0, %v3758_v50  ;;  %v1504_v53 = vpop.f32.mrb[48].mxu1  ;;  %v3760_v0 = vpop.eup %3759 }
 0x47d   :  { %v1510_v54 = vadd.f32 %v1504_v53, %v1416_v51  ;;  %v3508_v55 = vpop.f32.mrb[49].mxu1  ;;  %v1551_v56 = vpop.f32.mrb[48].mxu0  ;;  %v1363_v38 = vadd.f32 1.0, %v3760_v0  ;;  %v1720_v53 = vld [vmem:[#allocation2 + $0xd8] sm:$0xff] }
 0x47e   :  { %3763 = vrcp.f32 %v1316_v52  ;;  %v1507_v57 = vpop.f32.mrb[50].mxu1  ;;  %v3514_v59 = vpop.f32.mrb[49].mxu0  ;;  %v1552_v58 = vadd.f32 %v4239_v63, %v1551_v56 }
 0x47f   :  { %v3196_v60 = vmul.f32 -1.442695, %v1510_v54  ;;  %v3509_v61 = vpop.f32.mrb[51].mxu1  ;;  %v1554_v23 = vpop.f32.mrb[50].mxu0 }
 0x480   :  { %v3515_v62 = vpop.f32.mrb[51].mxu0 }
 0x481   :  { %3765 = vpow2.f32 %v3196_v60 }
 0x484   :  { %v3762_v2 = vpop.eup %3761 }
 0x485   :  { %v1467_v4 = vadd.f32 1.0, %v3762_v2  ;;  %v1722_v2 = vld [vmem:[#allocation2 + $0x118] sm:$0xff] }
 0x487   :  { %3767 = vrcp.f32 %v1467_v4 }
 0x488   :  { %v3764_v6 = vpop.eup %3763  ;;  %3769 = vrcp.f32 %v1363_v38 }
 0x489   :  { %v1406_v7 = vmul.f32 %v3764_v6, %v1401_v5 }
 0x48b   :  { %v3766_v10 = vpop.eup %3765  ;;  %v1407_v11 = vadd.f32 %v1406_v7, %v1267_v8 }
 0x48c   :  { %v1514_v12 = vadd.f32 1.0, %v3766_v10 }
 0x48d   :  { %3771 = vtanh.f32 %v1407_v11 }
 0x48e   :  { %3773 = vrcp.f32 %v1514_v12 }
 0x491   :  { %v3768_v13 = vpop.eup %3767 }
 0x492   :  { %v1557_v14 = vmul.f32 %v3768_v13, %v1552_v58  ;;  %v3770_v16 = vpop.eup %3769 }
 0x493   :  { %v1409_v19 = vsub.f32 1.0, %v3770_v16  ;;  %v1411_v21 = vmul.f32 %v3770_v16, %v4358_v9 }
 0x494   :  { %v1558_v18 = vadd.f32 %v1557_v14, %v1418_v1 }
 0x496   :  { %3775 = vtanh.f32 %v1558_v18  ;;  %v4450_v18 = vld [vmem:[%s4728_s4] ss:$0 sm:$0xff] }
 0x497   :  { %v3772_v20 = vpop.eup %3771 }
 0x498   :  { %v1410_v25 = vmul.f32 %v3772_v20, %v1409_v19  ;;  %v3774_v27 = vpop.eup %3773 }
 0x499   :  { %v1560_v29 = vsub.f32 1.0, %v3774_v27  ;;  %v1562_v30 = vmul.f32 %v3774_v27, %v4375_v15  ;;  %v1569_v15 = vld [vmem:[#allocation2 + $0x20] sm:$0xff] }
 0x49a   :  { %v4404_v26 = vadd.f32 %v1411_v21, %v1410_v25  ;;  %v1573_v25 = vld [vmem:[#allocation2 + $0xa0] sm:$0xff] }
 0x49c   :  { %1565 = vst.msk [vmem:[#allocation3 + $0x18] sm:$0xff] %vm133_vm2, %v4404_v26  ;;  %v1574_v28 = vpack.c.bf16 %v4404_v26, %v4404_v26 }
 0x49e   :  { %3519 = vmatmul.mubr.msk.bf16.vlgmr.msra.gmra.mrb[52].mxu1 %vm133_vm2, %v1574_v28  ;;  %3525 = vmatmul.mubr.msk.bf16.vlgmr.msra.gmra.mrb[52].mxu0 %vm133_vm2, %v1574_v28 }
 0x49f   :  { %3535 = vmatpush3.bf16.msra.mxu0 %v4022_v24  ;;  %3529 = vmatpush3.bf16.msra.mxu1 %v4044_v31 }
 0x4a0   :  { %v3776_v9 = vpop.eup %3775  ;;  %3530 = vmatprep.mubr.msk.bf16.mxu1 %vm3910_vm0, %v3909_v3  ;;  %3536 = vmatprep.mubr.msk.bf16.mxu0 %vm3910_vm0, %v3909_v3 }
 0x4a1   :  { %v1561_v32 = vmul.f32 %v3776_v9, %v1560_v29  ;;  %3540 = vmatprep.subr.bf16.mxu1 %v3909_v3  ;;  %3546 = vmatprep.subr.bf16.mxu0 %v3909_v3 }
 0x4a3   :  { %v4421_v33 = vadd.f32 %v1562_v30, %v1561_v32 }
 0x4a5   :  { %1567 = vst.msk [vmem:[#allocation4 + $0x20] sm:$0xff] %vm133_vm2, %v4421_v33  ;;  %v1725_v34 = vpack.c.bf16 %v4421_v33, %v4421_v33 }
 0x4a6   :  { %3531 = vmatmul.mubr.msk.bf16.vlgmr.msra.gmra.mrb[56].mxu1 %vm133_vm2, %v1574_v28 }
 0x4a7   :  { %3537 = vmatmul.mubr.msk.bf16.vlgmr.msra.gmra.mrb[56].mxu0 %vm133_vm2, %v1725_v34  ;;  %3541 = vmatpush3.bf16.msra.mxu1 %v4065_v36 }
 0x4a8   :  { %3547 = vmatpush3.bf16.msra.mxu0 %v4067_v37  ;;  %3542 = vmatprep.mubr.msk.bf16.mxu1 %vm3910_vm0, %v3909_v3 }
 0x4a9   :  { %3548 = vmatprep.mubr.msk.bf16.mxu0 %vm3910_vm0, %v3909_v3  ;;  %3552 = vmatprep.subr.bf16.mxu1 %v3909_v3 }
 0x4aa   :  { %3558 = vmatprep.subr.bf16.mxu0 %v3909_v3 }
 0x4ae   :  { %3543 = vmatmul.mubr.msk.bf16.vlgmr.msra.gmra.mrb[60].mxu1 %vm133_vm2, %v1725_v34 }
 0x4af   :  { %3549 = vmatmul.mubr.msk.bf16.vlgmr.msra.gmra.mrb[60].mxu0 %vm133_vm2, %v1725_v34  ;;  %3553 = vmatpush3.bf16.msra.mxu1 %v4006_v17 }
 0x4b0   :  { %3559 = vmatpush3.bf16.msra.mxu0 %v4018_v22  ;;  %3554 = vmatprep.mubr.msk.bf16.mxu1 %vm3910_vm0, %v3909_v3 }
 0x4b1   :  { %3560 = vmatprep.mubr.msk.bf16.mxu0 %vm3910_vm0, %v3909_v3  ;;  %3570 = vmatprep.subr.bf16.mxu0 %v3909_v3 }
 0x4b2   :  { %3564 = vmatprep.subr.bf16.mxu1 %v3909_v3 }
 0x571   :  { %v1612_v35 = vpop.f32.mrb[52].mxu1  ;;  %v1659_v39 = vpop.f32.mrb[52].mxu0 }
 0x572   :  { %v1618_v40 = vadd.f32 %v1612_v35, %v1569_v15  ;;  %v3520_v41 = vpop.f32.mrb[53].mxu1  ;;  %v3526_v42 = vpop.f32.mrb[53].mxu0  ;;  %v1665_v49 = vadd.f32 %v1659_v39, %v1571_v46  ;;  %v1724_v15 = vld [vmem:[#allocation2 + $0x158] sm:$0xff] }
 0x573   :  { %v1615_v43 = vpop.f32.mrb[54].mxu1  ;;  %v1662_v44 = vpop.f32.mrb[54].mxu0 }
 0x574   :  { %v3199_v45 = vmul.f32 -1.442695, %v1618_v40  ;;  %v3521_v47 = vpop.f32.mrb[55].mxu1  ;;  %v3527_v48 = vpop.f32.mrb[55].mxu0  ;;  %v3201_v50 = vmul.f32 -1.442695, %v1665_v49 }
 0x576   :  { %3777 = vpow2.f32 %v3199_v45 }
 0x577   :  { %3779 = vpow2.f32 %v3201_v50 }
 0x579   :  { %v1706_v52 = vpop.f32.mrb[56].mxu1 }
 0x57a   :  { %v3532_v51 = vpop.f32.mrb[57].mxu1  ;;  %v1763_v54 = vpop.f32.mrb[56].mxu0  ;;  %v1707_v19 = vadd.f32 %v4450_v18, %v1706_v52 }
 0x57b   :  { %v1769_v55 = vadd.f32 %v1763_v54, %v1720_v53  ;;  %v1709_v56 = vpop.f32.mrb[58].mxu1  ;;  %v3538_v57 = vpop.f32.mrb[57].mxu0 }
 0x57c   :  { %v3533_v59 = vpop.f32.mrb[59].mxu1  ;;  %v1766_v60 = vpop.f32.mrb[58].mxu0 }
 0x57d   :  { %v3204_v61 = vmul.f32 -1.442695, %v1769_v55  ;;  %v3539_v23 = vpop.f32.mrb[59].mxu0  ;;  %v1877_v59 = vld [vmem:[#allocation2 + $0x68] sm:$0xff] }
 0x57f   :  { %3781 = vpow2.f32 %v3204_v61 }
 0x580   :  { %v3778_v62 = vpop.eup %3777 }
 0x581   :  { %v1622_v0 = vadd.f32 1.0, %v3778_v62  ;;  %v1810_v38 = vpop.f32.mrb[60].mxu1  ;;  %v3780_v13 = vpop.eup %3779 }
 0x582   :  { %v1816_v4 = vadd.f32 %v1810_v38, %v1722_v2  ;;  %v3544_v5 = vpop.f32.mrb[61].mxu1  ;;  %v1857_v6 = vpop.f32.mrb[60].mxu0  ;;  %v1669_v16 = vadd.f32 1.0, %v3780_v13  ;;  %v2026_v38 = vld [vmem:[#allocation2 + $0xd0] sm:$0xff] }
 0x583   :  { %3783 = vrcp.f32 %v1622_v0  ;;  %v1813_v7 = vpop.f32.mrb[62].mxu1  ;;  %v3550_v8 = vpop.f32.mrb[61].mxu0  ;;  %v1858_v9 = vadd.f32 %v4239_v63, %v1857_v6 }
 0x584   :  { %v3206_v10 = vmul.f32 -1.442695, %v1816_v4  ;;  %v3545_v11 = vpop.f32.mrb[63].mxu1  ;;  %v1860_v12 = vpop.f32.mrb[62].mxu0 }
 0x585   :  { %v3551_v58 = vpop.f32.mrb[63].mxu0 }
 0x586   :  { %3785 = vpow2.f32 %v3206_v10 }
 0x589   :  { %v3782_v14 = vpop.eup %3781 }
 0x58a   :  { %v1773_v1 = vadd.f32 1.0, %v3782_v14  ;;  %v2028_v14 = vld [vmem:[#allocation2 + $0x110] sm:$0xff] }
 0x58c   :  { %3787 = vrcp.f32 %v1773_v1 }
 0x58d   :  { %v3784_v20 = vpop.eup %3783  ;;  %3789 = vrcp.f32 %v1669_v16 }
 0x58e   :  { %v1712_v21 = vmul.f32 %v3784_v20, %v1707_v19 }
 0x590   :  { %v3786_v27 = vpop.eup %3785  ;;  %v1713_v28 = vadd.f32 %v1712_v21, %v1573_v25 }
 0x591   :  { %v1820_v29 = vadd.f32 1.0, %v3786_v27 }
 0x592   :  { %3791 = vtanh.f32 %v1713_v28 }
 0x593   :  { %3793 = vrcp.f32 %v1820_v29 }
 0x596   :  { %v3788_v30 = vpop.eup %3787 }
 0x597   :  { %v1863_v32 = vmul.f32 %v3788_v30, %v1858_v9  ;;  %v3790_v34 = vpop.eup %3789 }
 0x598   :  { %v1715_v39 = vsub.f32 1.0, %v3790_v34  ;;  %v1717_v41 = vmul.f32 %v3790_v34, %v4404_v26 }
 0x599   :  { %v1864_v35 = vadd.f32 %v1863_v32, %v1724_v15 }
 0x59b   :  { %3795 = vtanh.f32 %v1864_v35 }
 0x59c   :  { %v3792_v40 = vpop.eup %3791 }
 0x59d   :  { %v1716_v42 = vmul.f32 %v3792_v40, %v1715_v39  ;;  %v3794_v44 = vpop.eup %3793 }
 0x59e   :  { %v1866_v45 = vsub.f32 1.0, %v3794_v44  ;;  %v1868_v46 = vmul.f32 %v3794_v44, %v4421_v33  ;;  %v1875_v33 = vld [vmem:[#allocation2 + $0x28] sm:$0xff] }
 0x59f   :  { %v4455_v43 = vadd.f32 %v1717_v41, %v1716_v42  ;;  %v1879_v41 = vld [vmem:[#allocation2 + $0xa8] sm:$0xff] }
 0x5a1   :  { %1871 = vst.msk [vmem:[#allocation3 + $0x20] sm:$0xff] %vm133_vm2, %v4455_v43  ;;  %v1880_v63 = vpack.c.bf16 %v4455_v43, %v4455_v43 }
 0x5a3   :  { %3555 = vmatmul.mubr.msk.bf16.vlgmr.msra.gmra.mrb[64].mxu1 %vm133_vm2, %v1880_v63  ;;  %3561 = vmatmul.mubr.msk.bf16.vlgmr.msra.gmra.mrb[64].mxu0 %vm133_vm2, %v1880_v63 }
 0x5a4   :  { %3571 = vmatpush3.bf16.msra.mxu0 %v4022_v24  ;;  %3565 = vmatpush3.bf16.msra.mxu1 %v4044_v31 }
 0x5a5   :  { %v3796_v26 = vpop.eup %3795  ;;  %3566 = vmatprep.mubr.msk.bf16.mxu1 %vm3910_vm0, %v3909_v3  ;;  %3572 = vmatprep.mubr.msk.bf16.mxu0 %vm3910_vm0, %v3909_v3 }
 0x5a6   :  { %v1867_v47 = vmul.f32 %v3796_v26, %v1866_v45  ;;  %3576 = vmatprep.subr.bf16.mxu1 %v3909_v3  ;;  %3582 = vmatprep.subr.bf16.mxu0 %v3909_v3  ;;  %v4502_v45 = vld [vmem:[%s4728_s4 + $0x1] ss:$0 sm:$0xff] }
 0x5a8   :  { %v4472_v48 = vadd.f32 %v1868_v46, %v1867_v47 }
 0x5aa   :  { %1873 = vst.msk [vmem:[#allocation4 + $0x18] sm:$0xff] %vm133_vm2, %v4472_v48  ;;  %v2031_v49 = vpack.c.bf16 %v4472_v48, %v4472_v48 }
 0x5ab   :  { %3567 = vmatmul.mubr.msk.bf16.vlgmr.msra.gmra.mrb[68].mxu1 %vm133_vm2, %v1880_v63 }
 0x5ac   :  { %3573 = vmatmul.mubr.msk.bf16.vlgmr.msra.gmra.mrb[68].mxu0 %vm133_vm2, %v2031_v49  ;;  %3577 = vmatpush3.bf16.msra.mxu1 %v4065_v36 }
 0x5ad   :  { %3583 = vmatpush3.bf16.msra.mxu0 %v4067_v37  ;;  %3578 = vmatprep.mubr.msk.bf16.mxu1 %vm3910_vm0, %v3909_v3 }
 0x5ae   :  { %3584 = vmatprep.mubr.msk.bf16.mxu0 %vm3910_vm0, %v3909_v3  ;;  %3588 = vmatprep.subr.bf16.mxu1 %v3909_v3 }
 0x5af   :  { %3594 = vmatprep.subr.bf16.mxu0 %v3909_v3 }
 0x5b3   :  { %3579 = vmatmul.mubr.msk.bf16.vlgmr.msra.gmra.mrb[72].mxu1 %vm133_vm2, %v2031_v49 }
 0x5b4   :  { %3585 = vmatmul.mubr.msk.bf16.vlgmr.msra.gmra.mrb[72].mxu0 %vm133_vm2, %v2031_v49  ;;  %3589 = vmatpush3.bf16.msra.mxu1 %v4006_v17 }
 0x5b5   :  { %3595 = vmatpush3.bf16.msra.mxu0 %v4018_v22  ;;  %3590 = vmatprep.mubr.msk.bf16.mxu1 %vm3910_vm0, %v3909_v3 }
 0x5b6   :  { %3596 = vmatprep.mubr.msk.bf16.mxu0 %vm3910_vm0, %v3909_v3  ;;  %3606 = vmatprep.subr.bf16.mxu0 %v3909_v3 }
 0x5b7   :  { %3600 = vmatprep.subr.bf16.mxu1 %v3909_v3 }
 0x676   :  { %v1918_v50 = vpop.f32.mrb[64].mxu1  ;;  %v1965_v52 = vpop.f32.mrb[64].mxu0 }
 0x677   :  { %v1924_v51 = vadd.f32 %v1918_v50, %v1875_v33  ;;  %v3556_v53 = vpop.f32.mrb[65].mxu1  ;;  %v3562_v54 = vpop.f32.mrb[65].mxu0  ;;  %v1971_v23 = vadd.f32 %v1965_v52, %v1877_v59  ;;  %v2030_v33 = vld [vmem:[#allocation2 + $0x150] sm:$0xff] }
 0x678   :  { %v1921_v55 = vpop.f32.mrb[66].mxu1  ;;  %v1968_v56 = vpop.f32.mrb[66].mxu0 }
 0x679   :  { %v3209_v57 = vmul.f32 -1.442695, %v1924_v51  ;;  %v3557_v60 = vpop.f32.mrb[67].mxu1  ;;  %v3563_v61 = vpop.f32.mrb[67].mxu0  ;;  %v3211_v62 = vmul.f32 -1.442695, %v1971_v23 }
 0x67b   :  { %3797 = vpow2.f32 %v3209_v57 }
 0x67c   :  { %3799 = vpow2.f32 %v3211_v62 }
 0x67e   :  { %v2012_v0 = vpop.f32.mrb[68].mxu1 }
 0x67f   :  { %v3568_v2 = vpop.f32.mrb[69].mxu1  ;;  %v2069_v4 = vpop.f32.mrb[68].mxu0  ;;  %v2013_v35 = vadd.f32 %v4450_v18, %v2012_v0 }
 0x680   :  { %v2075_v5 = vadd.f32 %v2069_v4, %v2026_v38  ;;  %v2015_v6 = vpop.f32.mrb[70].mxu1  ;;  %v3574_v7 = vpop.f32.mrb[69].mxu0 }
 0x681   :  { %v3569_v8 = vpop.f32.mrb[71].mxu1  ;;  %v2072_v10 = vpop.f32.mrb[70].mxu0 }
 0x682   :  { %v3214_v11 = vmul.f32 -1.442695, %v2075_v5  ;;  %v3575_v12 = vpop.f32.mrb[71].mxu0 }
 0x684   :  { %3801 = vpow2.f32 %v3214_v11 }
 0x685   :  { %v3798_v58 = vpop.eup %3797 }
 0x686   :  { %v1928_v13 = vadd.f32 1.0, %v3798_v58  ;;  %v2116_v16 = vpop.f32.mrb[72].mxu1  ;;  %v3800_v30 = vpop.eup %3799 }
 0x687   :  { %v2122_v1 = vadd.f32 %v2116_v16, %v2028_v14  ;;  %v3580_v19 = vpop.f32.mrb[73].mxu1  ;;  %v2163_v20 = vpop.f32.mrb[72].mxu0  ;;  %v1975_v34 = vadd.f32 1.0, %v3800_v30  ;;  %v2332_v14 = vld [vmem:[#allocation2 + $0xc8] sm:$0xff] }
 0x688   :  { %3803 = vrcp.f32 %v1928_v13  ;;  %v2119_v21 = vpop.f32.mrb[74].mxu1  ;;  %v3586_v25 = vpop.f32.mrb[73].mxu0  ;;  %v2164_v26 = vadd.f32 %v4502_v45, %v2163_v20  ;;  %v2334_v30 = vld [vmem:[#allocation2 + $0x108] sm:$0xff] }
 0x689   :  { %v3216_v27 = vmul.f32 -1.442695, %v2122_v1  ;;  %v3581_v28 = vpop.f32.mrb[75].mxu1  ;;  %v2166_v29 = vpop.f32.mrb[74].mxu0 }
 0x68a   :  { %v3587_v9 = vpop.f32.mrb[75].mxu0 }
 0x68b   :  { %3805 = vpow2.f32 %v3216_v27 }
 0x68e   :  { %v3802_v32 = vpop.eup %3801 }
 0x68f   :  { %v2079_v15 = vadd.f32 1.0, %v3802_v32 }
 0x691   :  { %3807 = vrcp.f32 %v2079_v15 }
 0x692   :  { %v3804_v39 = vpop.eup %3803  ;;  %3809 = vrcp.f32 %v1975_v34 }
 0x693   :  { %v2018_v40 = vmul.f32 %v3804_v39, %v2013_v35 }
 0x695   :  { %v3806_v42 = vpop.eup %3805  ;;  %v2019_v44 = vadd.f32 %v2018_v40, %v1879_v41 }
 0x696   :  { %v2126_v63 = vadd.f32 1.0, %v3806_v42 }
 0x697   :  { %3811 = vtanh.f32 %v2019_v44 }
 0x698   :  { %3813 = vrcp.f32 %v2126_v63 }
 0x69b   :  { %v3808_v46 = vpop.eup %3807 }
 0x69c   :  { %v2169_v47 = vmul.f32 %v3808_v46, %v2164_v26  ;;  %v3810_v49 = vpop.eup %3809 }
 0x69d   :  { %v2021_v52 = vsub.f32 1.0, %v3810_v49  ;;  %v2023_v53 = vmul.f32 %v3810_v49, %v4455_v43 }
 0x69e   :  { %v2170_v50 = vadd.f32 %v2169_v47, %v2030_v33 }
 0x6a0   :  { %3815 = vtanh.f32 %v2170_v50 }
 0x6a1   :  { %v3812_v51 = vpop.eup %3811 }
 0x6a2   :  { %v2022_v54 = vmul.f32 %v3812_v51, %v2021_v52  ;;  %v3814_v56 = vpop.eup %3813  ;;  %v2185_v51 = vld [vmem:[#allocation2 + $0xb0] sm:$0xff] }
 0x6a3   :  { %v2172_v59 = vsub.f32 1.0, %v3814_v56  ;;  %v2174_v60 = vmul.f32 %v3814_v56, %v4472_v48  ;;  %v2181_v48 = vld [vmem:[#allocation2 + $0x30] sm:$0xff] }
 0x6a4   :  { %v4506_v55 = vadd.f32 %v2023_v53, %v2022_v54 }
 0x6a6   :  { %2177 = vst.msk [vmem:[#allocation3 + $0x28] sm:$0xff] %vm133_vm2, %v4506_v55  ;;  %v2186_v57 = vpack.c.bf16 %v4506_v55, %v4506_v55 }
 0x6a8   :  { %3591 = vmatmul.mubr.msk.bf16.vlgmr.msra.gmra.mrb[76].mxu1 %vm133_vm2, %v2186_v57  ;;  %3597 = vmatmul.mubr.msk.bf16.vlgmr.msra.gmra.mrb[76].mxu0 %vm133_vm2, %v2186_v57 }
 0x6a9   :  { %3607 = vmatpush3.bf16.msra.mxu0 %v4022_v24  ;;  %3601 = vmatpush3.bf16.msra.mxu1 %v4044_v31 }
 0x6aa   :  { %v3816_v43 = vpop.eup %3815  ;;  %3602 = vmatprep.mubr.msk.bf16.mxu1 %vm3910_vm0, %v3909_v3  ;;  %3608 = vmatprep.mubr.msk.bf16.mxu0 %vm3910_vm0, %v3909_v3 }
 0x6ab   :  { %v2173_v61 = vmul.f32 %v3816_v43, %v2172_v59  ;;  %3612 = vmatprep.subr.bf16.mxu1 %v3909_v3  ;;  %3618 = vmatprep.subr.bf16.mxu0 %v3909_v3 }
 0x6ad   :  { %v4523_v23 = vadd.f32 %v2174_v60, %v2173_v61  ;;  %v2336_v61 = vld [vmem:[#allocation2 + $0x148] sm:$0xff] }
 0x6af   :  { %2179 = vst.msk [vmem:[#allocation4 + $0x10] sm:$0xff] %vm133_vm2, %v4523_v23  ;;  %v2337_v62 = vpack.c.bf16 %v4523_v23, %v4523_v23 }
 0x6b0   :  { %3603 = vmatmul.mubr.msk.bf16.vlgmr.msra.gmra.mrb[80].mxu1 %vm133_vm2, %v2186_v57 }
 0x6b1   :  { %3609 = vmatmul.mubr.msk.bf16.vlgmr.msra.gmra.mrb[80].mxu0 %vm133_vm2, %v2337_v62  ;;  %3613 = vmatpush3.bf16.msra.mxu1 %v4065_v36 }
 0x6b2   :  { %3619 = vmatpush3.bf16.msra.mxu0 %v4067_v37  ;;  %3614 = vmatprep.mubr.msk.bf16.mxu1 %vm3910_vm0, %v3909_v3 }
 0x6b3   :  { %3620 = vmatprep.mubr.msk.bf16.mxu0 %vm3910_vm0, %v3909_v3  ;;  %3630 = vmatprep.subr.bf16.mxu0 %v3909_v3 }
 0x6b4   :  { %3624 = vmatprep.subr.bf16.mxu1 %v3909_v3 }
 0x6b8   :  { %3615 = vmatmul.mubr.msk.bf16.vlgmr.msra.gmra.mrb[84].mxu1 %vm133_vm2, %v2337_v62 }
 0x6b9   :  { %3621 = vmatmul.mubr.msk.bf16.vlgmr.msra.gmra.mrb[84].mxu0 %vm133_vm2, %v2337_v62  ;;  %3625 = vmatpush3.bf16.msra.mxu1 %v4006_v17 }
 0x6ba   :  { %3631 = vmatpush3.bf16.msra.mxu0 %v4018_v22  ;;  %3626 = vmatprep.mubr.msk.bf16.mxu1 %vm3910_vm0, %v3909_v3  ;;  %v2183_v22 = vld [vmem:[#allocation2 + $0x70] sm:$0xff] }
 0x6bb   :  { %3632 = vmatprep.mubr.msk.bf16.mxu0 %vm3910_vm0, %v3909_v3  ;;  %3642 = vmatprep.subr.bf16.mxu0 %v3909_v3 }
 0x6bc   :  { %3636 = vmatprep.subr.bf16.mxu1 %v3909_v3 }
 0x77b   :  { %v2224_v0 = vpop.f32.mrb[76].mxu1  ;;  %v2271_v2 = vpop.f32.mrb[76].mxu0 }
 0x77c   :  { %v2230_v38 = vadd.f32 %v2224_v0, %v2181_v48  ;;  %v3592_v4 = vpop.f32.mrb[77].mxu1  ;;  %v3598_v5 = vpop.f32.mrb[77].mxu0  ;;  %v2277_v11 = vadd.f32 %v2271_v2, %v2183_v22 }
 0x77d   :  { %v2227_v6 = vpop.f32.mrb[78].mxu1  ;;  %v2274_v17 = vpop.f32.mrb[78].mxu0 }
 0x77e   :  { %v3219_v7 = vmul.f32 -1.442695, %v2230_v38  ;;  %v3593_v8 = vpop.f32.mrb[79].mxu1  ;;  %v3599_v10 = vpop.f32.mrb[79].mxu0  ;;  %v3221_v12 = vmul.f32 -1.442695, %v2277_v11 }
 0x77f   :  { %v4589_v11 = vld [vmem:[#allocation3 + $0x8] sm:$0xff] }
 0x780   :  { %3817 = vpow2.f32 %v3219_v7 }
 0x781   :  { %3819 = vpow2.f32 %v3221_v12  ;;  %v4591_v12 = vld [vmem:[#allocation3] sm:$0xff] }
 0x783   :  { %v2318_v58 = vpop.f32.mrb[80].mxu1 }
 0x784   :  { %v3604_v13 = vpop.f32.mrb[81].mxu1  ;;  %v2375_v16 = vpop.f32.mrb[80].mxu0  ;;  %v2319_v33 = vadd.f32 %v4450_v18, %v2318_v58  ;;  %v2810_v58 = vpack.c.bf16 %v4589_v11, %v4591_v12 }
 0x785   :  { %v2381_v1 = vadd.f32 %v2375_v16, %v2332_v14  ;;  %v2321_v19 = vpop.f32.mrb[82].mxu1  ;;  %v3610_v20 = vpop.f32.mrb[81].mxu0  ;;  %v4606_v14 = vld [vmem:[#allocation3 + $0x20] sm:$0xff] }
 0x786   :  { %v3605_v21 = vpop.f32.mrb[83].mxu1  ;;  %v2378_v25 = vpop.f32.mrb[82].mxu0  ;;  %v2807_v19 = vld [vmem:[%s4729_s5 + $0x18] sm:$0xff] }
 0x787   :  { %v3224_v27 = vmul.f32 -1.442695, %v2381_v1  ;;  %v3611_v28 = vpop.f32.mrb[83].mxu0  ;;  %v2806_v1 = vld [vmem:[%s4729_s5 + $0x10] sm:$0xff]  ;;  %v2487_v21 = vld [vmem:[#allocation2 + $0x38] sm:$0xff] }
 0x788   :  { %v2809_v20 = vpack.c.bf16 %v2807_v19, %v2806_v1 }
 0x789   :  { %3821 = vpow2.f32 %v3224_v27 }
 0x78a   :  { %v3818_v29 = vpop.eup %3817 }
 0x78b   :  { %v2234_v9 = vadd.f32 1.0, %v3818_v29  ;;  %v2422_v32 = vpop.f32.mrb[84].mxu1  ;;  %v3820_v26 = vpop.eup %3819 }
 0x78c   :  { %v2428_v34 = vadd.f32 %v2422_v32, %v2334_v30  ;;  %v3616_v15 = vpop.f32.mrb[85].mxu1  ;;  %v2469_v35 = vpop.f32.mrb[84].mxu0  ;;  %v2281_v47 = vadd.f32 1.0, %v3820_v26 }
 0x78d   :  { %3823 = vrcp.f32 %v2234_v9  ;;  %v2425_v39 = vpop.f32.mrb[86].mxu1  ;;  %v3622_v40 = vpop.f32.mrb[85].mxu0  ;;  %v2470_v57 = vadd.f32 %v4502_v45, %v2469_v35  ;;  %v2489_v15 = vld [vmem:[#allocation2 + $0x78] sm:$0xff] }
 0x78e   :  { %v3226_v41 = vmul.f32 -1.442695, %v2428_v34  ;;  %v3617_v42 = vpop.f32.mrb[87].mxu1  ;;  %v2472_v44 = vpop.f32.mrb[86].mxu0 }
 0x78f   :  { %v3623_v63 = vpop.f32.mrb[87].mxu0 }
 0x790   :  { %3825 = vpow2.f32 %v3226_v41  ;;  %v2637_v63 = vld [vmem:[#allocation2 + $0xc0] sm:$0xff] }
 0x793   :  { %v3822_v46 = vpop.eup %3821 }
 0x794   :  { %v2385_v49 = vadd.f32 1.0, %v3822_v46 }
 0x796   :  { %3827 = vrcp.f32 %v2385_v49 }
 0x797   :  { %v3824_v50 = vpop.eup %3823  ;;  %3829 = vrcp.f32 %v2281_v47 }
 0x798   :  { %v2324_v52 = vmul.f32 %v3824_v50, %v2319_v33 }
 0x79a   :  { %v3826_v53 = vpop.eup %3825  ;;  %v2325_v54 = vadd.f32 %v2324_v52, %v2185_v51 }
 0x79b   :  { %v2432_v56 = vadd.f32 1.0, %v3826_v53 }
 0x79c   :  { %3831 = vtanh.f32 %v2325_v54 }
 0x79d   :  { %3833 = vrcp.f32 %v2432_v56  ;;  %v2638_v56 = vld [vmem:[#allocation2 + $0x100] sm:$0xff] }
 0x7a0   :  { %v3828_v59 = vpop.eup %3827 }
 0x7a1   :  { %v2475_v43 = vmul.f32 %v3828_v59, %v2470_v57  ;;  %v3830_v60 = vpop.eup %3829 }
 0x7a2   :  { %v2327_v48 = vsub.f32 1.0, %v3830_v60  ;;  %v2329_v2 = vmul.f32 %v3830_v60, %v4506_v55 }
 0x7a3   :  { %v2476_v62 = vadd.f32 %v2475_v43, %v2336_v61 }
 0x7a5   :  { %3835 = vtanh.f32 %v2476_v62 }
 0x7a6   :  { %v3832_v0 = vpop.eup %3831 }
 0x7a7   :  { %v2328_v38 = vmul.f32 %v3832_v0, %v2327_v48  ;;  %v3834_v5 = vpop.eup %3833 }
 0x7a8   :  { %v2478_v17 = vsub.f32 1.0, %v3834_v5  ;;  %v2480_v7 = vmul.f32 %v3834_v5, %v4523_v23 }
 0x7a9   :  { %v4552_v4 = vadd.f32 %v2329_v2, %v2328_v38 }
 0x7ab   :  { %2483 = vst.msk [vmem:[#allocation3 + $0x30] sm:$0xff] %vm133_vm2, %v4552_v4  ;;  %v2492_v6 = vpack.c.bf16 %v4552_v4, %v4552_v4 }
 0x7ad   :  { %3627 = vmatmul.mubr.msk.bf16.vlgmr.msra.gmra.mrb[88].mxu1 %vm133_vm2, %v2492_v6  ;;  %3633 = vmatmul.mubr.msk.bf16.vlgmr.msra.gmra.mrb[88].mxu0 %vm133_vm2, %v2492_v6 }
 0x7ae   :  { %3643 = vmatpush3.bf16.msra.mxu0 %v4022_v24  ;;  %3637 = vmatpush3.bf16.msra.mxu1 %v4044_v31  ;;  %v2804_v24 = vld [vmem:[%s4729_s5] sm:$0xff]  ;;  %v2805_v31 = vld [vmem:[%s4729_s5 + $0x8] sm:$0xff] }
 0x7af   :  { %v3836_v55 = vpop.eup %3835  ;;  %3638 = vmatprep.mubr.msk.bf16.mxu1 %vm3910_vm0, %v3909_v3  ;;  %3644 = vmatprep.mubr.msk.bf16.mxu0 %vm3910_vm0, %v3909_v3  ;;  %v2808_v10 = vpack.c.bf16 %v2805_v31, %v2804_v24 }
 0x7b0   :  { %v2479_v22 = vmul.f32 %v3836_v55, %v2478_v17  ;;  %3648 = vmatprep.subr.bf16.mxu1 %v3909_v3  ;;  %3654 = vmatprep.subr.bf16.mxu0 %v3909_v3 }
 0x7b2   :  { %v4575_v8 = vadd.f32 %v2480_v7, %v2479_v22 }
 0x7b4   :  { %2485 = vst.msk [vmem:[#allocation4 + $0x8] sm:$0xff] %vm133_vm2, %v4575_v8  ;;  %v2640_v23 = vpack.c.bf16 %v4575_v8, %v4575_v8 }
 0x7b5   :  { %3639 = vmatmul.mubr.msk.bf16.vlgmr.msra.gmra.mrb[92].mxu1 %vm133_vm2, %v2492_v6 }
 0x7b6   :  { %3645 = vmatmul.mubr.msk.bf16.vlgmr.msra.gmra.mrb[92].mxu0 %vm133_vm2, %v2640_v23  ;;  %3649 = vmatpush3.bf16.msra.mxu1 %v4065_v36  ;;  %v4598_v36 = vld [vmem:[#allocation3 + $0x18] sm:$0xff] }
 0x7b7   :  { %3655 = vmatpush3.bf16.msra.mxu0 %v4067_v37  ;;  %3650 = vmatprep.mubr.msk.bf16.mxu1 %vm3910_vm0, %v3909_v3  ;;  %v4600_v37 = vld [vmem:[#allocation3 + $0x28] sm:$0xff] }
 0x7b8   :  { %3656 = vmatprep.mubr.msk.bf16.mxu0 %vm3910_vm0, %v3909_v3  ;;  %3670 = vmatprep.subr.bf16.mxu1 %v2808_v10  ;;  %v4602_v3 = vld [vmem:[#allocation3 + $0x10] sm:$0xff]  ;;  %v2812_v16 = vpack.c.bf16 %v4600_v37, %v4606_v14 }
 0x7b9   :  { %v2811_v13 = vpack.c.bf16 %v4598_v36, %v4602_v3  ;;  %3660 = vmatprep.subr.bf16.mxu0 %v2809_v20 }
 0x7bd   :  { %3651 = vmatmul.mubr.msk.bf16.vlgmr.msra.gmra.mrb[96].mxu1 %vm133_vm2, %v2640_v23 }
 0x7be   :  { %3657 = vmatmul.mubr.msk.bf16.vlgmr.msra.gmra.mrb[96].mxu0 %vm133_vm2, %v2640_v23  ;;  %3672 = vmatprep.mubr.msk.bf16.mxu1 %vm133_vm2, %v2810_v58 }
 0x7bf   :  { %3671 = vmatpush3.bf16.msra.mxu1 %v2808_v10  ;;  %3661 = vmatpush3.bf16.msra.mxu0 %v2809_v20 }
 0x7c5   :  { %3673 = vmatmul.mubr.msk.bf16.vlgmr.msra.gmra.mrb[100].mxu1 %vm133_vm2, %v2811_v13  ;;  %v2491_v13 = vld [vmem:[#allocation2 + $0xb8] sm:$0xff] }
 0x7c6   :  { %3676 = vmatprep.mubr.msk.bf16.mxu1 %vm133_vm2, %v2812_v16 }
 0x880   :  { %v2530_v25 = vpop.f32.mrb[88].mxu1  ;;  %v2577_v27 = vpop.f32.mrb[88].mxu0 }
 0x881   :  { %v2536_v28 = vadd.f32 %v2530_v25, %v2487_v21  ;;  %v3628_v29 = vpop.f32.mrb[89].mxu1  ;;  %v3634_v9 = vpop.f32.mrb[89].mxu0  ;;  %v2583_v40 = vadd.f32 %v2577_v27, %v2489_v15 }
 0x882   :  { %v2533_v30 = vpop.f32.mrb[90].mxu1  ;;  %v2580_v32 = vpop.f32.mrb[90].mxu0 }
 0x883   :  { %v3229_v34 = vmul.f32 -1.442695, %v2536_v28  ;;  %v3629_v35 = vpop.f32.mrb[91].mxu1  ;;  %v3635_v39 = vpop.f32.mrb[91].mxu0  ;;  %v3231_v41 = vmul.f32 -1.442695, %v2583_v40 }
 0x884   :  { %v2639_v28 = vld [vmem:[#allocation2 + $0x140] sm:$0xff] }
 0x885   :  { %3837 = vpow2.f32 %v3229_v34 }
 0x886   :  { %3839 = vpow2.f32 %v3231_v41 }
 0x888   :  { %v2624_v42 = vpop.f32.mrb[92].mxu1 }
 0x889   :  { %v3640_v44 = vpop.f32.mrb[93].mxu1  ;;  %v2678_v26 = vpop.f32.mrb[92].mxu0  ;;  %v2625_v31 = vadd.f32 %v4450_v18, %v2624_v42  ;;  %v4631_v42 = vld [vmem:[#allocation3 + $0x30] sm:$0xff] }
 0x88a   :  { %v2684_v46 = vadd.f32 %v2678_v26, %v2637_v63  ;;  %v2627_v47 = vpop.f32.mrb[94].mxu1  ;;  %v3646_v49 = vpop.f32.mrb[93].mxu0 }
 0x88b   :  { %v3641_v33 = vpop.f32.mrb[95].mxu1  ;;  %v2681_v50 = vpop.f32.mrb[94].mxu0  ;;  %v4649_v49 = vld [vmem:[#allocation4 + $0x18] sm:$0xff] }
 0x88c   :  { %v3234_v52 = vmul.f32 -1.442695, %v2684_v46  ;;  %v3647_v51 = vpop.f32.mrb[95].mxu0  ;;  %v4643_v46 = vld [vmem:[#allocation4 + $0x8] sm:$0xff] }
 0x88d   :  { %v4653_v50 = vld [vmem:[#allocation4 + $0x28] sm:$0xff]  ;;  %v4660_v51 = vld [vmem:[#allocation4 + $0x30] sm:$0xff] }
 0x88e   :  { %3841 = vpow2.f32 %v3234_v52 }
 0x88f   :  { %v3838_v53 = vpop.eup %3837 }
 0x890   :  { %v2540_v54 = vadd.f32 1.0, %v3838_v53  ;;  %v2725_v57 = vpop.f32.mrb[96].mxu1  ;;  %v3840_v5 = vpop.eup %3839  ;;  %v4662_v53 = vld [vmem:[#allocation4 + $0x38] sm:$0xff] }
 0x891   :  { %v2731_v59 = vadd.f32 %v2725_v57, %v2638_v56  ;;  %v3652_v43 = vpop.f32.mrb[97].mxu1  ;;  %v2772_v60 = vpop.f32.mrb[96].mxu0  ;;  %v2587_v55 = vadd.f32 1.0, %v3840_v5 }
 0x892   :  { %3843 = vrcp.f32 %v2540_v54  ;;  %v2728_v61 = vpop.f32.mrb[98].mxu1  ;;  %v3658_v62 = vpop.f32.mrb[97].mxu0  ;;  %v2773_v20 = vadd.f32 %v4502_v45, %v2772_v60  ;;  %v2817_v54 = vpack.c.bf16 %v4662_v53, %v4660_v51 }
 0x893   :  { %v3236_v48 = vmul.f32 -1.442695, %v2731_v59  ;;  %v3653_v0 = vpop.f32.mrb[99].mxu1  ;;  %v2775_v2 = vpop.f32.mrb[98].mxu0  ;;  %v3246_v61 = vld [vmem:[%s4730_s6] ss:$0 sm:$0xff] }
 0x894   :  { %v3659_v38 = vpop.f32.mrb[99].mxu0 }
 0x895   :  { %3845 = vpow2.f32 %v3236_v48 }
 0x898   :  { %v3842_v6 = vpop.eup %3841  ;;  %v4618_v17 = vpop.f32.mrb[100].mxu1 }
 0x899   :  { %v2688_v7 = vadd.f32 1.0, %v3842_v6  ;;  %v4620_v22 = vpop.f32.mrb[101].mxu1 }
 0x89a   :  { %v4622_v24 = vpop.f32.mrb[102].mxu1 }
 0x89b   :  { %3847 = vrcp.f32 %v2688_v7  ;;  %v4625_v23 = vpop.f32.mrb[103].mxu1 }
 0x89c   :  { %v3844_v10 = vpop.eup %3843  ;;  %3849 = vrcp.f32 %v2587_v55 }
 0x89d   :  { %v2630_v58 = vmul.f32 %v3844_v10, %v2625_v31 }
 0x89f   :  { %v3846_v16 = vpop.eup %3845  ;;  %v2631_v1 = vadd.f32 %v2630_v58, %v2491_v13 }
 0x8a0   :  { %v2735_v19 = vadd.f32 1.0, %v3846_v16 }
 0x8a1   :  { %3851 = vtanh.f32 %v2631_v1 }
 0x8a2   :  { %3853 = vrcp.f32 %v2735_v19 }
 0x8a5   :  { %v3848_v21 = vpop.eup %3847 }
 0x8a6   :  { %v2778_v25 = vmul.f32 %v3848_v21, %v2773_v20  ;;  %v3850_v27 = vpop.eup %3849 }
 0x8a7   :  { %v2633_v18 = vsub.f32 1.0, %v3850_v27  ;;  %v2635_v30 = vmul.f32 %v3850_v27, %v4552_v4  ;;  %v4639_v4 = vld [vmem:[#allocation4 + $0x10] sm:$0xff] }
 0x8a8   :  { %v2779_v29 = vadd.f32 %v2778_v25, %v2639_v28  ;;  %v2815_v33 = vpack.c.bf16 %v4649_v49, %v4639_v4 }
 0x8aa   :  { %3855 = vtanh.f32 %v2779_v29 }
 0x8ab   :  { %v3852_v9 = vpop.eup %3851 }
 0x8ac   :  { %v2634_v32 = vmul.f32 %v3852_v9, %v2633_v18  ;;  %v3854_v15 = vpop.eup %3853 }
 0x8ad   :  { %v2781_v35 = vsub.f32 1.0, %v3854_v15  ;;  %v2783_v45 = vmul.f32 %v3854_v15, %v4575_v8  ;;  %v4645_v8 = vld [vmem:[#allocation4 + $0x20] sm:$0xff] }
 0x8ae   :  { %v2636_v34 = vadd.f32 %v2635_v30, %v2634_v32  ;;  %v2816_v52 = vpack.c.bf16 %v4653_v50, %v4645_v8 }
 0x8b0   :  { %2786 = vst.msk [vmem:[#allocation3 + $0x38] sm:$0xff] %vm133_vm2, %v2636_v34 }
 0x8b4   :  { %v3856_v39 = vpop.eup %3855 }
 0x8b5   :  { %v2782_v40 = vmul.f32 %v3856_v39, %v2781_v35 }
 0x8b7   :  { %v2784_v41 = vadd.f32 %v2783_v45, %v2782_v40  ;;  %v4633_v44 = vld [vmem:[#allocation3 + $0x38] sm:$0xff] }
 0x8b8   :  { %v2813_v63 = vpack.c.bf16 %v4633_v44, %v4631_v42 }
 0x8b9   :  { %2787 = vst.msk [vmem:[#allocation4] sm:$0xff] %vm133_vm2, %v2784_v41 }
 0x8ba   :  { %3677 = vmatmul.mubr.msk.bf16.gmra.mrb[104].mxu1 %vm133_vm2, %v2813_v63 }
 0x8c0   :  { %v4641_v26 = vld [vmem:[#allocation4] sm:$0xff] }
 0x8c1   :  { %v2814_v47 = vpack.c.bf16 %v4643_v46, %v4641_v26 }
 0x8c3   :  { %3662 = vmatprep.mubr.msk.bf16.mxu0 %vm133_vm2, %v2814_v47 }
 0x8c4   :  { %3663 = vmatmul.mubr.msk.bf16.vlgmr.msra.gmra.mrb[100].mxu0 %vm133_vm2, %v2815_v33 }
 0x8c5   :  { %3666 = vmatprep.mubr.msk.bf16.mxu0 %vm133_vm2, %v2816_v52 }
 0x8cc   :  { %3667 = vmatmul.mubr.msk.bf16.gmra.mrb[104].mxu0 %vm133_vm2, %v2817_v54 }
 0x98d   :  { %v3678_v56 = vpop.f32.mrb[104].mxu1 }
 0x98e   :  { %v2957_v57 = vpop.f32.mrb[105].mxu1 }
 0x98f   :  { %v3679_v59 = vpop.f32.mrb[106].mxu1 }
 0x990   :  { %v2960_v43 = vpop.f32.mrb[107].mxu1 }
 0x997   :  { %v3664_v60 = vpop.f32.mrb[100].mxu0 }
 0x998   :  { %v2950_v62 = vadd.f32 %v4618_v17, %v3664_v60  ;;  %v2864_v48 = vpop.f32.mrb[101].mxu0 }
 0x999   :  { %v2942_v0 = vadd.f32 %v4620_v22, %v2864_v48  ;;  %v3665_v2 = vpop.f32.mrb[102].mxu0 }
 0x99a   :  { %v2981_v38 = vadd.f32 %v3246_v61, %v2950_v62  ;;  %v2953_v5 = vadd.f32 %v4622_v24, %v3665_v2  ;;  %v2867_v6 = vpop.f32.mrb[103].mxu0 }
 0x99b   :  { %v2979_v55 = vadd.f32 %v3246_v61, %v2942_v0  ;;  %v2945_v7 = vadd.f32 %v4625_v23, %v2867_v6  ;;  %v3247_v23 = vld [vmem:[%s4731_s7] ss:$0 sm:$0xff]  ;;  %s3917_s7 = smov 16  }
 0x99c   :  { %3857 = vtanh.f32 %v2981_v38  ;;  %v2982_v31 = vadd.f32 %v3246_v61, %v2953_v5 }
 0x99d   :  { %3859 = vtanh.f32 %v2979_v55  ;;  %v2980_v10 = vadd.f32 %v3246_v61, %v2945_v7 }
 0x99f   :  { %3861 = vtanh.f32 %v2980_v10  ;;  %v3668_v58 = vpop.f32.mrb[104].mxu0 }
 0x9a0   :  { %3863 = vtanh.f32 %v2982_v31  ;;  %v2966_v13 = vadd.f32 %v3678_v56, %v3668_v58  ;;  %v2880_v17 = vpop.f32.mrb[105].mxu0 }
 0x9a1   :  { %v2958_v16 = vadd.f32 %v2957_v57, %v2880_v17  ;;  %v3669_v1 = vpop.f32.mrb[106].mxu0 }
 0x9a2   :  { %v2985_v22 = vadd.f32 %v3246_v61, %v2966_v13  ;;  %v2969_v19 = vadd.f32 %v3679_v59, %v3669_v1  ;;  %v2883_v20 = vpop.f32.mrb[107].mxu0 }
 0x9a3   :  { %v2983_v21 = vadd.f32 %v3246_v61, %v2958_v16  ;;  %v2961_v24 = vadd.f32 %v2960_v43, %v2883_v20 }
 0x9a4   :  { %3865 = vtanh.f32 %v2985_v22  ;;  %v2986_v25 = vadd.f32 %v3246_v61, %v2969_v19 }
 0x9a5   :  { %3867 = vtanh.f32 %v2983_v21  ;;  %v2984_v27 = vadd.f32 %v3246_v61, %v2961_v24 }
 0x9a6   :  { %v3858_v28 = vpop.eup %3857 }
 0x9a7   :  { %v3860_v29 = vpop.eup %3859  ;;  %3869 = vtanh.f32 %v2984_v27  ;;  %v3004_v18 = vmul.f32 %v3858_v28, %v3247_v23 }
 0x9a8   :  { %3871 = vtanh.f32 %v2986_v25  ;;  %v3002_v32 = vmul.f32 %v3860_v29, %v3247_v23 }
 0x9a9   :  { %v3862_v9 = vpop.eup %3861  ;;  %v3016_v30 = vsel %vm55_vm1, %v3004_v18, 0.0 }
 0x9aa   :  { %v3864_v34 = vpop.eup %3863  ;;  %3017 = vadd.xlane.f32.xlu0 %v3016_v30  ;;  %v3003_v15 = vmul.f32 %v3862_v9, %v3247_v23  ;;  %v3010_v39 = vsel %vm55_vm1, %v3002_v32, 0.0 }
 0x9ab   :  { %v3005_v45 = vmul.f32 %v3864_v34, %v3247_v23 }
 0x9ac   :  { %v3013_v35 = vsel %vm55_vm1, %v3003_v15, 0.0 }
 0x9ad   :  { %3014 = vadd.xlane.f32.xlu1 %v3013_v35  ;;  %v3019_v33 = vsel %vm55_vm1, %v3005_v45, 0.0 }
 0x9ae   :  { %v3866_v40 = vpop.eup %3865  ;;  %3011 = vadd.xlane.f32.xlu0 %v3010_v39 }
 0x9af   :  { %v3868_v41 = vpop.eup %3867  ;;  %v3008_v57 = vmul.f32 %v3866_v40, %v3247_v23 }
 0x9b0   :  { %v3006_v63 = vmul.f32 %v3868_v41, %v3247_v23 }
 0x9b1   :  { %v3870_v47 = vpop.eup %3869  ;;  %v3028_v60 = vsel %vm55_vm1, %v3008_v57, 0.0 }
 0x9b2   :  { %v3872_v52 = vpop.eup %3871  ;;  %3020 = vadd.xlane.f32.xlu0 %v3019_v33  ;;  %v3022_v54 = vsel %vm55_vm1, %v3006_v63, 0.0  ;;  %v3007_v56 = vmul.f32 %v3870_v47, %v3247_v23 }
 0x9b3   :  { %3023 = vadd.xlane.f32.xlu1 %v3022_v54  ;;  %v3009_v43 = vmul.f32 %v3872_v52, %v3247_v23 }
 0x9b4   :  { %v3025_v59 = vsel %vm55_vm1, %v3007_v56, 0.0 }
 0x9b5   :  { %v3031_v61 = vsel %vm55_vm1, %v3009_v43, 0.0 }
 0x9b6   :  { %3026 = vadd.xlane.f32.xlu0 %v3025_v59 }
 0x9b7   :  { %3029 = vadd.xlane.f32.xlu1 %v3028_v60 }
 0x9ba   :  { %3032 = vadd.xlane.f32.xlu0 %v3031_v61 }
 0xa37   :  { %v3018_v62 = vpop.xlane.xlu0 %3017 }
 0xa38   :  { %3873 = vtanh.f32 %v3018_v62 }
 0xa3a   :  { %v3015_v0 = vpop.xlane.xlu1 %3014 }
 0xa3b   :  { %v3012_v48 = vpop.xlane.xlu0 %3011  ;;  %3875 = vtanh.f32 %v3015_v0 }
 0xa3c   :  { %3877 = vtanh.f32 %v3012_v48 }
 0xa3f   :  { %v3021_v2 = vpop.xlane.xlu0 %3020 }
 0xa40   :  { %v3024_v38 = vpop.xlane.xlu1 %3023 }
 0xa42   :  { %v3874_v7 = vpop.eup %3873 }
 0xa43   :  { %v3027_v5 = vpop.xlane.xlu0 %3026 }
 0xa44   :  { %3879 = vtanh.f32 %v3027_v5  ;;  %v3030_v6 = vpop.xlane.xlu1 %3029 }
 0xa45   :  { %3881 = vtanh.f32 %v3024_v38  ;;  %v3876_v31 = vpop.eup %3875 }
 0xa46   :  { %3883 = vtanh.f32 %v3030_v6  ;;  %v3878_v10 = vpop.eup %3877 }
 0xa47   :  { %3885 = vtanh.f32 %v3021_v2  ;;  %v3033_v55 = vpop.xlane.xlu0 %3032 }
 0xa48   :  { %3887 = vtanh.f32 %v3033_v55 }
 0xa4e   :  { %v3880_v58 = vpop.eup %3879 }
 0xa4f   :  { %v3882_v13 = vpop.eup %3881  ;;  %v3043_v1 = vmax.f32 %v3876_v31, %v3880_v58 }
 0xa50   :  { %v3884_v17 = vpop.eup %3883  ;;  %v3042_v19 = vmax.f32 %v3878_v10, %v3882_v13 }
 0xa51   :  { %v3886_v16 = vpop.eup %3885  ;;  %v3044_v20 = vmax.f32 %v3874_v7, %v3884_v17 }
 0xa52   :  { %v3888_v22 = vpop.eup %3887  ;;  %v3046_v24 = vmax.f32 %v3042_v19, %v3043_v1 }
 0xa53   :  { %v3045_v21 = vmax.f32 %v3886_v16, %v3888_v22 }
 0xa55   :  { %v3047_v25 = vmax.f32 %v3044_v20, %v3045_v21 }
 0xa57   :  { %v3048_v23 = vmax.f32 %v3046_v24, %v3047_v25 }
 0xa59   :  { %v3049_v27 = vsub.f32 %v3878_v10, %v3048_v23  ;;  %v3050_v28 = vsub.f32 %v3876_v31, %v3048_v23  ;;  %v3051_v29 = vsub.f32 %v3874_v7, %v3048_v23  ;;  %v3052_v18 = vsub.f32 %v3886_v16, %v3048_v23 }
 0xa5a   :  { %v3053_v32 = vsub.f32 %v3882_v13, %v3048_v23  ;;  %v3054_v15 = vsub.f32 %v3880_v58, %v3048_v23  ;;  %v3055_v39 = vsub.f32 %v3884_v17, %v3048_v23  ;;  %v3056_v40 = vsub.f32 %v3888_v22, %v3048_v23 }
 0xa5b   :  { %v3057_v9 = vmul.f32 1.442695, %v3049_v27  ;;  %v3059_v30 = vmul.f32 1.442695, %v3050_v28  ;;  %v3061_v34 = vmul.f32 1.442695, %v3051_v29 }
 0xa5c   :  { %v3063_v35 = vmul.f32 1.442695, %v3052_v18  ;;  %v3065_v45 = vmul.f32 1.442695, %v3053_v32  ;;  %v3067_v41 = vmul.f32 1.442695, %v3054_v15 }
 0xa5d   :  { %3889 = vpow2.f32 %v3057_v9  ;;  %v3069_v63 = vmul.f32 1.442695, %v3055_v39  ;;  %v3071_v47 = vmul.f32 1.442695, %v3056_v40 }
 0xa5e   :  { %3891 = vpow2.f32 %v3059_v30 }
 0xa5f   :  { %3893 = vpow2.f32 %v3061_v34 }
 0xa60   :  { %3895 = vpow2.f32 %v3063_v35 }
 0xa61   :  { %3897 = vpow2.f32 %v3065_v45 }
 0xa62   :  { %3899 = vpow2.f32 %v3067_v41 }
 0xa63   :  { %3901 = vpow2.f32 %v3069_v63 }
 0xa64   :  { %3903 = vpow2.f32 %v3071_v47 }
 0xa67   :  { %v3890_v33 = vpop.eup %3889 }
 0xa68   :  { %v3892_v52 = vpop.eup %3891 }
 0xa69   :  { %v3073_v54 = vadd.f32 %v3892_v52, %v3890_v33  ;;  %v3894_v56 = vpop.eup %3893 }
 0xa6a   :  { %v3896_v59 = vpop.eup %3895 }
 0xa6b   :  { %v3074_v57 = vadd.f32 %v3894_v56, %v3073_v54  ;;  %v3898_v60 = vpop.eup %3897 }
 0xa6c   :  { %v3900_v62 = vpop.eup %3899 }
 0xa6d   :  { %v3075_v43 = vadd.f32 %v3896_v59, %v3074_v57  ;;  %v3902_v0 = vpop.eup %3901 }
 0xa6e   :  { %v3904_v38 = vpop.eup %3903 }
 0xa6f   :  { %v3076_v61 = vadd.f32 %v3898_v60, %v3075_v43 }
 0xa71   :  { %v3077_v48 = vadd.f32 %v3900_v62, %v3076_v61 }
 0xa73   :  { %v3078_v2 = vadd.f32 %v3902_v0, %v3077_v48 }
 0xa75   :  { %v3079_v5 = vadd.f32 %v3904_v38, %v3078_v2 }
 0xa77   :  { %3905 = vrcp.f32 %v3079_v5 }
 0xa81   :  { %v3906_v6 = vpop.eup %3905 }
 0xa82   :  { %v3081_v55 = vmul.f32 %v3906_v6, %v3890_v33  ;;  %v3082_v7 = vmul.f32 %v3906_v6, %v3892_v52  ;;  %v3083_v31 = vmul.f32 %v3906_v6, %v3894_v56  ;;  %v3084_v10 = vmul.f32 %v3906_v6, %v3896_v59 }
 0xa83   :  { %v3085_v13 = vmul.f32 %v3906_v6, %v3898_v60  ;;  %v3086_v19 = vmul.f32 %v3906_v6, %v3900_v62  ;;  %v3087_v24 = vmul.f32 %v3906_v6, %v3902_v0 }
 0xa84   :  { %v3112_v58 = vmul.f32 %v3081_v55, %v4641_v26  ;;  %v3090_v17 = vmul.f32 %v3082_v7, %v4589_v11  ;;  %v3113_v16 = vmul.f32 %v3082_v7, %v4643_v46  ;;  %v3114_v1 = vmul.f32 %v3083_v31, %v4639_v4 }
 0xa85   :  { %v3115_v20 = vmul.f32 %v3084_v10, %v4649_v49  ;;  %v3091_v25 = vmul.f32 %v3083_v31, %v4602_v3  ;;  %v3116_v26 = vmul.f32 %v3085_v13, %v4645_v8  ;;  %v3089_v11 = vmul.f32 %v3081_v55, %v4591_v12 }
 0xa86   :  { %v3120_v22 = vsel %vm133_vm2, %v3112_v58, 0.0  ;;  %v3121_v21 = vsel %vm133_vm2, %v3113_v16, 0.0  ;;  %v3123_v27 = vsel %vm133_vm2, %v3114_v1, 0.0  ;;  %v3098_v46 = vsel %vm133_vm2, %v3090_v17, 0.0 }
 0xa87   :  { %v3122_v23 = vadd.f32 %v3121_v21, %v3120_v22  ;;  %v3088_v4 = vmul.f32 %v3906_v6, %v3904_v38  ;;  %v3092_v29 = vmul.f32 %v3084_v10, %v4598_v36  ;;  %v3117_v49 = vmul.f32 %v3086_v19, %v4653_v50 }
 0xa88   :  { %v3125_v18 = vsel %vm133_vm2, %v3115_v20, 0.0  ;;  %v3097_v9 = vsel %vm133_vm2, %v3089_v11, 0.0  ;;  %v3093_v8 = vmul.f32 %v3085_v13, %v4606_v14  ;;  %v3118_v32 = vmul.f32 %v3087_v24, %v4660_v51 }
 0xa89   :  { %v3124_v28 = vadd.f32 %v3123_v27, %v3122_v23  ;;  %v3099_v30 = vadd.f32 %v3098_v46, %v3097_v9  ;;  %v3127_v12 = vsel %vm133_vm2, %v3116_v26, 0.0  ;;  %v3100_v34 = vsel %vm133_vm2, %v3091_v25, 0.0 }
 0xa8a   :  { %v3094_v36 = vmul.f32 %v3086_v19, %v4600_v37  ;;  %v3119_v50 = vmul.f32 %v3088_v4, %v4662_v53  ;;  %v3129_v39 = vsel %vm133_vm2, %v3117_v49, 0.0  ;;  %v3102_v45 = vsel %vm133_vm2, %v3092_v29, 0.0 }
 0xa8b   :  { %v3126_v3 = vadd.f32 %v3125_v18, %v3124_v28  ;;  %v3101_v35 = vadd.f32 %v3100_v34, %v3099_v30  ;;  %v3095_v14 = vmul.f32 %v3087_v24, %v4631_v42  ;;  %v3131_v51 = vsel %vm133_vm2, %v3118_v32, 0.0 }
 0xa8c   :  { %v3104_v63 = vsel %vm133_vm2, %v3093_v8, 0.0  ;;  %v3096_v52 = vmul.f32 %v3088_v4, %v4633_v44  ;;  %v3133_v37 = vsel %vm133_vm2, %v3119_v50, 0.0  ;;  %v3106_v53 = vsel %vm133_vm2, %v3094_v36, 0.0 }
 0xa8d   :  { %v3128_v15 = vadd.f32 %v3127_v12, %v3126_v3  ;;  %v3103_v41 = vadd.f32 %v3102_v45, %v3101_v35  ;;  %v3108_v57 = vsel %vm133_vm2, %v3095_v14, 0.0 }
 0xa8e   :  { %v3110_v42 = vsel %vm133_vm2, %v3096_v52, 0.0 }
 0xa8f   :  { %v3130_v40 = vadd.f32 %v3129_v39, %v3128_v15  ;;  %v3105_v33 = vadd.f32 %v3104_v63, %v3103_v41 }
 0xa91   :  { %v3132_v47 = vadd.f32 %v3131_v51, %v3130_v40  ;;  %v3107_v56 = vadd.f32 %v3106_v53, %v3105_v33 }
 0xa93   :  { %v3134_v54 = vadd.f32 %v3133_v37, %v3132_v47  ;;  %v3109_v59 = vadd.f32 %v3108_v57, %v3107_v56 }
 0xa95   :  { %3137 = vrot.lane.b32.xlu1 %v3134_v54, %s3917_s7  ;;  %v3111_v43 = vadd.f32 %v3110_v42, %v3109_v59 }
 0xa97   :  { %3135 = vst.msk [vmem:[%s4732_s8] sm:$0xff] %vm133_vm2, %v3111_v43 }
 0xb07   :  { %v3138_v44 = vpop.permute.xlu1 %3137 }
 0xb08   :  { %3141 = vst.msk [vmem:[%s4732_s8] sm:$0xff] %vm3140_vm3, %v3138_v44 }

</bundles_post_ra>
